<compile_context>
chip_gen: v5e
topology: v5e:2x2
jax: 0.10.0
libtpu: 0.0.40
codegen_flags: <defaults>
</compile_context>

<pallas_src>
import functools
from typing import NamedTuple

import jax
import jax.numpy as jnp
from jax.experimental import pallas as pl
from jax.experimental.pallas import tpu as pltpu

_LANE = 128
_SUBLANE = 8


def _round_up(x, m):
    return (x + m - 1) // m * m


# ---------------------------------------------------------------------------
# Kernel bodies
# ---------------------------------------------------------------------------

def _neural_grid_epilogue(h, gw_ref, gb_ref, w_out_ref, b_out_ref, o_ref, *,
                          needs_mask):
    """Runs the whole grid-layer chain on a resident (TB, Hp) f32 tile, then
    dense_out into a lane-dense (TB, Np) output tile."""
    hp = h.shape[-1]
    n_layers = gw_ref.shape[0]

    if needs_mask:
        # Hp == H (no zero-weight pad column): the roll wrap-around lanes carry
        # real data and must be masked.  Hoisted out of the layer loop.
        lane = jax.lax.broadcasted_iota(jnp.int32, (1, hp), 1)
        keep_prev = lane != 0          # lane 0 would receive wrapped z[H-1]
        keep_next = lane != hp - 1     # lane H-1 would receive wrapped z[0]

    def one_layer(w_row, b_row, h):
        # z[h] = w[h]*x[h];  y[h] = sin(z[h-1] + z[h] + z[h+1] + b[h])
        z = h * w_row                                  # VPU
        z_prev = pltpu.roll(z, 1, 1)                   # z[h-1] taps (XLU)
        z_next = pltpu.roll(z, hp - 1, 1)              # z[h+1] taps (XLU)
        if needs_mask:
            z_prev = jnp.where(keep_prev, z_prev, 0.0)
            z_next = jnp.where(keep_next, z_next, 0.0)
        # When Hp > H the wrap lanes only ever carry values from the
        # zero-weight pad region, so no masking is needed (exact).
        # Note: jnp.sin lowers to VPU range-reduction + polynomial (VALU work).
        return jnp.sin(z_prev + z + z_next + b_row)

    if n_layers <= 8:
        # Small grid_width: fully unrolled, static sublane rows (free slices).
        for l in range(n_layers):
            h = one_layer(gw_ref[pl.ds(l, 1), :], gb_ref[pl.ds(l, 1), :], h)
    else:
        # Large grid_width: partial unroll keeps LLO visibility without the
        # vreg-pressure / code-bloat blowup of a full unroll.
        def body(l, h):
            return one_layer(gw_ref[pl.ds(l, 1), :], gb_ref[pl.ds(l, 1), :], h)
        h = jax.lax.fori_loop(0, n_layers, body, h, unroll=4)

    # dense_out: tiny matmul; f32 operands for accuracy headroom.
    o_ref[...] = (jnp.dot(h, w_out_ref[...], preferred_element_type=jnp.float32)
                  + b_out_ref[...]).astype(o_ref.dtype)


def _kernel_single_k(x_ref, w_in_ref, b_in_ref, gw_ref, gb_ref, w_out_ref,
                     b_out_ref, o_ref, *, needs_mask):
    # n_inputs fits one K tile: no accumulator scratch, no k-phase branches.
    h = jnp.dot(x_ref[...], w_in_ref[...],
                preferred_element_type=jnp.float32) + b_in_ref[...]
    _neural_grid_epilogue(h, gw_ref, gb_ref, w_out_ref, b_out_ref, o_ref,
                          needs_mask=needs_mask)


def _kernel_multi_k(x_ref, w_in_ref, b_in_ref, gw_ref, gb_ref, w_out_ref,
                    b_out_ref, o_ref, acc_ref, *, needs_mask):
    k = pl.program_id(1)

    @pl.when(k == 0)
    def _():
        acc_ref[...] = jnp.zeros_like(acc_ref)

    # dense_in partial product: bf16 inputs, f32 accumulation on the MXU.
    acc_ref[...] += jnp.dot(x_ref[...], w_in_ref[...],
                            preferred_element_type=jnp.float32)

    @pl.when(k == pl.num_programs(1) - 1)
    def _():
        h = acc_ref[...] + b_in_ref[...]
        _neural_grid_epilogue(h, gw_ref, gb_ref, w_out_ref, b_out_ref, o_ref,
                              needs_mask=needs_mask)


# ---------------------------------------------------------------------------
# Tiling policy / one-time parameter preparation
# ---------------------------------------------------------------------------

def _device_profile():
    kind = ""
    try:
        kind = jax.devices()[0].device_kind.lower()
    except Exception:
        pass
    if "v5 lite" in kind or "v5e" in kind or "v5lite" in kind:
        # 16 MiB default scoped VMEM, lowest HBM BW: keep depth-2 pipelining.
        return dict(budget=12 * 2**20, tb_cap=128, two_tc=False)
    if "v6" in kind:
        # 128 MiB physical VMEM: prefer one large batch tile so W_in is
        # re-streamed from HBM fewer times.
        return dict(budget=48 * 2**20, tb_cap=512, two_tc=False)
    if "v7" in kind:
        # 64 MiB physical VMEM, 2 TensorCores sharing the parallel axis.
        return dict(budget=24 * 2**20, tb_cap=256, two_tc=True)
    return dict(budget=16 * 2**20, tb_cap=256, two_tc=True)


class _Meta(NamedTuple):
    n_in: int
    H: int
    n_out: int
    L: int
    Hp: int
    Np: int
    TK: int
    nk: int
    tb_cap: int
    two_tc: bool


def _const_vmem_bytes(Hp, Np, L):
    Lp = _round_up(L, _SUBLANE)
    # Assume double-buffered constants for the budget (conservative).
    return 2 * (Hp * Np * 4 + _SUBLANE * Np * 4 + _SUBLANE * Hp * 4
                + 2 * Lp * Hp * 4)


def prepare_params(params):
    """Pad + cast all parameters ONCE (hoisted out of the per-call path) and
    fix the dense_in K tile from a per-chip resident-VMEM budget."""
    f32, bf16 = jnp.float32, jnp.bfloat16
    w_in, b_in = params["w_in"], params["b_in"]
    gw, gb = params["grid_w"], params["grid_b"]
    w_out, b_out = params["w_out"], params["b_out"]

    n_in, H = w_in.shape
    L = gw.shape[0]
    n_out = w_out.shape[1]

    prof = _device_profile()
    budget, tb_cap, two_tc = prof["budget"], prof["tb_cap"], prof["two_tc"]

    # When H is already a multiple of 128 we do NOT add an extra lane block
    # for the stencil halo; the kernel masks the two wrap lanes instead.
    Hp = _round_up(H, _LANE)
    Np = _round_up(n_out, _LANE)
    n_in_128 = _round_up(n_in, _LANE)

    # Derive TK from the TOTAL resident VMEM: double-buffered bf16 x & W_in,
    # f32 accumulator, constants, double-buffered f32 output tile.
    const_bytes = _const_vmem_bytes(Hp, Np, L)
    TK, tb = 0, tb_cap
    while tb >= _SUBLANE:
        fixed = const_bytes + tb * Hp * 4 + 2 * tb * Np * 4
        per_tk = 2 * tb * 2 + 2 * Hp * 2            # bf16 x + W_in, 2 buffers
        tk = (budget - fixed) // per_tk
        tk = (tk // _LANE) * _LANE
        if tk >= _LANE:
            TK = int(min(tk, n_in_128))
            break
        tb //= 2
    if TK == 0:                                      # pathological fallback
        TK, tb = _LANE, _SUBLANE
    tb_cap = max(tb, _SUBLANE)

    nk = pl.cdiv(n_in_128, TK)
    n_in_p = nk * TK

    padded = dict(
        # HBM-bound phase: bf16 halves x/W_in traffic and hits native MXU rate.
        w_in=jnp.zeros((n_in_p, Hp), bf16).at[:n_in, :H].set(w_in.astype(bf16)),
        b_in=jnp.zeros((1, Hp), f32).at[:, :H].set(b_in.astype(f32)),
        # Dense (L, Hp) rows (no (L,1,Hp) sublane-padding blow-up).
        grid_w=jnp.zeros((L, Hp), f32).at[:, :H].set(gw.reshape(L, H).astype(f32)),
        grid_b=jnp.zeros((L, Hp), f32).at[:, :H].set(gb.reshape(L, H).astype(f32)),
        # dense_out operands stay f32: W_out is tiny next to W_in and the f32
        # epilogue keeps the kernel within a few e-3 of the f32 reference.
        w_out=jnp.zeros((Hp, Np), f32).at[:H, :n_out].set(w_out.astype(f32)),
        b_out=jnp.zeros((1, Np), f32).at[:, :n_out].set(b_out.astype(f32)),
    )
    meta = _Meta(n_in=n_in, H=H, n_out=n_out, L=L, Hp=Hp, Np=Np, TK=TK, nk=nk,
                 tb_cap=tb_cap, two_tc=two_tc)
    return padded, meta


def _choose_tb(B, meta):
    if B <= _SUBLANE:
        return _round_up(B, _SUBLANE)          # single full-batch tile
    if meta.two_tc:
        tb = _round_up(pl.cdiv(B, 2), 16)      # >= 2 tiles keeps both TCs busy
    else:
        tb = _round_up(min(B, meta.tb_cap), 16)
    return min(max(tb, 16), max(meta.tb_cap, 16))


# ---------------------------------------------------------------------------
# Forward pass
# ---------------------------------------------------------------------------

def grid_neural_network_2d(x_nchw, padded, meta):
    """Forward pass of GridNeuralNetwork2D via a single Pallas kernel."""
    bf16 = jnp.bfloat16
    B = x_nchw.shape[0]
    x = x_nchw.reshape(B, -1)                  # flatten(start_dim=1)
    assert x.shape[1] == meta.n_in

    Hp, Np, TK, nk = meta.Hp, meta.Np, meta.TK, meta.nk
    n_in_p = padded["w_in"].shape[0]
    needs_mask = (Hp == meta.H)                # H % 128 == 0: mask wrap lanes

    TB = _choose_tb(B, meta)
    Bp = _round_up(B, TB)
    nb = Bp // TB

    # Per-call activation padding only (parameters were padded once).
    if (Bp, n_in_p) == (B, meta.n_in):
        x_p = x.astype(bf16)
    else:
        x_p = jnp.zeros((Bp, n_in_p), bf16).at[:B, :meta.n_in].set(x.astype(bf16))

    # Resident-VMEM estimate -> explicit scoped-VMEM limit.
    est = (2 * TB * TK * 2 + 2 * TK * Hp * 2 + TB * Hp * 4 + 2 * TB * Np * 4
           + _const_vmem_bytes(Hp, Np, meta.L))
    vmem_limit = int(min(max(est + 8 * 2**20, 16 * 2**20), 56 * 2**20))

    def call(const_buffers):
        # pipeline_mode on the never-changing operands (constant index_maps).
        cb = ({"pipeline_mode": pl.Buffered(const_buffers)}
              if const_buffers is not None else {})

        if nk == 1:
            kernel = functools.partial(_kernel_single_k, needs_mask=needs_mask)
            grid = (nb,)
            in_specs = [
                pl.BlockSpec((TB, TK), lambda i: (i, 0)),            # x (bf16)
                pl.BlockSpec((TK, Hp), lambda i: (0, 0), **cb),      # W_in (constant here)
                pl.BlockSpec((1, Hp), lambda i: (0, 0), **cb),       # b_in
                pl.BlockSpec((meta.L, Hp), lambda i: (0, 0), **cb),  # grid w
                pl.BlockSpec((meta.L, Hp), lambda i: (0, 0), **cb),  # grid b
                pl.BlockSpec((Hp, Np), lambda i: (0, 0), **cb),      # W_out
                pl.BlockSpec((1, Np), lambda i: (0, 0), **cb),       # b_out
            ]
            out_spec = pl.BlockSpec((TB, Np), lambda i: (i, 0))
            scratch = []
            dims = ("parallel",)
        else:
            kernel = functools.partial(_kernel_multi_k, needs_mask=needs_mask)
            grid = (nb, nk)
            in_specs = [
                pl.BlockSpec((TB, TK), lambda i, k: (i, k)),             # x tile
                pl.BlockSpec((TK, Hp), lambda i, k: (k, 0)),             # W_in K-tile
                pl.BlockSpec((1, Hp), lambda i, k: (0, 0), **cb),
                pl.BlockSpec((meta.L, Hp), lambda i, k: (0, 0), **cb),
                pl.BlockSpec((meta.L, Hp), lambda i, k: (0, 0), **cb),
                pl.BlockSpec((Hp, Np), lambda i, k: (0, 0), **cb),
                pl.BlockSpec((1, Np), lambda i, k: (0, 0), **cb),
            ]
            out_spec = pl.BlockSpec((TB, Np), lambda i, k: (i, 0))
            scratch = [pltpu.VMEM((TB, Hp), jnp.float32)]
            dims = ("parallel", "arbitrary")

        return pl.pallas_call(
            kernel,
            out_shape=jax.ShapeDtypeStruct((Bp, Np), jnp.float32),
            grid_spec=pltpu.PrefetchScalarGridSpec(
                num_scalar_prefetch=0, grid=grid, in_specs=in_specs,
                out_specs=out_spec, scratch_shapes=scratch),
            compiler_params=pltpu.CompilerParams(
                dimension_semantics=dims, vmem_limit_bytes=vmem_limit),
        )(x_p, padded["w_in"], padded["b_in"], padded["grid_w"],
          padded["grid_b"], padded["w_out"], padded["b_out"])

    try:
        # Single-buffer the constant operands (frees VMEM, zero perf cost).
        out_p = call(1)
    except Exception:
        # Fallback for jax builds that reject pl.Buffered(buffer_count=1).
        out_p = call(None)

    return out_p[:B, :meta.n_out]


# ---------------------------------------------------------------------------
# Pure-JAX reference + init (mirror the PyTorch module)
# ---------------------------------------------------------------------------

def reference_forward(x_nchw, params):
    x = x_nchw.reshape(x_nchw.shape[0], -1).astype(jnp.float32)
    hi = jnp.dot(x, params["w_in"],
                 precision=jax.lax.Precision.HIGHEST) + params["b_in"]
    gw = params["grid_w"][:, 0, :]   # (grid_width, H)
    gb = params["grid_b"][:, 0, :]
    for l in range(gw.shape[0]):
        z = hi * gw[l]
        zp = jnp.pad(z, ((0, 0), (1, 1)))
        hi = jnp.sin(zp[:, :-2] + zp[:, 1:-1] + zp[:, 2:] + gb[l])
    return jnp.dot(hi, params["w_out"],
                   precision=jax.lax.Precision.HIGHEST) + params["b_out"]


def init_params(key, *, image_height, image_width, n_channels, n_classes,
                grid_height, grid_width):
    n_inputs = image_height * image_width * n_channels
    k = jax.random.split(key, 6)

    # dense_in / dense_out: torch.nn.Linear default U(-1/sqrt(fan_in), ...)
    bnd_in = 1.0 / jnp.sqrt(n_inputs)
    w_in = jax.random.uniform(k[0], (n_inputs, grid_height), jnp.float32, -bnd_in, bnd_in)
    b_in = jax.random.uniform(k[1], (1, grid_height), jnp.float32, -bnd_in, bnd_in)

    bnd_out = 1.0 / jnp.sqrt(grid_height)
    w_out = jax.random.uniform(k[2], (grid_height, n_classes), jnp.float32, -bnd_out, bnd_out)
    b_out = jax.random.uniform(k[3], (1, n_classes), jnp.float32, -bnd_out, bnd_out)

    # grid layers: xavier uniform with fan_in = fan_out = kernel_size = 3
    bnd_g = jnp.sqrt(6.0 / (3 + 3))
    grid_w = jax.random.uniform(k[4], (grid_width, 1, grid_height), jnp.float32, -bnd_g, bnd_g)
    grid_b = jnp.zeros((grid_width, 1, grid_height), jnp.float32)

    return {"w_in": w_in, "b_in": b_in, "w_out": w_out, "b_out": b_out,
            "grid_w": grid_w, "grid_b": grid_b}


if __name__ == "__main__":
    B, C, IH, IW = 2, 4, 16, 16
    grid_height, grid_width, n_classes = 32, 8, 10

    key = jax.random.PRNGKey(0)
    kx, kp = jax.random.split(key)
    x = jax.random.normal(kx, (B, C, IH, IW), jnp.float32)   # NCHW input

    params = init_params(kp, image_height=IH, image_width=IW, n_channels=C,
                         n_classes=n_classes, grid_height=grid_height,
                         grid_width=grid_width)

    padded, meta = prepare_params(params)       # one-time padding / bf16 cast
    out = grid_neural_network_2d(x, padded, meta)
    out = jax.block_until_ready(out)

    ref = reference_forward(x, params)
    assert out.shape == (B, n_classes), out.shape
    max_err = float(jnp.max(jnp.abs(out - ref)))
    # bf16 MXU inputs for the 1024-term dense_in reductions vs a HIGHEST-
    # precision f32 reference: expect ~1e-3 RMS / few e-3 max error.
    assert jnp.allclose(out, ref, atol=5e-3, rtol=5e-3), f"max abs err {max_err}"

    print("KERNEL_OK")
</pallas_src>

<mosaic_0001>
module attributes {stable_mosaic.version = 11 : i64} {
  func.func @_kernel_single_k(%arg0: i32, %arg1: memref<8x1024xbf16, #tpu.memory_space<vmem>>, %arg2: memref<1024x128xbf16, #tpu.memory_space<vmem>>, %arg3: memref<1x128xf32, #tpu.memory_space<vmem>>, %arg4: memref<8x128xf32, #tpu.memory_space<vmem>>, %arg5: memref<8x128xf32, #tpu.memory_space<vmem>>, %arg6: memref<128x128xf32, #tpu.memory_space<vmem>>, %arg7: memref<1x128xf32, #tpu.memory_space<vmem>>, %arg8: memref<8x128xf32, #tpu.memory_space<vmem>>) attributes {dimension_semantics = [#tpu.dimension_semantics<parallel>], iteration_bounds = array<i64: 1>, scalar_prefetch = 0 : i64, scratch_operands = 0 : i64, tpu.core_type = #tpu.core_type<tc>, window_params = [{transform_indices = @transform_0, window_bounds = array<i64: 8, 1024>}, {pipeline_mode = #tpu.pipeline_mode<synchronous>, transform_indices = @transform_1, window_bounds = array<i64: 1024, 128>}, {pipeline_mode = #tpu.pipeline_mode<synchronous>, transform_indices = @transform_2, window_bounds = array<i64: 1, 128>}, {pipeline_mode = #tpu.pipeline_mode<synchronous>, transform_indices = @transform_3, window_bounds = array<i64: 8, 128>}, {pipeline_mode = #tpu.pipeline_mode<synchronous>, transform_indices = @transform_4, window_bounds = array<i64: 8, 128>}, {pipeline_mode = #tpu.pipeline_mode<synchronous>, transform_indices = @transform_5, window_bounds = array<i64: 128, 128>}, {pipeline_mode = #tpu.pipeline_mode<synchronous>, transform_indices = @transform_6, window_bounds = array<i64: 1, 128>}, {transform_indices = @transform_7, window_bounds = array<i64: 8, 128>}]} {
    %c0 = arith.constant 0 : index
    %c0_0 = arith.constant 0 : index
    %0 = vector.load %arg1[%c0, %c0_0] : memref<8x1024xbf16, #tpu.memory_space<vmem>>, vector<8x1024xbf16>
    %c0_1 = arith.constant 0 : index
    %c0_2 = arith.constant 0 : index
    %1 = vector.load %arg2[%c0_1, %c0_2] : memref<1024x128xbf16, #tpu.memory_space<vmem>>, vector<1024x128xbf16>
    %cst = arith.constant dense<0.000000e+00> : vector<8x128xf32>
    %2 = tpu.matmul %0, %1, %cst {dimension_numbers = #tpu.dot_dimension_numbers<[1], [0], [0], [1], [0, 0, 1, 1], [], []>} : vector<8x1024xbf16>, vector<1024x128xbf16>, vector<8x128xf32> -> vector<8x128xf32>
    %c0_3 = arith.constant 0 : index
    %c0_4 = arith.constant 0 : index
    %3 = vector.load %arg3[%c0_3, %c0_4] : memref<1x128xf32, #tpu.memory_space<vmem>>, vector<1x128xf32>
    %4 = vector.broadcast %3 : vector<1x128xf32> to vector<8x128xf32>
    %5 = arith.addf %2, %4 : vector<8x128xf32>
    %c0_5 = arith.constant 0 : index
    %c0_6 = arith.constant 0 : index
    %6 = vector.load %arg4[%c0_5, %c0_6] : memref<8x128xf32, #tpu.memory_space<vmem>>, vector<1x128xf32>
    %c0_7 = arith.constant 0 : index
    %c0_8 = arith.constant 0 : index
    %7 = vector.load %arg5[%c0_7, %c0_8] : memref<8x128xf32, #tpu.memory_space<vmem>>, vector<1x128xf32>
    %8 = vector.broadcast %6 : vector<1x128xf32> to vector<8x128xf32>
    %9 = arith.mulf %5, %8 : vector<8x128xf32>
    %c1_i32 = arith.constant 1 : i32
    %10 = tpu.dynamic_rotate %9 by %c1_i32 dim 1 : vector<8x128xf32>, i32 -> vector<8x128xf32>
    %c127_i32 = arith.constant 127 : i32
    %11 = tpu.dynamic_rotate %9 by %c127_i32 dim 1 : vector<8x128xf32>, i32 -> vector<8x128xf32>
    %12 = arith.addf %10, %9 : vector<8x128xf32>
    %13 = arith.addf %12, %11 : vector<8x128xf32>
    %14 = vector.broadcast %7 : vector<1x128xf32> to vector<8x128xf32>
    %15 = arith.addf %13, %14 : vector<8x128xf32>
    %16 = math.sin %15 : vector<8x128xf32>
    %c1 = arith.constant 1 : index
    %c0_9 = arith.constant 0 : index
    %17 = vector.load %arg4[%c1, %c0_9] : memref<8x128xf32, #tpu.memory_space<vmem>>, vector<1x128xf32>
    %c1_10 = arith.constant 1 : index
    %c0_11 = arith.constant 0 : index
    %18 = vector.load %arg5[%c1_10, %c0_11] : memref<8x128xf32, #tpu.memory_space<vmem>>, vector<1x128xf32>
    %19 = vector.broadcast %17 : vector<1x128xf32> to vector<8x128xf32>
    %20 = arith.mulf %16, %19 : vector<8x128xf32>
    %c1_i32_12 = arith.constant 1 : i32
    %21 = tpu.dynamic_rotate %20 by %c1_i32_12 dim 1 : vector<8x128xf32>, i32 -> vector<8x128xf32>
    %c127_i32_13 = arith.constant 127 : i32
    %22 = tpu.dynamic_rotate %20 by %c127_i32_13 dim 1 : vector<8x128xf32>, i32 -> vector<8x128xf32>
    %23 = arith.addf %21, %20 : vector<8x128xf32>
    %24 = arith.addf %23, %22 : vector<8x128xf32>
    %25 = vector.broadcast %18 : vector<1x128xf32> to vector<8x128xf32>
    %26 = arith.addf %24, %25 : vector<8x128xf32>
    %27 = math.sin %26 : vector<8x128xf32>
    %c2 = arith.constant 2 : index
    %c0_14 = arith.constant 0 : index
    %28 = vector.load %arg4[%c2, %c0_14] : memref<8x128xf32, #tpu.memory_space<vmem>>, vector<1x128xf32>
    %c2_15 = arith.constant 2 : index
    %c0_16 = arith.constant 0 : index
    %29 = vector.load %arg5[%c2_15, %c0_16] : memref<8x128xf32, #tpu.memory_space<vmem>>, vector<1x128xf32>
    %30 = vector.broadcast %28 : vector<1x128xf32> to vector<8x128xf32>
    %31 = arith.mulf %27, %30 : vector<8x128xf32>
    %c1_i32_17 = arith.constant 1 : i32
    %32 = tpu.dynamic_rotate %31 by %c1_i32_17 dim 1 : vector<8x128xf32>, i32 -> vector<8x128xf32>
    %c127_i32_18 = arith.constant 127 : i32
    %33 = tpu.dynamic_rotate %31 by %c127_i32_18 dim 1 : vector<8x128xf32>, i32 -> vector<8x128xf32>
    %34 = arith.addf %32, %31 : vector<8x128xf32>
    %35 = arith.addf %34, %33 : vector<8x128xf32>
    %36 = vector.broadcast %29 : vector<1x128xf32> to vector<8x128xf32>
    %37 = arith.addf %35, %36 : vector<8x128xf32>
    %38 = math.sin %37 : vector<8x128xf32>
    %c3 = arith.constant 3 : index
    %c0_19 = arith.constant 0 : index
    %39 = vector.load %arg4[%c3, %c0_19] : memref<8x128xf32, #tpu.memory_space<vmem>>, vector<1x128xf32>
    %c3_20 = arith.constant 3 : index
    %c0_21 = arith.constant 0 : index
    %40 = vector.load %arg5[%c3_20, %c0_21] : memref<8x128xf32, #tpu.memory_space<vmem>>, vector<1x128xf32>
    %41 = vector.broadcast %39 : vector<1x128xf32> to vector<8x128xf32>
    %42 = arith.mulf %38, %41 : vector<8x128xf32>
    %c1_i32_22 = arith.constant 1 : i32
    %43 = tpu.dynamic_rotate %42 by %c1_i32_22 dim 1 : vector<8x128xf32>, i32 -> vector<8x128xf32>
    %c127_i32_23 = arith.constant 127 : i32
    %44 = tpu.dynamic_rotate %42 by %c127_i32_23 dim 1 : vector<8x128xf32>, i32 -> vector<8x128xf32>
    %45 = arith.addf %43, %42 : vector<8x128xf32>
    %46 = arith.addf %45, %44 : vector<8x128xf32>
    %47 = vector.broadcast %40 : vector<1x128xf32> to vector<8x128xf32>
    %48 = arith.addf %46, %47 : vector<8x128xf32>
    %49 = math.sin %48 : vector<8x128xf32>
    %c4 = arith.constant 4 : index
    %c0_24 = arith.constant 0 : index
    %50 = vector.load %arg4[%c4, %c0_24] : memref<8x128xf32, #tpu.memory_space<vmem>>, vector<1x128xf32>
    %c4_25 = arith.constant 4 : index
    %c0_26 = arith.constant 0 : index
    %51 = vector.load %arg5[%c4_25, %c0_26] : memref<8x128xf32, #tpu.memory_space<vmem>>, vector<1x128xf32>
    %52 = vector.broadcast %50 : vector<1x128xf32> to vector<8x128xf32>
    %53 = arith.mulf %49, %52 : vector<8x128xf32>
    %c1_i32_27 = arith.constant 1 : i32
    %54 = tpu.dynamic_rotate %53 by %c1_i32_27 dim 1 : vector<8x128xf32>, i32 -> vector<8x128xf32>
    %c127_i32_28 = arith.constant 127 : i32
    %55 = tpu.dynamic_rotate %53 by %c127_i32_28 dim 1 : vector<8x128xf32>, i32 -> vector<8x128xf32>
    %56 = arith.addf %54, %53 : vector<8x128xf32>
    %57 = arith.addf %56, %55 : vector<8x128xf32>
    %58 = vector.broadcast %51 : vector<1x128xf32> to vector<8x128xf32>
    %59 = arith.addf %57, %58 : vector<8x128xf32>
    %60 = math.sin %59 : vector<8x128xf32>
    %c5 = arith.constant 5 : index
    %c0_29 = arith.constant 0 : index
    %61 = vector.load %arg4[%c5, %c0_29] : memref<8x128xf32, #tpu.memory_space<vmem>>, vector<1x128xf32>
    %c5_30 = arith.constant 5 : index
    %c0_31 = arith.constant 0 : index
    %62 = vector.load %arg5[%c5_30, %c0_31] : memref<8x128xf32, #tpu.memory_space<vmem>>, vector<1x128xf32>
    %63 = vector.broadcast %61 : vector<1x128xf32> to vector<8x128xf32>
    %64 = arith.mulf %60, %63 : vector<8x128xf32>
    %c1_i32_32 = arith.constant 1 : i32
    %65 = tpu.dynamic_rotate %64 by %c1_i32_32 dim 1 : vector<8x128xf32>, i32 -> vector<8x128xf32>
    %c127_i32_33 = arith.constant 127 : i32
    %66 = tpu.dynamic_rotate %64 by %c127_i32_33 dim 1 : vector<8x128xf32>, i32 -> vector<8x128xf32>
    %67 = arith.addf %65, %64 : vector<8x128xf32>
    %68 = arith.addf %67, %66 : vector<8x128xf32>
    %69 = vector.broadcast %62 : vector<1x128xf32> to vector<8x128xf32>
    %70 = arith.addf %68, %69 : vector<8x128xf32>
    %71 = math.sin %70 : vector<8x128xf32>
    %c6 = arith.constant 6 : index
    %c0_34 = arith.constant 0 : index
    %72 = vector.load %arg4[%c6, %c0_34] : memref<8x128xf32, #tpu.memory_space<vmem>>, vector<1x128xf32>
    %c6_35 = arith.constant 6 : index
    %c0_36 = arith.constant 0 : index
    %73 = vector.load %arg5[%c6_35, %c0_36] : memref<8x128xf32, #tpu.memory_space<vmem>>, vector<1x128xf32>
    %74 = vector.broadcast %72 : vector<1x128xf32> to vector<8x128xf32>
    %75 = arith.mulf %71, %74 : vector<8x128xf32>
    %c1_i32_37 = arith.constant 1 : i32
    %76 = tpu.dynamic_rotate %75 by %c1_i32_37 dim 1 : vector<8x128xf32>, i32 -> vector<8x128xf32>
    %c127_i32_38 = arith.constant 127 : i32
    %77 = tpu.dynamic_rotate %75 by %c127_i32_38 dim 1 : vector<8x128xf32>, i32 -> vector<8x128xf32>
    %78 = arith.addf %76, %75 : vector<8x128xf32>
    %79 = arith.addf %78, %77 : vector<8x128xf32>
    %80 = vector.broadcast %73 : vector<1x128xf32> to vector<8x128xf32>
    %81 = arith.addf %79, %80 : vector<8x128xf32>
    %82 = math.sin %81 : vector<8x128xf32>
    %c7 = arith.constant 7 : index
    %c0_39 = arith.constant 0 : index
    %83 = vector.load %arg4[%c7, %c0_39] : memref<8x128xf32, #tpu.memory_space<vmem>>, vector<1x128xf32>
    %c7_40 = arith.constant 7 : index
    %c0_41 = arith.constant 0 : index
    %84 = vector.load %arg5[%c7_40, %c0_41] : memref<8x128xf32, #tpu.memory_space<vmem>>, vector<1x128xf32>
    %85 = vector.broadcast %83 : vector<1x128xf32> to vector<8x128xf32>
    %86 = arith.mulf %82, %85 : vector<8x128xf32>
    %c1_i32_42 = arith.constant 1 : i32
    %87 = tpu.dynamic_rotate %86 by %c1_i32_42 dim 1 : vector<8x128xf32>, i32 -> vector<8x128xf32>
    %c127_i32_43 = arith.constant 127 : i32
    %88 = tpu.dynamic_rotate %86 by %c127_i32_43 dim 1 : vector<8x128xf32>, i32 -> vector<8x128xf32>
    %89 = arith.addf %87, %86 : vector<8x128xf32>
    %90 = arith.addf %89, %88 : vector<8x128xf32>
    %91 = vector.broadcast %84 : vector<1x128xf32> to vector<8x128xf32>
    %92 = arith.addf %90, %91 : vector<8x128xf32>
    %93 = math.sin %92 : vector<8x128xf32>
    %c0_44 = arith.constant 0 : index
    %c0_45 = arith.constant 0 : index
    %94 = vector.load %arg6[%c0_44, %c0_45] : memref<128x128xf32, #tpu.memory_space<vmem>>, vector<128x128xf32>
    %cst_46 = arith.constant dense<0.000000e+00> : vector<8x128xf32>
    %95 = tpu.matmul %93, %94, %cst_46 {dimension_numbers = #tpu.dot_dimension_numbers<[1], [0], [0], [1], [0, 0, 1, 1], [], []>} : vector<8x128xf32>, vector<128x128xf32>, vector<8x128xf32> -> vector<8x128xf32>
    %c0_47 = arith.constant 0 : index
    %c0_48 = arith.constant 0 : index
    %96 = vector.load %arg7[%c0_47, %c0_48] : memref<1x128xf32, #tpu.memory_space<vmem>>, vector<1x128xf32>
    %97 = vector.broadcast %96 : vector<1x128xf32> to vector<8x128xf32>
    %98 = arith.addf %95, %97 : vector<8x128xf32>
    %c0_49 = arith.constant 0 : index
    %c0_50 = arith.constant 0 : index
    %99 = vector.load %arg8[%c0_49, %c0_50] : memref<8x128xf32, #tpu.memory_space<vmem>>, vector<8x128xf32>
    tpu.vector_store %arg8[%c0_49, %c0_50], %98 {strides = array<i32>} : memref<8x128xf32, #tpu.memory_space<vmem>>, vector<8x128xf32>,
    return
  }
  func.func @transform_0(%arg0: i32) -> (i32, i32) {
    %c0_i32 = arith.constant 0 : i32
    %c0_i32_0 = arith.constant 0 : i32
    return %arg0, %c0_i32 : i32, i32
  }
  func.func @transform_1(%arg0: i32) -> (i32, i32) {
    %c0_i32 = arith.constant 0 : i32
    %c0_i32_0 = arith.constant 0 : i32
    %c0_i32_1 = arith.constant 0 : i32
    return %c0_i32, %c0_i32_0 : i32, i32
  }
  func.func @transform_2(%arg0: i32) -> (i32, i32) {
    %c0_i32 = arith.constant 0 : i32
    %c0_i32_0 = arith.constant 0 : i32
    %c0_i32_1 = arith.constant 0 : i32
    return %c0_i32, %c0_i32_0 : i32, i32
  }
  func.func @transform_3(%arg0: i32) -> (i32, i32) {
    %c0_i32 = arith.constant 0 : i32
    %c0_i32_0 = arith.constant 0 : i32
    %c0_i32_1 = arith.constant 0 : i32
    return %c0_i32, %c0_i32_0 : i32, i32
  }
  func.func @transform_4(%arg0: i32) -> (i32, i32) {
    %c0_i32 = arith.constant 0 : i32
    %c0_i32_0 = arith.constant 0 : i32
    %c0_i32_1 = arith.constant 0 : i32
    return %c0_i32, %c0_i32_0 : i32, i32
  }
  func.func @transform_5(%arg0: i32) -> (i32, i32) {
    %c0_i32 = arith.constant 0 : i32
    %c0_i32_0 = arith.constant 0 : i32
    %c0_i32_1 = arith.constant 0 : i32
    return %c0_i32, %c0_i32_0 : i32, i32
  }
  func.func @transform_6(%arg0: i32) -> (i32, i32) {
    %c0_i32 = arith.constant 0 : i32
    %c0_i32_0 = arith.constant 0 : i32
    %c0_i32_1 = arith.constant 0 : i32
    return %c0_i32, %c0_i32_0 : i32, i32
  }
  func.func @transform_7(%arg0: i32) -> (i32, i32) {
    %c0_i32 = arith.constant 0 : i32
    %c0_i32_0 = arith.constant 0 : i32
    return %arg0, %c0_i32 : i32, i32
  }
}

module attributes {stable_mosaic.version = 11 : i64} {
  func.func @_kernel_single_k(%arg0: i32, %arg1: memref<8x1024xbf16, #tpu.memory_space<vmem>>, %arg2: memref<1024x128xbf16, #tpu.memory_space<vmem>>, %arg3: memref<1x128xf32, #tpu.memory_space<vmem>>, %arg4: memref<8x128xf32, #tpu.memory_space<vmem>>, %arg5: memref<8x128xf32, #tpu.memory_space<vmem>>, %arg6: memref<128x128xf32, #tpu.memory_space<vmem>>, %arg7: memref<1x128xf32, #tpu.memory_space<vmem>>, %arg8: memref<8x128xf32, #tpu.memory_space<vmem>>) attributes {dimension_semantics = [#tpu.dimension_semantics<parallel>], iteration_bounds = array<i64: 1>, scalar_prefetch = 0 : i64, scratch_operands = 0 : i64, tpu.core_type = #tpu.core_type<tc>, window_params = [{transform_indices = @transform_0, window_bounds = array<i64: 8, 1024>}, {pipeline_mode = #tpu.pipeline_mode<synchronous>, transform_indices = @transform_1, window_bounds = array<i64: 1024, 128>}, {pipeline_mode = #tpu.pipeline_mode<synchronous>, transform_indices = @transform_2, window_bounds = array<i64: 1, 128>}, {pipeline_mode = #tpu.pipeline_mode<synchronous>, transform_indices = @transform_3, window_bounds = array<i64: 8, 128>}, {pipeline_mode = #tpu.pipeline_mode<synchronous>, transform_indices = @transform_4, window_bounds = array<i64: 8, 128>}, {pipeline_mode = #tpu.pipeline_mode<synchronous>, transform_indices = @transform_5, window_bounds = array<i64: 128, 128>}, {pipeline_mode = #tpu.pipeline_mode<synchronous>, transform_indices = @transform_6, window_bounds = array<i64: 1, 128>}, {transform_indices = @transform_7, window_bounds = array<i64: 8, 128>}]} {
    %c0 = arith.constant 0 : index
    %c0_0 = arith.constant 0 : index
    %0 = vector.load %arg1[%c0, %c0_0] : memref<8x1024xbf16, #tpu.memory_space<vmem>>, vector<8x1024xbf16>
    %c0_1 = arith.constant 0 : index
    %c0_2 = arith.constant 0 : index
    %1 = vector.load %arg2[%c0_1, %c0_2] : memref<1024x128xbf16, #tpu.memory_space<vmem>>, vector<1024x128xbf16>
    %cst = arith.constant dense<0.000000e+00> : vector<8x128xf32>
    %2 = tpu.matmul %0, %1, %cst {dimension_numbers = #tpu.dot_dimension_numbers<[1], [0], [0], [1], [0, 0, 1, 1], [], []>} : vector<8x1024xbf16>, vector<1024x128xbf16>, vector<8x128xf32> -> vector<8x128xf32>
    %c0_3 = arith.constant 0 : index
    %c0_4 = arith.constant 0 : index
    %3 = vector.load %arg3[%c0_3, %c0_4] : memref<1x128xf32, #tpu.memory_space<vmem>>, vector<1x128xf32>
    %4 = vector.broadcast %3 : vector<1x128xf32> to vector<8x128xf32>
    %5 = arith.addf %2, %4 : vector<8x128xf32>
    %c0_5 = arith.constant 0 : index
    %c0_6 = arith.constant 0 : index
    %6 = vector.load %arg4[%c0_5, %c0_6] : memref<8x128xf32, #tpu.memory_space<vmem>>, vector<1x128xf32>
    %c0_7 = arith.constant 0 : index
    %c0_8 = arith.constant 0 : index
    %7 = vector.load %arg5[%c0_7, %c0_8] : memref<8x128xf32, #tpu.memory_space<vmem>>, vector<1x128xf32>
    %8 = vector.broadcast %6 : vector<1x128xf32> to vector<8x128xf32>
    %9 = arith.mulf %5, %8 : vector<8x128xf32>
    %c1_i32 = arith.constant 1 : i32
    %10 = tpu.dynamic_rotate %9 by %c1_i32 dim 1 : vector<8x128xf32>, i32 -> vector<8x128xf32>
    %c127_i32 = arith.constant 127 : i32
    %11 = tpu.dynamic_rotate %9 by %c127_i32 dim 1 : vector<8x128xf32>, i32 -> vector<8x128xf32>
    %12 = arith.addf %10, %9 : vector<8x128xf32>
    %13 = arith.addf %12, %11 : vector<8x128xf32>
    %14 = vector.broadcast %7 : vector<1x128xf32> to vector<8x128xf32>
    %15 = arith.addf %13, %14 : vector<8x128xf32>
    %16 = math.sin %15 : vector<8x128xf32>
    %c1 = arith.constant 1 : index
    %c0_9 = arith.constant 0 : index
    %17 = vector.load %arg4[%c1, %c0_9] : memref<8x128xf32, #tpu.memory_space<vmem>>, vector<1x128xf32>
    %c1_10 = arith.constant 1 : index
    %c0_11 = arith.constant 0 : index
    %18 = vector.load %arg5[%c1_10, %c0_11] : memref<8x128xf32, #tpu.memory_space<vmem>>, vector<1x128xf32>
    %19 = vector.broadcast %17 : vector<1x128xf32> to vector<8x128xf32>
    %20 = arith.mulf %16, %19 : vector<8x128xf32>
    %c1_i32_12 = arith.constant 1 : i32
    %21 = tpu.dynamic_rotate %20 by %c1_i32_12 dim 1 : vector<8x128xf32>, i32 -> vector<8x128xf32>
    %c127_i32_13 = arith.constant 127 : i32
    %22 = tpu.dynamic_rotate %20 by %c127_i32_13 dim 1 : vector<8x128xf32>, i32 -> vector<8x128xf32>
    %23 = arith.addf %21, %20 : vector<8x128xf32>
    %24 = arith.addf %23, %22 : vector<8x128xf32>
    %25 = vector.broadcast %18 : vector<1x128xf32> to vector<8x128xf32>
    %26 = arith.addf %24, %25 : vector<8x128xf32>
    %27 = math.sin %26 : vector<8x128xf32>
    %c2 = arith.constant 2 : index
    %c0_14 = arith.constant 0 : index
    %28 = vector.load %arg4[%c2, %c0_14] : memref<8x128xf32, #tpu.memory_space<vmem>>, vector<1x128xf32>
    %c2_15 = arith.constant 2 : index
    %c0_16 = arith.constant 0 : index
    %29 = vector.load %arg5[%c2_15, %c0_16] : memref<8x128xf32, #tpu.memory_space<vmem>>, vector<1x128xf32>
    %30 = vector.broadcast %28 : vector<1x128xf32> to vector<8x128xf32>
    %31 = arith.mulf %27, %30 : vector<8x128xf32>
    %c1_i32_17 = arith.constant 1 : i32
    %32 = tpu.dynamic_rotate %31 by %c1_i32_17 dim 1 : vector<8x128xf32>, i32 -> vector<8x128xf32>
    %c127_i32_18 = arith.constant 127 : i32
    %33 = tpu.dynamic_rotate %31 by %c127_i32_18 dim 1 : vector<8x128xf32>, i32 -> vector<8x128xf32>
    %34 = arith.addf %32, %31 : vector<8x128xf32>
    %35 = arith.addf %34, %33 : vector<8x128xf32>
    %36 = vector.broadcast %29 : vector<1x128xf32> to vector<8x128xf32>
    %37 = arith.addf %35, %36 : vector<8x128xf32>
    %38 = math.sin %37 : vector<8x128xf32>
    %c3 = arith.constant 3 : index
    %c0_19 = arith.constant 0 : index
    %39 = vector.load %arg4[%c3, %c0_19] : memref<8x128xf32, #tpu.memory_space<vmem>>, vector<1x128xf32>
    %c3_20 = arith.constant 3 : index
    %c0_21 = arith.constant 0 : index
    %40 = vector.load %arg5[%c3_20, %c0_21] : memref<8x128xf32, #tpu.memory_space<vmem>>, vector<1x128xf32>
    %41 = vector.broadcast %39 : vector<1x128xf32> to vector<8x128xf32>
    %42 = arith.mulf %38, %41 : vector<8x128xf32>
    %c1_i32_22 = arith.constant 1 : i32
    %43 = tpu.dynamic_rotate %42 by %c1_i32_22 dim 1 : vector<8x128xf32>, i32 -> vector<8x128xf32>
    %c127_i32_23 = arith.constant 127 : i32
    %44 = tpu.dynamic_rotate %42 by %c127_i32_23 dim 1 : vector<8x128xf32>, i32 -> vector<8x128xf32>
    %45 = arith.addf %43, %42 : vector<8x128xf32>
    %46 = arith.addf %45, %44 : vector<8x128xf32>
    %47 = vector.broadcast %40 : vector<1x128xf32> to vector<8x128xf32>
    %48 = arith.addf %46, %47 : vector<8x128xf32>
    %49 = math.sin %48 : vector<8x128xf32>
    %c4 = arith.constant 4 : index
    %c0_24 = arith.constant 0 : index
    %50 = vector.load %arg4[%c4, %c0_24] : memref<8x128xf32, #tpu.memory_space<vmem>>, vector<1x128xf32>
    %c4_25 = arith.constant 4 : index
    %c0_26 = arith.constant 0 : index
    %51 = vector.load %arg5[%c4_25, %c0_26] : memref<8x128xf32, #tpu.memory_space<vmem>>, vector<1x128xf32>
    %52 = vector.broadcast %50 : vector<1x128xf32> to vector<8x128xf32>
    %53 = arith.mulf %49, %52 : vector<8x128xf32>
    %c1_i32_27 = arith.constant 1 : i32
    %54 = tpu.dynamic_rotate %53 by %c1_i32_27 dim 1 : vector<8x128xf32>, i32 -> vector<8x128xf32>
    %c127_i32_28 = arith.constant 127 : i32
    %55 = tpu.dynamic_rotate %53 by %c127_i32_28 dim 1 : vector<8x128xf32>, i32 -> vector<8x128xf32>
    %56 = arith.addf %54, %53 : vector<8x128xf32>
    %57 = arith.addf %56, %55 : vector<8x128xf32>
    %58 = vector.broadcast %51 : vector<1x128xf32> to vector<8x128xf32>
    %59 = arith.addf %57, %58 : vector<8x128xf32>
    %60 = math.sin %59 : vector<8x128xf32>
    %c5 = arith.constant 5 : index
    %c0_29 = arith.constant 0 : index
    %61 = vector.load %arg4[%c5, %c0_29] : memref<8x128xf32, #tpu.memory_space<vmem>>, vector<1x128xf32>
    %c5_30 = arith.constant 5 : index
    %c0_31 = arith.constant 0 : index
    %62 = vector.load %arg5[%c5_30, %c0_31] : memref<8x128xf32, #tpu.memory_space<vmem>>, vector<1x128xf32>
    %63 = vector.broadcast %61 : vector<1x128xf32> to vector<8x128xf32>
    %64 = arith.mulf %60, %63 : vector<8x128xf32>
    %c1_i32_32 = arith.constant 1 : i32
    %65 = tpu.dynamic_rotate %64 by %c1_i32_32 dim 1 : vector<8x128xf32>, i32 -> vector<8x128xf32>
    %c127_i32_33 = arith.constant 127 : i32
    %66 = tpu.dynamic_rotate %64 by %c127_i32_33 dim 1 : vector<8x128xf32>, i32 -> vector<8x128xf32>
    %67 = arith.addf %65, %64 : vector<8x128xf32>
    %68 = arith.addf %67, %66 : vector<8x128xf32>
    %69 = vector.broadcast %62 : vector<1x128xf32> to vector<8x128xf32>
    %70 = arith.addf %68, %69 : vector<8x128xf32>
    %71 = math.sin %70 : vector<8x128xf32>
    %c6 = arith.constant 6 : index
    %c0_34 = arith.constant 0 : index
    %72 = vector.load %arg4[%c6, %c0_34] : memref<8x128xf32, #tpu.memory_space<vmem>>, vector<1x128xf32>
    %c6_35 = arith.constant 6 : index
    %c0_36 = arith.constant 0 : index
    %73 = vector.load %arg5[%c6_35, %c0_36] : memref<8x128xf32, #tpu.memory_space<vmem>>, vector<1x128xf32>
    %74 = vector.broadcast %72 : vector<1x128xf32> to vector<8x128xf32>
    %75 = arith.mulf %71, %74 : vector<8x128xf32>
    %c1_i32_37 = arith.constant 1 : i32
    %76 = tpu.dynamic_rotate %75 by %c1_i32_37 dim 1 : vector<8x128xf32>, i32 -> vector<8x128xf32>
    %c127_i32_38 = arith.constant 127 : i32
    %77 = tpu.dynamic_rotate %75 by %c127_i32_38 dim 1 : vector<8x128xf32>, i32 -> vector<8x128xf32>
    %78 = arith.addf %76, %75 : vector<8x128xf32>
    %79 = arith.addf %78, %77 : vector<8x128xf32>
    %80 = vector.broadcast %73 : vector<1x128xf32> to vector<8x128xf32>
    %81 = arith.addf %79, %80 : vector<8x128xf32>
    %82 = math.sin %81 : vector<8x128xf32>
    %c7 = arith.constant 7 : index
    %c0_39 = arith.constant 0 : index
    %83 = vector.load %arg4[%c7, %c0_39] : memref<8x128xf32, #tpu.memory_space<vmem>>, vector<1x128xf32>
    %c7_40 = arith.constant 7 : index
    %c0_41 = arith.constant 0 : index
    %84 = vector.load %arg5[%c7_40, %c0_41] : memref<8x128xf32, #tpu.memory_space<vmem>>, vector<1x128xf32>
    %85 = vector.broadcast %83 : vector<1x128xf32> to vector<8x128xf32>
    %86 = arith.mulf %82, %85 : vector<8x128xf32>
    %c1_i32_42 = arith.constant 1 : i32
    %87 = tpu.dynamic_rotate %86 by %c1_i32_42 dim 1 : vector<8x128xf32>, i32 -> vector<8x128xf32>
    %c127_i32_43 = arith.constant 127 : i32
    %88 = tpu.dynamic_rotate %86 by %c127_i32_43 dim 1 : vector<8x128xf32>, i32 -> vector<8x128xf32>
    %89 = arith.addf %87, %86 : vector<8x128xf32>
    %90 = arith.addf %89, %88 : vector<8x128xf32>
    %91 = vector.broadcast %84 : vector<1x128xf32> to vector<8x128xf32>
    %92 = arith.addf %90, %91 : vector<8x128xf32>
    %93 = math.sin %92 : vector<8x128xf32>
    %c0_44 = arith.constant 0 : index
    %c0_45 = arith.constant 0 : index
    %94 = vector.load %arg6[%c0_44, %c0_45] : memref<128x128xf32, #tpu.memory_space<vmem>>, vector<128x128xf32>
    %cst_46 = arith.constant dense<0.000000e+00> : vector<8x128xf32>
    %95 = tpu.matmul %93, %94, %cst_46 {dimension_numbers = #tpu.dot_dimension_numbers<[1], [0], [0], [1], [0, 0, 1, 1], [], []>} : vector<8x128xf32>, vector<128x128xf32>, vector<8x128xf32> -> vector<8x128xf32>
    %c0_47 = arith.constant 0 : index
    %c0_48 = arith.constant 0 : index
    %96 = vector.load %arg7[%c0_47, %c0_48] : memref<1x128xf32, #tpu.memory_space<vmem>>, vector<1x128xf32>
    %97 = vector.broadcast %96 : vector<1x128xf32> to vector<8x128xf32>
    %98 = arith.addf %95, %97 : vector<8x128xf32>
    %c0_49 = arith.constant 0 : index
    %c0_50 = arith.constant 0 : index
    %99 = vector.load %arg8[%c0_49, %c0_50] : memref<8x128xf32, #tpu.memory_space<vmem>>, vector<8x128xf32>
    tpu.vector_store %arg8[%c0_49, %c0_50], %98 {strides = array<i32>} : memref<8x128xf32, #tpu.memory_space<vmem>>, vector<8x128xf32>,
    return
  }
  func.func @transform_0(%arg0: i32) -> (i32, i32) {
    %c0_i32 = arith.constant 0 : i32
    %c0_i32_0 = arith.constant 0 : i32
    return %arg0, %c0_i32 : i32, i32
  }
  func.func @transform_1(%arg0: i32) -> (i32, i32) {
    %c0_i32 = arith.constant 0 : i32
    %c0_i32_0 = arith.constant 0 : i32
    %c0_i32_1 = arith.constant 0 : i32
    return %c0_i32, %c0_i32_0 : i32, i32
  }
  func.func @transform_2(%arg0: i32) -> (i32, i32) {
    %c0_i32 = arith.constant 0 : i32
    %c0_i32_0 = arith.constant 0 : i32
    %c0_i32_1 = arith.constant 0 : i32
    return %c0_i32, %c0_i32_0 : i32, i32
  }
  func.func @transform_3(%arg0: i32) -> (i32, i32) {
    %c0_i32 = arith.constant 0 : i32
    %c0_i32_0 = arith.constant 0 : i32
    %c0_i32_1 = arith.constant 0 : i32
    return %c0_i32, %c0_i32_0 : i32, i32
  }
  func.func @transform_4(%arg0: i32) -> (i32, i32) {
    %c0_i32 = arith.constant 0 : i32
    %c0_i32_0 = arith.constant 0 : i32
    %c0_i32_1 = arith.constant 0 : i32
    return %c0_i32, %c0_i32_0 : i32, i32
  }
  func.func @transform_5(%arg0: i32) -> (i32, i32) {
    %c0_i32 = arith.constant 0 : i32
    %c0_i32_0 = arith.constant 0 : i32
    %c0_i32_1 = arith.constant 0 : i32
    return %c0_i32, %c0_i32_0 : i32, i32
  }
  func.func @transform_6(%arg0: i32) -> (i32, i32) {
    %c0_i32 = arith.constant 0 : i32
    %c0_i32_0 = arith.constant 0 : i32
    %c0_i32_1 = arith.constant 0 : i32
    return %c0_i32, %c0_i32_0 : i32, i32
  }
  func.func @transform_7(%arg0: i32) -> (i32, i32) {
    %c0_i32 = arith.constant 0 : i32
    %c0_i32_0 = arith.constant 0 : i32
    return %arg0, %c0_i32 : i32, i32
  }
}

</mosaic_0001>

<bundles_post_ra>
// kernel: tpu_custom_call.1
= control target key start
LH: loop header
LB: loop body
LE: loop exit
PB: predicated region body
PF: predicated region fallthrough
CT: control target
= control target key end

     0   :  { %12 = vsyncpa [#allocation3], 0  ;;  %s3283_s0 = inlined_call_operand.hbm [shape: bf16[8,1024], index: 0, kind: input, shape index: {}]   ;;  %s3284_s1 = inlined_call_operand.hbm [shape: bf16[1024,128], index: 1, kind: input, shape index: {}]   ;;  %s3285_s2 = inlined_call_operand.vmem [shape: f32[1,128], index: 2, kind: input, shape index: {}]   ;;  %s3286_s3 = inlined_call_operand.hbm [shape: f32[8,128], index: 3, kind: input, shape index: {}]   ;;  %s3287_s4 = inlined_call_operand.hbm [shape: f32[8,128], index: 4, kind: input, shape index: {}]   ;;  %s3288_s5 = inlined_call_operand.hbm [shape: f32[128,128], index: 5, kind: input, shape index: {}]   ;;  %s3289_s6 = inlined_call_operand.vmem [shape: f32[1,128], index: 6, kind: input, shape index: {}]   ;;  %s3290_s7 = inlined_call_operand.hbm [shape: f32[8,128], index: 7, kind: output, shape index: {}]  }
   0x1   :  { %13 = vsyncpa [#allocation6], 0 }
   0x2   :  { %14 = vsyncpa [#allocation9], 0  ;;  %s31_s26 = sshll.u32 %s3284_s1, 4  ;;  %s32_s26 = int_to_ptr.hbm [resolvable:$true] %s31_s26 }
   0x3   :  { %15 = vsyncpa [#allocation4], 0  ;;  %s2680_s27 = smov [#allocation5]   ;;  %s58_s8 = sshll.u32 %s3287_s4, 4  ;;  %s59_s8 = int_to_ptr.hbm [resolvable:$true] %s58_s8 }
   0x4   :  { %s33_s28 = sshll.u32 %s2680_s27, 4  ;;  %s2681_s9 = smov 64   ;;  %s34_s28 = int_to_ptr.vmem [resolvable:$true] %s33_s28 }
   0x5   :  { %s2682_s10 = smov 4   ;;  %s2683_s11 = smov [#allocation8]  }
   0x6   :  { %39 = dma.hbm_to_vmem [thread:$0]  %s32_s26, 8192, %s34_s28, [#allocation6], %s2681_s9, %s2681_s9, %s2682_s10  }
   0x7   :  { %s60_s12 = sshll.u32 %s2683_s11, 4  ;;  %s21_s15 = sshll.u32 %s3283_s0, 4  ;;  %s61_s12 = int_to_ptr.vmem [resolvable:$true] %s60_s12  ;;  %s22_s15 = int_to_ptr.hbm [resolvable:$true] %s21_s15 }
   0x8   :  { %63 = dma.hbm_to_vmem [thread:$0]  %s59_s8, 128, %s61_s12, [#allocation9]  }
   0x9   :  { %s47_s17 = sshll.u32 %s3286_s3, 4  ;;  %s2684_s18 = smov [#allocation2]   ;;  %s48_s17 = int_to_ptr.hbm [resolvable:$true] %s47_s17 }
   0xa   :  { %s23_s19 = sshll.u32 %s2684_s18, 4  ;;  %s2685_s4 = smov [#allocation7]   ;;  %s24_s19 = int_to_ptr.vmem [resolvable:$true] %s23_s19 }
   0xb   :  { %26 = dma.hbm_to_vmem [thread:$0]  %s22_s15, 512, %s24_s19, [#allocation3]  }
   0xc   :  { %s49_s20 = sshll.u32 %s2685_s4, 4  ;;  %s68_s23 = sshll.u32 %s3288_s5, 4  ;;  %s50_s20 = int_to_ptr.vmem [resolvable:$true] %s49_s20  ;;  %s69_s23 = int_to_ptr.hbm [resolvable:$true] %s68_s23 }
   0xd   :  { %52 = dma.hbm_to_vmem [thread:$0]  %s48_s17, 128, %s50_s20, [#allocation6]  }
   0xe   :  { %s2686_s0 = smov [#allocation10]   ;;  %s2687_s25 = smov 128  }
   0xf   :  { %s70_s24 = sshll.u32 %s2686_s0, 4  ;;  %s2688_s26 = smov 8   ;;  %s71_s24 = int_to_ptr.vmem [resolvable:$true] %s70_s24 }
  0x10   :  { %76 = dma.hbm_to_vmem [thread:$0]  %s69_s23, 2048, %s71_s24, [#allocation9], %s2687_s25, %s2687_s25, %s2688_s26  }
  0x11   :  { %2672 = dma.done.wait [#allocation3], 512  }
  0x12   :  { %2673 = vsyncadd [#allocation3], 4294966784 }
  0x13   :  { %2674 = dma.done.wait [#allocation6], 8320  }
  0x14   :  { %2675 = vsyncadd [#allocation6], 4294958976 }
  0x15   :  { %2676 = dma.done.wait [#allocation9], 2176  }
  0x16   :  { %2677 = vsyncadd [#allocation9], 4294965120  ;;  %v2434_v0 = vld [vmem:[#allocation5 + $0x38] sm:$0xff]  ;;  %v2433_v4 = vld [vmem:[#allocation5 + $0x30] sm:$0xff]  ;;  %s2689_s27 = smov 1   ;;  %s2698_s30 = smov [#allocation11]  }
  0x17   :  { %v2442_v1 = vld [vmem:[#allocation5 + $0x78] sm:$0xff]  ;;  %647 = vmatpush.bf16.msra.mxu0 %v2434_v0  ;;  %v2441_v5 = vld [vmem:[#allocation5 + $0x70] sm:$0xff]  ;;  %v2432_v8 = vld [vmem:[#allocation5 + $0x28] sm:$0xff]  ;;  %s2133_s8 = sshll.u32 %s2698_s30, 4  ;;  %s2135_s11 = sshll.u32 %s3290_s7, 4  ;;  %s2134_s8 = int_to_ptr.vmem [resolvable:$true] %s2133_s8  ;;  %s2136_s11 = int_to_ptr.hbm [resolvable:$true] %s2135_s11 }
  0x18   :  { %v2450_v2 = vld [vmem:[#allocation5 + $0xb8] sm:$0xff]  ;;  %660 = vmatpush.bf16.msra.mxu1 %v2442_v1  ;;  %v2449_v6 = vld [vmem:[#allocation5 + $0xb0] sm:$0xff]  ;;  %v2440_v9 = vld [vmem:[#allocation5 + $0x68] sm:$0xff] }
  0x19   :  { %v2458_v3 = vld [vmem:[#allocation5 + $0xf8] sm:$0xff]  ;;  %673 = vmatpush.bf16.msra.mxu2 %v2450_v2  ;;  %v2457_v7 = vld [vmem:[#allocation5 + $0xf0] sm:$0xff]  ;;  %v2448_v10 = vld [vmem:[#allocation5 + $0xa8] sm:$0xff] }
  0x1a   :  { %686 = vmatpush.bf16.msra.mxu3 %v2458_v3  ;;  %v2456_v11 = vld [vmem:[#allocation5 + $0xe8] sm:$0xff]  ;;  %v2431_v12 = vld [vmem:[#allocation5 + $0x20] sm:$0xff]  ;;  %v2430_v16 = vld [vmem:[#allocation5 + $0x18] sm:$0xff] }
  0x1b   :  { %648 = vmatpush.bf16.msra.mxu0 %v2433_v4  ;;  %v2439_v13 = vld [vmem:[#allocation5 + $0x60] sm:$0xff]  ;;  %v2438_v17 = vld [vmem:[#allocation5 + $0x58] sm:$0xff]  ;;  %v2429_v20 = vld [vmem:[#allocation5 + $0x10] sm:$0xff] }
  0x1c   :  { %661 = vmatpush.bf16.msra.mxu1 %v2441_v5  ;;  %v2447_v14 = vld [vmem:[#allocation5 + $0xa0] sm:$0xff]  ;;  %v2446_v18 = vld [vmem:[#allocation5 + $0x98] sm:$0xff]  ;;  %v2437_v21 = vld [vmem:[#allocation5 + $0x50] sm:$0xff] }
  0x1d   :  { %674 = vmatpush.bf16.msra.mxu2 %v2449_v6  ;;  %v2455_v15 = vld [vmem:[#allocation5 + $0xe0] sm:$0xff]  ;;  %v2454_v19 = vld [vmem:[#allocation5 + $0xd8] sm:$0xff]  ;;  %v2445_v22 = vld [vmem:[#allocation5 + $0x90] sm:$0xff] }
  0x1e   :  { %687 = vmatpush.bf16.msra.mxu3 %v2457_v7  ;;  %v2453_v23 = vld [vmem:[#allocation5 + $0xd0] sm:$0xff]  ;;  %v2428_v24 = vld [vmem:[#allocation5 + $0x8] sm:$0xff]  ;;  %v99_v29 = vld [vmem:[#allocation2] sm:$0xff] }
  0x1f   :  { %649 = vmatpush.bf16.msra.mxu0 %v2432_v8  ;;  %v2436_v25 = vld [vmem:[#allocation5 + $0x48] sm:$0xff]  ;;  %v2427_v30 = vld [vmem:[#allocation5] sm:$0xff]  ;;  %v239_v33 = vunpack.c.l.b16 %v99_v29  ;;  %v240_v37 = vunpack.c.h.b16 %v99_v29  ;;  %v2466_v38 = vld [vmem:[#allocation5 + $0x138] sm:$0xff] }
  0x20   :  { %662 = vmatpush.bf16.msra.mxu1 %v2440_v9  ;;  %v2444_v26 = vld [vmem:[#allocation5 + $0x88] sm:$0xff]  ;;  %v2435_v31 = vld [vmem:[#allocation5 + $0x40] sm:$0xff]  ;;  %v2474_v39 = vld [vmem:[#allocation5 + $0x178] sm:$0xff] }
  0x21   :  { %675 = vmatpush.bf16.msra.mxu2 %v2448_v10  ;;  %v2452_v27 = vld [vmem:[#allocation5 + $0xc8] sm:$0xff]  ;;  %v2443_v34 = vld [vmem:[#allocation5 + $0x80] sm:$0xff]  ;;  %v2482_v40 = vld [vmem:[#allocation5 + $0x1b8] sm:$0xff]  ;;  %v247_v43 = vpack.c.b16 %v239_v33, %v239_v33  ;;  %v248_v45 = vpack.c.b16 %v240_v37, %v240_v37 }
  0x22   :  { %688 = vmatpush.bf16.msra.mxu3 %v2456_v11  ;;  %v100_v28 = vld [vmem:[#allocation2 + $0x8] sm:$0xff]  ;;  %v2451_v35 = vld [vmem:[#allocation5 + $0xc0] sm:$0xff]  ;;  %v2490_v41 = vld [vmem:[#allocation5 + $0x1f8] sm:$0xff] }
  0x23   :  { %650 = vmatpush.bf16.msra.mxu0 %v2431_v12  ;;  %v241_v32 = vunpack.c.l.b16 %v100_v28  ;;  %v242_v36 = vunpack.c.h.b16 %v100_v28  ;;  %v2465_v46 = vld [vmem:[#allocation5 + $0x130] sm:$0xff]  ;;  %v2464_v50 = vld [vmem:[#allocation5 + $0x128] sm:$0xff]  ;;  %v2463_v54 = vld [vmem:[#allocation5 + $0x120] sm:$0xff] }
  0x24   :  { %663 = vmatpush.bf16.msra.mxu1 %v2439_v13  ;;  %v2473_v47 = vld [vmem:[#allocation5 + $0x170] sm:$0xff]  ;;  %v2472_v51 = vld [vmem:[#allocation5 + $0x168] sm:$0xff]  ;;  %v2471_v55 = vld [vmem:[#allocation5 + $0x160] sm:$0xff] }
  0x25   :  { %676 = vmatpush.bf16.msra.mxu2 %v2447_v14  ;;  %v249_v42 = vpack.c.b16 %v241_v32, %v241_v32  ;;  %v250_v44 = vpack.c.b16 %v242_v36, %v242_v36  ;;  %v2481_v48 = vld [vmem:[#allocation5 + $0x1b0] sm:$0xff]  ;;  %v2480_v52 = vld [vmem:[#allocation5 + $0x1a8] sm:$0xff]  ;;  %v2479_v56 = vld [vmem:[#allocation5 + $0x1a0] sm:$0xff] }
  0x26   :  { %689 = vmatpush.bf16.msra.mxu3 %v2455_v15  ;;  %v2489_v49 = vld [vmem:[#allocation5 + $0x1f0] sm:$0xff]  ;;  %v2488_v53 = vld [vmem:[#allocation5 + $0x1e8] sm:$0xff]  ;;  %v2487_v57 = vld [vmem:[#allocation5 + $0x1e0] sm:$0xff] }
  0x27   :  { %651 = vmatpush.bf16.msra.mxu0 %v2430_v16  ;;  %v2462_v58 = vld [vmem:[#allocation5 + $0x118] sm:$0xff]  ;;  %v2461_v62 = vld [vmem:[#allocation5 + $0x110] sm:$0xff]  ;;  %v2460_v2 = vld [vmem:[#allocation5 + $0x108] sm:$0xff] }
  0x28   :  { %664 = vmatpush.bf16.msra.mxu1 %v2438_v17  ;;  %v2470_v59 = vld [vmem:[#allocation5 + $0x158] sm:$0xff]  ;;  %v2469_v63 = vld [vmem:[#allocation5 + $0x150] sm:$0xff]  ;;  %v2468_v3 = vld [vmem:[#allocation5 + $0x148] sm:$0xff] }
  0x29   :  { %677 = vmatpush.bf16.msra.mxu2 %v2446_v18  ;;  %v2478_v60 = vld [vmem:[#allocation5 + $0x198] sm:$0xff]  ;;  %v2477_v0 = vld [vmem:[#allocation5 + $0x190] sm:$0xff]  ;;  %v2476_v5 = vld [vmem:[#allocation5 + $0x188] sm:$0xff] }
  0x2a   :  { %690 = vmatpush.bf16.msra.mxu3 %v2454_v19  ;;  %v2486_v61 = vld [vmem:[#allocation5 + $0x1d8] sm:$0xff]  ;;  %v2485_v1 = vld [vmem:[#allocation5 + $0x1d0] sm:$0xff]  ;;  %v2484_v6 = vld [vmem:[#allocation5 + $0x1c8] sm:$0xff] }
  0x2b   :  { %652 = vmatpush.bf16.msra.mxu0 %v2429_v20  ;;  %v101_v4 = vld [vmem:[#allocation2 + $0x10] sm:$0xff]  ;;  %v102_v7 = vld [vmem:[#allocation2 + $0x18] sm:$0xff]  ;;  %v2459_v10 = vld [vmem:[#allocation5 + $0x100] sm:$0xff] }
  0x2c   :  { %665 = vmatpush.bf16.msra.mxu1 %v2437_v21  ;;  %v243_v8 = vunpack.c.l.b16 %v101_v4  ;;  %v244_v9 = vunpack.c.h.b16 %v101_v4  ;;  %v2467_v11 = vld [vmem:[#allocation5 + $0x140] sm:$0xff]  ;;  %v245_v12 = vunpack.c.l.b16 %v102_v7  ;;  %v246_v13 = vunpack.c.h.b16 %v102_v7 }
  0x2d   :  { %678 = vmatpush.bf16.msra.mxu2 %v2445_v22  ;;  %v2475_v14 = vld [vmem:[#allocation5 + $0x180] sm:$0xff] }
  0x2e   :  { %691 = vmatpush.bf16.msra.mxu3 %v2453_v23  ;;  %v2483_v15 = vld [vmem:[#allocation5 + $0x1c0] sm:$0xff]  ;;  %v251_v16 = vpack.c.b16 %v243_v8, %v243_v8  ;;  %v252_v17 = vpack.c.b16 %v244_v9, %v244_v9  ;;  %v253_v18 = vpack.c.b16 %v245_v12, %v245_v12  ;;  %v254_v19 = vpack.c.b16 %v246_v13, %v246_v13 }
  0x2f   :  { %653 = vmatpush.bf16.msra.mxu0 %v2428_v24  ;;  %v2694_v8 = vmov 2102212464  }
  0x30   :  { %666 = vmatpush.bf16.msra.mxu1 %v2436_v25 }
  0x31   :  { %679 = vmatpush.bf16.msra.mxu2 %v2444_v26  ;;  %v2510_v26 = vld [vmem:[%s3285_s2] ss:$0 sm:$0xff]  ;;  %s2690_s2 = smov 127  }
  0x32   :  { %692 = vmatpush.bf16.msra.mxu3 %v2452_v27 }
  0x33   :  { %654 = vmatpush.bf16.msra.mxu0 %v2427_v30 }
  0x34   :  { %667 = vmatpush.bf16.msra.mxu1 %v2435_v31 }
  0x35   :  { %680 = vmatpush.bf16.msra.mxu2 %v2443_v34 }
  0x36   :  { %693 = vmatpush.bf16.msra.mxu3 %v2451_v35  ;;  %655 = vmatmul.bf16.vlgmr.msra.gmra.mxu0 %v247_v43 }
  0x37   :  { %699 = vmatpush.bf16.msrb.mxu0 %v2466_v38  ;;  %668 = vmatmul.bf16.vlgmr.msra.gmra.mxu1 %v248_v45 }
  0x38   :  { %712 = vmatpush.bf16.msrb.mxu1 %v2474_v39  ;;  %681 = vmatmul.bf16.vlgmr.msra.gmra.mxu2 %v249_v42 }
  0x39   :  { %725 = vmatpush.bf16.msrb.mxu2 %v2482_v40  ;;  %694 = vmatmul.bf16.vlgmr.msra.gmra.mxu3 %v250_v44  ;;  %v2511_v40 = vld [vmem:[#allocation7] ss:$0 sm:$0xff] }
  0x3a   :  { %738 = vmatpush.bf16.msrb.mxu3 %v2490_v41 }
  0x3b   :  { %700 = vmatpush.bf16.msrb.mxu0 %v2465_v46 }
  0x3c   :  { %713 = vmatpush.bf16.msrb.mxu1 %v2473_v47 }
  0x3d   :  { %726 = vmatpush.bf16.msrb.mxu2 %v2481_v48 }
  0x3e   :  { %739 = vmatpush.bf16.msrb.mxu3 %v2489_v49  ;;  %v2512_v49 = vld [vmem:[#allocation8] ss:$0 sm:$0xff] }
  0x3f   :  { %701 = vmatpush.bf16.msrb.mxu0 %v2464_v50 }
  0x40   :  { %714 = vmatpush.bf16.msrb.mxu1 %v2472_v51 }
  0x41   :  { %727 = vmatpush.bf16.msrb.mxu2 %v2480_v52 }
  0x42   :  { %740 = vmatpush.bf16.msrb.mxu3 %v2488_v53 }
  0x43   :  { %702 = vmatpush.bf16.msrb.mxu0 %v2463_v54 }
  0x44   :  { %715 = vmatpush.bf16.msrb.mxu1 %v2471_v55 }
  0x45   :  { %728 = vmatpush.bf16.msrb.mxu2 %v2479_v56 }
  0x46   :  { %741 = vmatpush.bf16.msrb.mxu3 %v2487_v57 }
  0x47   :  { %703 = vmatpush.bf16.msrb.mxu0 %v2462_v58 }
  0x48   :  { %716 = vmatpush.bf16.msrb.mxu1 %v2470_v59 }
  0x49   :  { %729 = vmatpush.bf16.msrb.mxu2 %v2478_v60 }
  0x4a   :  { %742 = vmatpush.bf16.msrb.mxu3 %v2486_v61 }
  0x4b   :  { %704 = vmatpush.bf16.msrb.mxu0 %v2461_v62 }
  0x4c   :  { %717 = vmatpush.bf16.msrb.mxu1 %v2469_v63 }
  0x4d   :  { %730 = vmatpush.bf16.msrb.mxu2 %v2477_v0  ;;  %v2691_v0 = vmov 683565275  }
  0x4e   :  { %743 = vmatpush.bf16.msrb.mxu3 %v2485_v1 }
  0x4f   :  { %705 = vmatpush.bf16.msrb.mxu0 %v2460_v2  ;;  %v2692_v2 = vmov 2475754826  }
  0x50   :  { %718 = vmatpush.bf16.msrb.mxu1 %v2468_v3 }
  0x51   :  { %731 = vmatpush.bf16.msrb.mxu2 %v2476_v5  ;;  %v2693_v5 = vmov 2131351028  }
  0x52   :  { %744 = vmatpush.bf16.msrb.mxu3 %v2484_v6 }
  0x53   :  { %706 = vmatpush.bf16.msrb.mxu0 %v2459_v10 }
  0x54   :  { %719 = vmatpush.bf16.msrb.mxu1 %v2467_v11  ;;  %v2695_v11 = vmov 920167782  }
  0x55   :  { %732 = vmatpush.bf16.msrb.mxu2 %v2475_v14  ;;  %v2696_v14 = vmov 1326507024  }
  0x56   :  { %745 = vmatpush.bf16.msrb.mxu3 %v2483_v15  ;;  %707 = vmatmul.bf16.vlgmr.msrb.gmra.mxu0 %v251_v16 }
  0x57   :  { %720 = vmatmul.bf16.vlgmr.msrb.gmra.mxu1 %v252_v17 }
  0x58   :  { %733 = vmatmul.bf16.vlgmr.msrb.gmra.mxu2 %v253_v18 }
  0x59   :  { %746 = vmatmul.bf16.vlgmr.msrb.gmra.mxu3 %v254_v19 }
  0xb3   :  { %v656_v20 = vpop.f32.mrf.mxu0 }
  0xb4   :  { %v669_v21 = vpop.f32.mrf.mxu1  ;;  %v657_v29 = vadd.f32 %v2510_v26, %v656_v20 }
  0xb6   :  { %v670_v30 = vadd.f32 %v669_v21, %v657_v29 }
  0xbb   :  { %v682_v22 = vpop.f32.mrf.mxu2  ;;  %v658_v24 = vpop.f32.mrf.mxu0 }
  0xbc   :  { %v695_v23 = vpop.f32.mrf.mxu3  ;;  %v671_v25 = vpop.f32.mrf.mxu1  ;;  %v683_v31 = vadd.f32 %v682_v22, %v670_v30 }
  0xbe   :  { %v696_v32 = vadd.f32 %v695_v23, %v683_v31 }
  0xc3   :  { %v684_v27 = vpop.f32.mrf.mxu2 }
  0xc4   :  { %v697_v28 = vpop.f32.mrf.mxu3 }
  0xd3   :  { %v708_v33 = vpop.f32.mrf.mxu0 }
  0xd4   :  { %v721_v34 = vpop.f32.mrf.mxu1  ;;  %v709_v35 = vadd.f32 %v708_v33, %v696_v32 }
  0xd6   :  { %v722_v36 = vadd.f32 %v721_v34, %v709_v35 }
  0xdb   :  { %v734_v37 = vpop.f32.mrf.mxu2  ;;  %v710_v41 = vpop.f32.mrf.mxu0 }
  0xdc   :  { %v747_v38 = vpop.f32.mrf.mxu3  ;;  %v735_v39 = vadd.f32 %v734_v37, %v722_v36  ;;  %v723_v42 = vpop.f32.mrf.mxu1 }
  0xde   :  { %v748_v43 = vadd.f32 %v747_v38, %v735_v39 }
  0xe0   :  { %v754_v44 = vmul.f32 %v2511_v40, %v748_v43 }
  0xe2   :  { %755 = vrot.lane.b32.xlu0 %v754_v44, %s2689_s27 }
  0xe3   :  { %v736_v45 = vpop.f32.mrf.mxu2 }
  0xe4   :  { %v749_v46 = vpop.f32.mrf.mxu3 }
  0xea   :  { %757 = vrot.lane.b32.xlu0 %v754_v44, %s2690_s2 }
 0x154   :  { %v756_v47 = vpop.permute.xlu0 %755 }
 0x155   :  { %v759_v48 = vadd.f32 %v756_v47, %v754_v44 }
 0x15c   :  { %v758_v50 = vpop.permute.xlu0 %757 }
 0x15d   :  { %v760_v51 = vadd.f32 %v759_v48, %v758_v50  ;;  %v2697_v48 = vmov 0  }
 0x15f   :  { %v2759_v52 = vadd.f32 %v2512_v49, %v760_v51 }
 0x161   :  { %v766_v53 = vand.u32 2139095040, %v2759_v52  ;;  %v763_v56 = vand.u32 2147483647, %v2759_v52  ;;  %vm765_vm12 = vcmp.lt.s32.totalorder %v2759_v52, 0 }
 0x163   :  { %v767_v54 = vshrl.u32 %v766_v53, 23  ;;  %v770_v58 = vand.u32 8388607, %v763_v56  ;;  %vm764_vm13 = vcmp.le.f32.partialorder %v763_v56, 0.7853982 }
 0x165   :  { %v2403_v55 = vadd.s32 4294967169, %v767_v54  ;;  %v771_v62 = vor.u32 8388608, %v770_v58 }
 0x167   :  { %v773_v57 = vadd.s32 1, %v2403_v55  ;;  %v2785_v21 = vshll.u32 %v771_v62, 8 }
 0x169   :  { %vm774_vm0 = vcmp.gt.s32.totalorder %v773_v57, 0  ;;  %v812_v30 = vand.u32 65535, %v2785_v21  ;;  %v813_v31 = vshrl.u32 %v2785_v21, 16 }
 0x16a   :  { %v775_v59 = vsel %vm774_vm0, %v773_v57, 0 }
 0x16b   :  { %v777_v60 = vand.u32 31, %v775_v59  ;;  %v2767_v63 = vshrl.u32 %v775_v59, 5 }
 0x16d   :  { %v2765_v61 = vsub.s32 32, %v777_v60  ;;  %v780_v1 = vshll.u32 %v2691_v0, %v777_v60  ;;  %v783_v3 = vshll.u32 %v2692_v2, %v777_v60  ;;  %v786_v7 = vshll.u32 %v2693_v5, %v777_v60 }
 0x16e   :  { %v789_v10 = vshll.u32 %v2694_v8, %v777_v60  ;;  %v792_v13 = vshll.u32 %v2695_v11, %v777_v60  ;;  %vm795_vm1 = vcmp.lt.s32.totalorder %v2767_v63, 1  ;;  %vm798_vm2 = vcmp.lt.s32.totalorder %v2767_v63, 4 }
 0x16f   :  { %v781_v4 = vshrl.u32 %v2692_v2, %v2765_v61  ;;  %v784_v6 = vshrl.u32 %v2693_v5, %v2765_v61  ;;  %v787_v9 = vshrl.u32 %v2694_v8, %v2765_v61  ;;  %v790_v12 = vshrl.u32 %v2695_v11, %v2765_v61 }
 0x170   :  { %v793_v15 = vshrl.u32 %v2696_v14, %v2765_v61  ;;  %vm797_vm3 = vcmp.lt.s32.totalorder %v2767_v63, 3  ;;  %vm796_vm4 = vcmp.lt.s32.totalorder %v2767_v63, 2  ;;  %v779_v59 = vshrl.u32 %v2691_v0, %v2765_v61 }
 0x171   :  { %v782_v16 = vor.u32 %v781_v4, %v780_v1  ;;  %v785_v17 = vor.u32 %v784_v6, %v783_v3  ;;  %v788_v18 = vor.u32 %v787_v9, %v786_v7  ;;  %v791_v19 = vor.u32 %v790_v12, %v789_v10 }
 0x172   :  { %v794_v20 = vor.u32 %v793_v15, %v792_v13 }
 0x173   :  { %v803_v22 = vsel %vm795_vm1, %v782_v16, %v785_v17  ;;  %v807_v23 = vsel %vm795_vm1, %v785_v17, %v788_v18  ;;  %v804_v24 = vsel %vm798_vm2, %v791_v19, 920167782  ;;  %v800_v55 = vsel %vm798_vm2, %v788_v18, 2102212464 }
 0x174   :  { %v808_v25 = vsel %vm798_vm2, %v794_v20, 1326507024  ;;  %v805_v26 = vsel %vm797_vm3, %v788_v18, %v804_v24  ;;  %v799_v6 = vsel %vm795_vm1, %v779_v59, %v782_v16  ;;  %v801_v7 = vsel %vm797_vm3, %v785_v17, %v800_v55 }
 0x175   :  { %v809_v27 = vsel %vm797_vm3, %v791_v19, %v808_v25  ;;  %v806_v28 = vsel %vm796_vm4, %v803_v22, %v805_v26  ;;  %v802_v61 = vsel %vm796_vm4, %v799_v6, %v801_v7  ;;  %vm906_vm1 = vweird.f32 %v2759_v52 }
 0x176   :  { %v810_v29 = vsel %vm796_vm4, %v807_v23, %v809_v27  ;;  %v836_v34 = vand.u32 65535, %v806_v28  ;;  %v837_v35 = vshrl.u32 %v806_v28, 16  ;;  %v856_v22 = vmul.u32 %v2785_v21, %v802_v61 }
 0x177   :  { %v814_v32 = vand.u32 65535, %v810_v29  ;;  %v815_v33 = vshrl.u32 %v810_v29, 16 }
 0x178   :  { %v839_v38 = vmul.u32 %v837_v35, %v812_v30  ;;  %v840_v39 = vmul.u32 %v836_v34, %v813_v31  ;;  %v838_v43 = vmul.u32 %v836_v34, %v812_v30  ;;  %v841_v47 = vmul.u32 %v837_v35, %v813_v31 }
 0x179   :  { %v817_v36 = vmul.u32 %v815_v33, %v812_v30  ;;  %v818_v37 = vmul.u32 %v814_v32, %v813_v31  ;;  %v816_v40 = vmul.u32 %v814_v32, %v812_v30  ;;  %v819_v42 = vmul.u32 %v815_v33, %v813_v31 }
 0x17a   :  { %v842_v44 = vshll.u32 %v839_v38, 16  ;;  %v844_v50 = vshll.u32 %v840_v39, 16  ;;  %v843_v3 = vshrl.u32 %v839_v38, 16  ;;  %v845_v12 = vshrl.u32 %v840_v39, 16 }
 0x17b   :  { %v820_v41 = vshll.u32 %v817_v36, 16  ;;  %v822_v45 = vshll.u32 %v818_v37, 16  ;;  %v821_v60 = vshrl.u32 %v817_v36, 16  ;;  %v823_v9 = vshrl.u32 %v818_v37, 16 }
 0x17c   :  { %vm846_vm6 = vc.u32 %v838_v43, %v842_v44  ;;  %v848_v51 = vadd.s32 %v842_v44, %v838_v43 }
 0x17d   :  { %vm824_vm5 = vc.u32 %v816_v40, %v820_v41  ;;  %v826_v46 = vadd.s32 %v820_v41, %v816_v40  ;;  %v847_v54 = vsel %vm846_vm6, 1, %v2697_v48 }
 0x17e   :  { %v825_v49 = vsel %vm824_vm5, 1, %v2697_v48  ;;  %v849_v58 = vadd.s32 %v847_v54, %v841_v47  ;;  %vm850_vm8 = vc.u32 %v848_v51, %v844_v50  ;;  %v852_v18 = vadd.s32 %v848_v51, %v844_v50 }
 0x17f   :  { %v827_v53 = vadd.s32 %v825_v49, %v819_v42  ;;  %vm828_vm7 = vc.u32 %v826_v46, %v822_v45  ;;  %v851_v1 = vsel %vm850_vm8, 1, %v2697_v48 }
 0x180   :  { %v829_v57 = vsel %vm828_vm7, 1, %v2697_v48  ;;  %v853_v4 = vadd.s32 %v851_v1, %v849_v58 }
 0x181   :  { %v831_v62 = vadd.s32 %v829_v57, %v827_v53 }
 0x182   :  { %v854_v13 = vadd.s32 %v853_v4, %v843_v3 }
 0x183   :  { %v832_v10 = vadd.s32 %v831_v62, %v821_v60 }
 0x184   :  { %v855_v19 = vadd.s32 %v854_v13, %v845_v12 }
 0x185   :  { %v833_v15 = vadd.s32 %v832_v10, %v823_v9  ;;  %v2513_v10 = vld [vmem:[#allocation7 + $0x1] ss:$0 sm:$0xff] }
 0x186   :  { %v859_v20 = vadd.s32 1, %v855_v19 }
 0x187   :  { %vm858_vm9 = vc.u32 %v833_v15, %v852_v18  ;;  %v857_v63 = vadd.s32 %v852_v18, %v833_v15 }
 0x188   :  { %v860_v23 = vsel %vm858_vm9, %v859_v20, %v855_v19 }
 0x189   :  { %v861_v24 = vadd.s32 %v860_v23, %v856_v22  ;;  %v2514_v22 = vld [vmem:[#allocation8 + $0x1] ss:$0 sm:$0xff] }
 0x18b   :  { %v862_v16 = vadd.s32 536870912, %v861_v24 }
 0x18d   :  { %v863_v25 = vshrl.u32 %v862_v16, 30 }
 0x18f   :  { %v864_v26 = vshll.u32 %v863_v25, 30  ;;  %v887_v44 = vsub.s32 4, %v863_v25 }
 0x191   :  { %v865_v17 = vsub.s32 %v861_v24, %v864_v26  ;;  %v888_v50 = vsel %vm765_vm12, %v887_v44, %v863_v25 }
 0x192   :  { %v890_v54 = vsel %vm764_vm13, 0, %v888_v50 }
 0x193   :  { %vm866_vm10 = vcmp.lt.s32.totalorder %v865_v17, 0  ;;  %v867_v27 = vsub.s32 0, %v865_v17  ;;  %v907_v60 = vadd.s32 3, %v890_v54 }
 0x195   :  { %v868_v28 = vsel %vm866_vm10, %v867_v27, %v865_v17  ;;  %v908_v4 = vand.u32 3, %v907_v60 }
 0x196   :  { %v869_v29 = vclz %v868_v28 }
 0x197   :  { %vm910_vm14 = vcmp.eq.s32.totalorder %v908_v4, 0  ;;  %vm913_vm15 = vcmp.eq.s32.totalorder %v908_v4, 2  ;;  %vm909_vm0 = vcmp.lt.s32.totalorder %v908_v4, 2 }
 0x198   :  { %v2404_v30 = vadd.s32 4294967294, %v869_v29 }
 0x19a   :  { %vm2405_vm11 = vcmp.lt.s32.totalorder %v2404_v30, 0 }
 0x19b   :  { %v872_v31 = vsel %vm2405_vm11, 0, %v2404_v30 }
 0x19c   :  { %v873_v32 = vsub.s32 32, %v872_v31  ;;  %v877_v33 = vsub.s32 4294967266, %v872_v31  ;;  %v874_v34 = vshll.u32 %v865_v17, %v872_v31 }
 0x19e   :  { %v875_v35 = vshrl.u32 %v857_v63, %v873_v32  ;;  %v878_v36 = vadd.s32 127, %v877_v33 }
 0x1a0   :  { %v876_v21 = vor.u32 %v875_v35, %v874_v34  ;;  %v879_v37 = vshll.u32 %v878_v36, 23 }
 0x1a2   :  { %v880_v38 = vor.u32 4788187, %v879_v37  ;;  %v883_v40 = vcvt.s32.f32 %v876_v21 }
 0x1a4   :  { %v881_v39 = vand.u32 2147483647, %v880_v38 }
 0x1a6   :  { %v884_v41 = vmul.f32 %v883_v40, %v881_v39 }
 0x1a8   :  { %v885_v42 = vxor.u32 2147483648, %v884_v41 }
 0x1aa   :  { %v886_v43 = vsel %vm765_vm12, %v885_v42, %v884_v41 }
 0x1ab   :  { %v889_v45 = vsel %vm764_vm13, %v2759_v52, %v886_v43 }
 0x1ac   :  { %v891_v46 = vmul.f32 %v889_v45, %v889_v45 }
 0x1ae   :  { %v892_v47 = vmul.f32 -0.001358992, %v891_v46  ;;  %v899_v49 = vmul.f32 -0.00019511016, %v891_v46 }
 0x1b0   :  { %v893_v51 = vadd.f32 0.041655596, %v892_v47  ;;  %v900_v53 = vadd.f32 0.008332121, %v899_v49 }
 0x1b2   :  { %v894_v55 = vmul.f32 %v893_v51, %v891_v46  ;;  %v901_v57 = vmul.f32 %v900_v53, %v891_v46 }
 0x1b4   :  { %v895_v58 = vadd.f32 -0.4999988, %v894_v55  ;;  %v902_v59 = vadd.f32 -0.16666654, %v901_v57 }
 0x1b6   :  { %v896_v62 = vmul.f32 %v895_v58, %v891_v46  ;;  %v903_v1 = vmul.f32 %v902_v59, %v891_v46 }
 0x1b8   :  { %v897_v3 = vadd.f32 1.0, %v896_v62  ;;  %v904_v56 = vadd.f32 1.0, %v903_v1 }
 0x1ba   :  { %v905_v6 = vmul.f32 %v904_v56, %v889_v45  ;;  %v914_v7 = vxor.u32 2147483648, %v897_v3 }
 0x1bc   :  { %v911_v9 = vxor.u32 2147483648, %v905_v6  ;;  %v915_v13 = vsel %vm913_vm15, %v914_v7, %v905_v6 }
 0x1be   :  { %v912_v12 = vsel %vm910_vm14, %v897_v3, %v911_v9 }
 0x1bf   :  { %v916_v15 = vsel %vm909_vm0, %v912_v12, %v915_v13 }
 0x1c0   :  { %v917_v18 = vsel %vm906_vm1, nan, %v916_v15 }
 0x1c1   :  { %v921_v61 = vmul.f32 %v2513_v10, %v917_v18 }
 0x1c3   :  { %922 = vrot.lane.b32.xlu1 %v921_v61, %s2689_s27 }
 0x1cb   :  { %924 = vrot.lane.b32.xlu1 %v921_v61, %s2690_s2 }
 0x235   :  { %v923_v19 = vpop.permute.xlu1 %922 }
 0x236   :  { %v926_v20 = vadd.f32 %v923_v19, %v921_v61 }
 0x23d   :  { %v925_v23 = vpop.permute.xlu1 %924 }
 0x23e   :  { %v927_v24 = vadd.f32 %v926_v20, %v925_v23 }
 0x240   :  { %v2830_v16 = vadd.f32 %v2514_v22, %v927_v24 }
 0x242   :  { %v933_v25 = vand.u32 2139095040, %v2830_v16  ;;  %v930_v52 = vand.u32 2147483647, %v2830_v16  ;;  %vm932_vm14 = vcmp.lt.s32.totalorder %v2830_v16, 0 }
 0x244   :  { %v934_v26 = vshrl.u32 %v933_v25, 23  ;;  %v937_v28 = vand.u32 8388607, %v930_v52  ;;  %vm931_vm15 = vcmp.le.f32.partialorder %v930_v52, 0.7853982 }
 0x246   :  { %v2406_v17 = vadd.s32 4294967169, %v934_v26  ;;  %v938_v63 = vor.u32 8388608, %v937_v28 }
 0x248   :  { %v940_v27 = vadd.s32 1, %v2406_v17  ;;  %v2849_v47 = vshll.u32 %v938_v63, 8 }
 0x24a   :  { %vm941_vm2 = vcmp.gt.s32.totalorder %v940_v27, 0  ;;  %v979_v59 = vand.u32 65535, %v2849_v47  ;;  %v980_v60 = vshrl.u32 %v2849_v47, 16 }
 0x24b   :  { %v942_v29 = vsel %vm941_vm2, %v940_v27, 0 }
 0x24c   :  { %v944_v30 = vand.u32 31, %v942_v29  ;;  %v2836_v32 = vshrl.u32 %v942_v29, 5 }
 0x24e   :  { %v945_v31 = vsub.s32 32, %v944_v30  ;;  %v947_v33 = vshll.u32 %v2691_v0, %v944_v30  ;;  %v950_v34 = vshll.u32 %v2692_v2, %v944_v30  ;;  %v953_v21 = vshll.u32 %v2693_v5, %v944_v30 }
 0x24f   :  { %v956_v38 = vshll.u32 %v2694_v8, %v944_v30  ;;  %v959_v40 = vshll.u32 %v2695_v11, %v944_v30  ;;  %vm962_vm3 = vcmp.lt.s32.totalorder %v2836_v32, 1  ;;  %vm965_vm4 = vcmp.lt.s32.totalorder %v2836_v32, 4 }
 0x250   :  { %v948_v35 = vshrl.u32 %v2692_v2, %v945_v31  ;;  %v951_v36 = vshrl.u32 %v2693_v5, %v945_v31  ;;  %v954_v37 = vshrl.u32 %v2694_v8, %v945_v31  ;;  %v957_v39 = vshrl.u32 %v2695_v11, %v945_v31 }
 0x251   :  { %v960_v41 = vshrl.u32 %v2696_v14, %v945_v31  ;;  %vm964_vm5 = vcmp.lt.s32.totalorder %v2836_v32, 3  ;;  %vm963_vm6 = vcmp.lt.s32.totalorder %v2836_v32, 2  ;;  %v946_v29 = vshrl.u32 %v2691_v0, %v945_v31 }
 0x252   :  { %v949_v42 = vor.u32 %v948_v35, %v947_v33  ;;  %v952_v43 = vor.u32 %v951_v36, %v950_v34  ;;  %v955_v44 = vor.u32 %v954_v37, %v953_v21  ;;  %v958_v45 = vor.u32 %v957_v39, %v956_v38 }
 0x253   :  { %v961_v46 = vor.u32 %v960_v41, %v959_v40 }
 0x254   :  { %v970_v49 = vsel %vm962_vm3, %v949_v42, %v952_v43  ;;  %v974_v50 = vsel %vm962_vm3, %v952_v43, %v955_v44  ;;  %v971_v51 = vsel %vm965_vm4, %v958_v45, 920167782  ;;  %v967_v17 = vsel %vm965_vm4, %v955_v44, 2102212464 }
 0x255   :  { %v975_v53 = vsel %vm965_vm4, %v961_v46, 1326507024  ;;  %v972_v54 = vsel %vm964_vm5, %v955_v44, %v971_v51  ;;  %v966_v36 = vsel %vm962_vm3, %v946_v29, %v949_v42  ;;  %v968_v21 = vsel %vm964_vm5, %v952_v43, %v967_v17 }
 0x256   :  { %v976_v55 = vsel %vm964_vm5, %v958_v45, %v975_v53  ;;  %v973_v57 = vsel %vm963_vm6, %v970_v49, %v972_v54  ;;  %v969_v31 = vsel %vm963_vm6, %v966_v36, %v968_v21  ;;  %vm1073_vm3 = vweird.f32 %v2830_v16 }
 0x257   :  { %v977_v58 = vsel %vm963_vm6, %v974_v50, %v976_v55  ;;  %v1003_v3 = vand.u32 65535, %v973_v57  ;;  %v1004_v56 = vshrl.u32 %v973_v57, 16  ;;  %v1023_v49 = vmul.u32 %v2849_v47, %v969_v31 }
 0x258   :  { %v981_v62 = vand.u32 65535, %v977_v58  ;;  %v982_v1 = vshrl.u32 %v977_v58, 16 }
 0x259   :  { %v1006_v7 = vmul.u32 %v1004_v56, %v979_v59  ;;  %v1007_v9 = vmul.u32 %v1003_v3, %v980_v60  ;;  %v1005_v15 = vmul.u32 %v1003_v3, %v979_v59  ;;  %v1008_v20 = vmul.u32 %v1004_v56, %v980_v60 }
 0x25a   :  { %v984_v4 = vmul.u32 %v982_v1, %v979_v59  ;;  %v985_v6 = vmul.u32 %v981_v62, %v980_v60  ;;  %v983_v10 = vmul.u32 %v981_v62, %v979_v59  ;;  %v986_v13 = vmul.u32 %v982_v1, %v980_v60 }
 0x25b   :  { %v1009_v18 = vshll.u32 %v1006_v7, 16  ;;  %v1011_v23 = vshll.u32 %v1007_v9, 16  ;;  %v1010_v34 = vshrl.u32 %v1006_v7, 16  ;;  %v1012_v39 = vshrl.u32 %v1007_v9, 16 }
 0x25c   :  { %v987_v12 = vshll.u32 %v984_v4, 16  ;;  %v989_v61 = vshll.u32 %v985_v6, 16  ;;  %v988_v30 = vshrl.u32 %v984_v4, 16  ;;  %v990_v37 = vshrl.u32 %v985_v6, 16 }
 0x25d   :  { %vm1013_vm8 = vc.u32 %v1005_v15, %v1009_v18  ;;  %v1015_v24 = vadd.s32 %v1009_v18, %v1005_v15 }
 0x25e   :  { %vm991_vm7 = vc.u32 %v983_v10, %v987_v12  ;;  %v993_v19 = vadd.s32 %v987_v12, %v983_v10  ;;  %v1014_v26 = vsel %vm1013_vm8, 1, %v2697_v48 }
 0x25f   :  { %v992_v22 = vsel %vm991_vm7, 1, %v2697_v48  ;;  %v1016_v28 = vadd.s32 %v1014_v26, %v1008_v20  ;;  %vm1017_vm10 = vc.u32 %v1015_v24, %v1011_v23  ;;  %v1019_v44 = vadd.s32 %v1015_v24, %v1011_v23 }
 0x260   :  { %v994_v25 = vadd.s32 %v992_v22, %v986_v13  ;;  %vm995_vm9 = vc.u32 %v993_v19, %v989_v61  ;;  %v1018_v33 = vsel %vm1017_vm10, 1, %v2697_v48 }
 0x261   :  { %v996_v27 = vsel %vm995_vm9, 1, %v2697_v48  ;;  %v1020_v35 = vadd.s32 %v1018_v33, %v1016_v28 }
 0x262   :  { %v998_v63 = vadd.s32 %v996_v27, %v994_v25 }
 0x263   :  { %v1021_v40 = vadd.s32 %v1020_v35, %v1010_v34 }
 0x264   :  { %v999_v38 = vadd.s32 %v998_v63, %v988_v30 }
 0x265   :  { %v1022_v45 = vadd.s32 %v1021_v40, %v1012_v39 }
 0x266   :  { %v1000_v41 = vadd.s32 %v999_v38, %v990_v37  ;;  %v2515_v38 = vld [vmem:[#allocation7 + $0x2] ss:$0 sm:$0xff] }
 0x267   :  { %v1026_v46 = vadd.s32 1, %v1022_v45 }
 0x268   :  { %vm1025_vm11 = vc.u32 %v1000_v41, %v1019_v44  ;;  %v1024_v32 = vadd.s32 %v1019_v44, %v1000_v41 }
 0x269   :  { %v1027_v50 = vsel %vm1025_vm11, %v1026_v46, %v1022_v45 }
 0x26a   :  { %v1028_v51 = vadd.s32 %v1027_v50, %v1023_v49  ;;  %v2516_v49 = vld [vmem:[#allocation8 + $0x2] ss:$0 sm:$0xff] }
 0x26c   :  { %v1029_v42 = vadd.s32 536870912, %v1028_v51 }
 0x26e   :  { %v1030_v53 = vshrl.u32 %v1029_v42, 30 }
 0x270   :  { %v1031_v54 = vshll.u32 %v1030_v53, 30  ;;  %v1054_v18 = vsub.s32 4, %v1030_v53 }
 0x272   :  { %v1032_v43 = vsub.s32 %v1028_v51, %v1031_v54  ;;  %v1055_v23 = vsel %vm932_vm14, %v1054_v18, %v1030_v53 }
 0x273   :  { %v1057_v26 = vsel %vm931_vm15, 0, %v1055_v23 }
 0x274   :  { %vm1033_vm12 = vcmp.lt.s32.totalorder %v1032_v43, 0  ;;  %v1034_v55 = vsub.s32 0, %v1032_v43  ;;  %v1074_v30 = vadd.s32 3, %v1057_v26 }
 0x276   :  { %v1035_v57 = vsel %vm1033_vm12, %v1034_v55, %v1032_v43  ;;  %v1075_v35 = vand.u32 3, %v1074_v30 }
 0x277   :  { %v1036_v58 = vclz %v1035_v57 }
 0x278   :  { %vm1077_vm0 = vcmp.eq.s32.totalorder %v1075_v35, 0  ;;  %vm1080_vm1 = vcmp.eq.s32.totalorder %v1075_v35, 2  ;;  %vm1076_vm2 = vcmp.lt.s32.totalorder %v1075_v35, 2 }
 0x279   :  { %v2407_v59 = vadd.s32 4294967294, %v1036_v58 }
 0x27b   :  { %vm2408_vm13 = vcmp.lt.s32.totalorder %v2407_v59, 0 }
 0x27c   :  { %v1039_v60 = vsel %vm2408_vm13, 0, %v2407_v59 }
 0x27d   :  { %v1040_v62 = vsub.s32 32, %v1039_v60  ;;  %v1044_v1 = vsub.s32 4294967266, %v1039_v60  ;;  %v1041_v3 = vshll.u32 %v1032_v43, %v1039_v60 }
 0x27f   :  { %v1042_v56 = vshrl.u32 %v1024_v32, %v1040_v62  ;;  %v1045_v4 = vadd.s32 127, %v1044_v1 }
 0x281   :  { %v1043_v47 = vor.u32 %v1042_v56, %v1041_v3  ;;  %v1046_v6 = vshll.u32 %v1045_v4, 23 }
 0x283   :  { %v1047_v7 = vor.u32 4788187, %v1046_v6  ;;  %v1050_v10 = vcvt.s32.f32 %v1043_v47 }
 0x285   :  { %v1048_v9 = vand.u32 2147483647, %v1047_v7 }
 0x287   :  { %v1051_v12 = vmul.f32 %v1050_v10, %v1048_v9 }
 0x289   :  { %v1052_v13 = vxor.u32 2147483648, %v1051_v12 }
 0x28b   :  { %v1053_v15 = vsel %vm932_vm14, %v1052_v13, %v1051_v12 }
 0x28c   :  { %v1056_v61 = vsel %vm931_vm15, %v2830_v16, %v1053_v15 }
 0x28d   :  { %v1058_v19 = vmul.f32 %v1056_v61, %v1056_v61 }
 0x28f   :  { %v1059_v20 = vmul.f32 -0.001358992, %v1058_v19  ;;  %v1066_v22 = vmul.f32 -0.00019511016, %v1058_v19 }
 0x291   :  { %v1060_v24 = vadd.f32 0.041655596, %v1059_v20  ;;  %v1067_v25 = vadd.f32 0.008332121, %v1066_v22 }
 0x293   :  { %v1061_v17 = vmul.f32 %v1060_v24, %v1058_v19  ;;  %v1068_v27 = vmul.f32 %v1067_v25, %v1058_v19 }
 0x295   :  { %v1062_v28 = vadd.f32 -0.4999988, %v1061_v17  ;;  %v1069_v29 = vadd.f32 -0.16666654, %v1068_v27 }
 0x297   :  { %v1063_v63 = vmul.f32 %v1062_v28, %v1058_v19  ;;  %v1070_v33 = vmul.f32 %v1069_v29, %v1058_v19 }
 0x299   :  { %v1064_v34 = vadd.f32 1.0, %v1063_v63  ;;  %v1071_v52 = vadd.f32 1.0, %v1070_v33 }
 0x29b   :  { %v1072_v36 = vmul.f32 %v1071_v52, %v1056_v61  ;;  %v1081_v21 = vxor.u32 2147483648, %v1064_v34 }
 0x29d   :  { %v1078_v37 = vxor.u32 2147483648, %v1072_v36  ;;  %v1082_v40 = vsel %vm1080_vm1, %v1081_v21, %v1072_v36 }
 0x29f   :  { %v1079_v39 = vsel %vm1077_vm0, %v1064_v34, %v1078_v37 }
 0x2a0   :  { %v1083_v41 = vsel %vm1076_vm2, %v1079_v39, %v1082_v40 }
 0x2a1   :  { %v1084_v44 = vsel %vm1073_vm3, nan, %v1083_v41 }
 0x2a2   :  { %v1088_v31 = vmul.f32 %v2515_v38, %v1084_v44 }
 0x2a4   :  { %1089 = vrot.lane.b32.xlu2 %v1088_v31, %s2689_s27 }
 0x2ac   :  { %1091 = vrot.lane.b32.xlu2 %v1088_v31, %s2690_s2 }
 0x2fe   :  { %v1090_v45 = vpop.permute.xlu2 %1089 }
 0x2ff   :  { %v1093_v46 = vadd.f32 %v1090_v45, %v1088_v31 }
 0x306   :  { %v1092_v50 = vpop.permute.xlu2 %1091 }
 0x307   :  { %v1094_v51 = vadd.f32 %v1093_v46, %v1092_v50 }
 0x309   :  { %v2893_v42 = vadd.f32 %v2516_v49, %v1094_v51 }
 0x30b   :  { %v1100_v53 = vand.u32 2139095040, %v2893_v42  ;;  %v1097_v16 = vand.u32 2147483647, %v2893_v42  ;;  %vm1099_vm0 = vcmp.lt.s32.totalorder %v2893_v42, 0 }
 0x30d   :  { %v1101_v54 = vshrl.u32 %v1100_v53, 23  ;;  %v1104_v57 = vand.u32 8388607, %v1097_v16  ;;  %vm1098_vm1 = vcmp.le.f32.partialorder %v1097_v16, 0.7853982 }
 0x30f   :  { %v2409_v43 = vadd.s32 4294967169, %v1101_v54  ;;  %v1105_v32 = vor.u32 8388608, %v1104_v57 }
 0x311   :  { %v1107_v55 = vadd.s32 1, %v2409_v43  ;;  %v2912_v20 = vshll.u32 %v1105_v32, 8 }
 0x313   :  { %vm1108_vm4 = vcmp.gt.s32.totalorder %v1107_v55, 0  ;;  %v1146_v29 = vand.u32 65535, %v2912_v20  ;;  %v1147_v30 = vshrl.u32 %v2912_v20, 16 }
 0x314   :  { %v1109_v58 = vsel %vm1108_vm4, %v1107_v55, 0 }
 0x315   :  { %v1111_v59 = vand.u32 31, %v1109_v58  ;;  %v2899_v62 = vshrl.u32 %v1109_v58, 5 }
 0x317   :  { %v1112_v60 = vsub.s32 32, %v1111_v59  ;;  %v1114_v1 = vshll.u32 %v2691_v0, %v1111_v59  ;;  %v1117_v3 = vshll.u32 %v2692_v2, %v1111_v59  ;;  %v1120_v47 = vshll.u32 %v2693_v5, %v1111_v59 }
 0x318   :  { %v1123_v7 = vshll.u32 %v2694_v8, %v1111_v59  ;;  %v1126_v10 = vshll.u32 %v2695_v11, %v1111_v59  ;;  %vm1129_vm5 = vcmp.lt.s32.totalorder %v2899_v62, 1  ;;  %vm1132_vm6 = vcmp.lt.s32.totalorder %v2899_v62, 4 }
 0x319   :  { %v1115_v56 = vshrl.u32 %v2692_v2, %v1112_v60  ;;  %v1118_v4 = vshrl.u32 %v2693_v5, %v1112_v60  ;;  %v1121_v6 = vshrl.u32 %v2694_v8, %v1112_v60  ;;  %v1124_v9 = vshrl.u32 %v2695_v11, %v1112_v60 }
 0x31a   :  { %v1127_v12 = vshrl.u32 %v2696_v14, %v1112_v60  ;;  %vm1131_vm7 = vcmp.lt.s32.totalorder %v2899_v62, 3  ;;  %vm1130_vm8 = vcmp.lt.s32.totalorder %v2899_v62, 2  ;;  %v1113_v58 = vshrl.u32 %v2691_v0, %v1112_v60 }
 0x31b   :  { %v1116_v13 = vor.u32 %v1115_v56, %v1114_v1  ;;  %v1119_v15 = vor.u32 %v1118_v4, %v1117_v3  ;;  %v1122_v18 = vor.u32 %v1121_v6, %v1120_v47  ;;  %v1125_v61 = vor.u32 %v1124_v9, %v1123_v7 }
 0x31c   :  { %v1128_v19 = vor.u32 %v1127_v12, %v1126_v10 }
 0x31d   :  { %v1137_v22 = vsel %vm1129_vm5, %v1116_v13, %v1119_v15  ;;  %v1141_v23 = vsel %vm1129_vm5, %v1119_v15, %v1122_v18  ;;  %v1138_v24 = vsel %vm1132_vm6, %v1125_v61, 920167782  ;;  %v1134_v43 = vsel %vm1132_vm6, %v1122_v18, 2102212464 }
 0x31e   :  { %v1142_v25 = vsel %vm1132_vm6, %v1128_v19, 1326507024  ;;  %v1139_v26 = vsel %vm1131_vm7, %v1122_v18, %v1138_v24  ;;  %v1133_v4 = vsel %vm1129_vm5, %v1113_v58, %v1116_v13  ;;  %v1135_v47 = vsel %vm1131_vm7, %v1119_v15, %v1134_v43 }
 0x31f   :  { %v1143_v17 = vsel %vm1131_vm7, %v1125_v61, %v1142_v25  ;;  %v1140_v27 = vsel %vm1130_vm8, %v1137_v22, %v1139_v26  ;;  %v1136_v60 = vsel %vm1130_vm8, %v1133_v4, %v1135_v47  ;;  %vm1240_vm5 = vweird.f32 %v2893_v42 }
 0x320   :  { %v1144_v28 = vsel %vm1130_vm8, %v1141_v23, %v1143_v17  ;;  %v1170_v34 = vand.u32 65535, %v1140_v27  ;;  %v1171_v52 = vshrl.u32 %v1140_v27, 16  ;;  %v1190_v22 = vmul.u32 %v2912_v20, %v1136_v60 }
 0x321   :  { %v1148_v63 = vand.u32 65535, %v1144_v28  ;;  %v1149_v33 = vshrl.u32 %v1144_v28, 16 }
 0x322   :  { %v1173_v21 = vmul.u32 %v1171_v52, %v1146_v29  ;;  %v1174_v37 = vmul.u32 %v1170_v34, %v1147_v30  ;;  %v1172_v41 = vmul.u32 %v1170_v34, %v1146_v29  ;;  %v1175_v46 = vmul.u32 %v1171_v52, %v1147_v30 }
 0x323   :  { %v1151_v35 = vmul.u32 %v1149_v33, %v1146_v29  ;;  %v1152_v36 = vmul.u32 %v1148_v63, %v1147_v30  ;;  %v1150_v38 = vmul.u32 %v1148_v63, %v1146_v29  ;;  %v1153_v40 = vmul.u32 %v1149_v33, %v1147_v30 }
 0x324   :  { %v1176_v44 = vshll.u32 %v1173_v21, 16  ;;  %v1178_v50 = vshll.u32 %v1174_v37, 16  ;;  %v1177_v3 = vshrl.u32 %v1173_v21, 16  ;;  %v1179_v9 = vshrl.u32 %v1174_v37, 16 }
 0x325   :  { %v1154_v39 = vshll.u32 %v1151_v35, 16  ;;  %v1156_v31 = vshll.u32 %v1152_v36, 16  ;;  %v1155_v59 = vshrl.u32 %v1151_v35, 16  ;;  %v1157_v6 = vshrl.u32 %v1152_v36, 16 }
 0x326   :  { %vm1180_vm10 = vc.u32 %v1172_v41, %v1176_v44  ;;  %v1182_v51 = vadd.s32 %v1176_v44, %v1172_v41 }
 0x327   :  { %vm1158_vm9 = vc.u32 %v1150_v38, %v1154_v39  ;;  %v1160_v45 = vadd.s32 %v1154_v39, %v1150_v38  ;;  %v1181_v54 = vsel %vm1180_vm10, 1, %v2697_v48 }
 0x328   :  { %v1159_v49 = vsel %vm1158_vm9, 1, %v2697_v48  ;;  %v1183_v57 = vadd.s32 %v1181_v54, %v1175_v46  ;;  %vm1184_vm12 = vc.u32 %v1182_v51, %v1178_v50  ;;  %v1186_v18 = vadd.s32 %v1182_v51, %v1178_v50 }
 0x329   :  { %v1161_v53 = vadd.s32 %v1159_v49, %v1153_v40  ;;  %vm1162_vm11 = vc.u32 %v1160_v45, %v1156_v31  ;;  %v1185_v1 = vsel %vm1184_vm12, 1, %v2697_v48 }
 0x32a   :  { %v1163_v55 = vsel %vm1162_vm11, 1, %v2697_v48  ;;  %v1187_v56 = vadd.s32 %v1185_v1, %v1183_v57 }
 0x32b   :  { %v1165_v32 = vadd.s32 %v1163_v55, %v1161_v53 }
 0x32c   :  { %v1188_v10 = vadd.s32 %v1187_v56, %v1177_v3 }
 0x32d   :  { %v1166_v7 = vadd.s32 %v1165_v32, %v1155_v59 }
 0x32e   :  { %v1189_v61 = vadd.s32 %v1188_v10, %v1179_v9 }
 0x32f   :  { %v1167_v12 = vadd.s32 %v1166_v7, %v1157_v6  ;;  %v2517_v7 = vld [vmem:[#allocation7 + $0x3] ss:$0 sm:$0xff] }
 0x330   :  { %v1193_v19 = vadd.s32 1, %v1189_v61 }
 0x331   :  { %vm1192_vm13 = vc.u32 %v1167_v12, %v1186_v18  ;;  %v1191_v62 = vadd.s32 %v1186_v18, %v1167_v12 }
 0x332   :  { %v1194_v23 = vsel %vm1192_vm13, %v1193_v19, %v1189_v61  ;;  %v2518_v19 = vld [vmem:[#allocation8 + $0x3] ss:$0 sm:$0xff] }
 0x333   :  { %v1195_v24 = vadd.s32 %v1194_v23, %v1190_v22 }
 0x335   :  { %v1196_v13 = vadd.s32 536870912, %v1195_v24 }
 0x337   :  { %v1197_v25 = vshrl.u32 %v1196_v13, 30 }
 0x339   :  { %v1198_v26 = vshll.u32 %v1197_v25, 30  ;;  %v1221_v44 = vsub.s32 4, %v1197_v25 }
 0x33b   :  { %v1199_v15 = vsub.s32 %v1195_v24, %v1198_v26  ;;  %v1222_v50 = vsel %vm1099_vm0, %v1221_v44, %v1197_v25 }
 0x33c   :  { %v1224_v54 = vsel %vm1098_vm1, 0, %v1222_v50 }
 0x33d   :  { %vm1200_vm14 = vcmp.lt.s32.totalorder %v1199_v15, 0  ;;  %v1201_v17 = vsub.s32 0, %v1199_v15  ;;  %v1241_v59 = vadd.s32 3, %v1224_v54 }
 0x33f   :  { %v1202_v27 = vsel %vm1200_vm14, %v1201_v17, %v1199_v15  ;;  %v1242_v56 = vand.u32 3, %v1241_v59 }
 0x340   :  { %v1203_v28 = vclz %v1202_v27 }
 0x341   :  { %vm1244_vm2 = vcmp.eq.s32.totalorder %v1242_v56, 0  ;;  %vm1247_vm3 = vcmp.eq.s32.totalorder %v1242_v56, 2  ;;  %vm1243_vm4 = vcmp.lt.s32.totalorder %v1242_v56, 2 }
 0x342   :  { %v2410_v29 = vadd.s32 4294967294, %v1203_v28 }
 0x344   :  { %vm2411_vm15 = vcmp.lt.s32.totalorder %v2410_v29, 0 }
 0x345   :  { %v1206_v30 = vsel %vm2411_vm15, 0, %v2410_v29 }
 0x346   :  { %v1207_v63 = vsub.s32 32, %v1206_v30  ;;  %v1211_v33 = vsub.s32 4294967266, %v1206_v30  ;;  %v1208_v34 = vshll.u32 %v1199_v15, %v1206_v30 }
 0x348   :  { %v1209_v52 = vshrl.u32 %v1191_v62, %v1207_v63  ;;  %v1212_v35 = vadd.s32 127, %v1211_v33 }
 0x34a   :  { %v1210_v20 = vor.u32 %v1209_v52, %v1208_v34  ;;  %v1213_v36 = vshll.u32 %v1212_v35, 23 }
 0x34c   :  { %v1214_v21 = vor.u32 4788187, %v1213_v36  ;;  %v1217_v38 = vcvt.s32.f32 %v1210_v20 }
 0x34e   :  { %v1215_v37 = vand.u32 2147483647, %v1214_v21 }
 0x350   :  { %v1218_v39 = vmul.f32 %v1217_v38, %v1215_v37 }
 0x352   :  { %v1219_v40 = vxor.u32 2147483648, %v1218_v39 }
 0x354   :  { %v1220_v41 = vsel %vm1099_vm0, %v1219_v40, %v1218_v39 }
 0x355   :  { %v1223_v31 = vsel %vm1098_vm1, %v2893_v42, %v1220_v41 }
 0x356   :  { %v1225_v45 = vmul.f32 %v1223_v31, %v1223_v31 }
 0x358   :  { %v1226_v46 = vmul.f32 -0.001358992, %v1225_v45  ;;  %v1233_v49 = vmul.f32 -0.00019511016, %v1225_v45 }
 0x35a   :  { %v1227_v51 = vadd.f32 0.041655596, %v1226_v46  ;;  %v1234_v53 = vadd.f32 0.008332121, %v1233_v49 }
 0x35c   :  { %v1228_v43 = vmul.f32 %v1227_v51, %v1225_v45  ;;  %v1235_v55 = vmul.f32 %v1234_v53, %v1225_v45 }
 0x35e   :  { %v1229_v57 = vadd.f32 -0.4999988, %v1228_v43  ;;  %v1236_v58 = vadd.f32 -0.16666654, %v1235_v55 }
 0x360   :  { %v1230_v32 = vmul.f32 %v1229_v57, %v1225_v45  ;;  %v1237_v1 = vmul.f32 %v1236_v58, %v1225_v45 }
 0x362   :  { %v1231_v3 = vadd.f32 1.0, %v1230_v32  ;;  %v1238_v16 = vadd.f32 1.0, %v1237_v1 }
 0x364   :  { %v1239_v4 = vmul.f32 %v1238_v16, %v1223_v31  ;;  %v1248_v47 = vxor.u32 2147483648, %v1231_v3 }
 0x366   :  { %v1245_v6 = vxor.u32 2147483648, %v1239_v4  ;;  %v1249_v10 = vsel %vm1247_vm3, %v1248_v47, %v1239_v4 }
 0x368   :  { %v1246_v9 = vsel %vm1244_vm2, %v1231_v3, %v1245_v6 }
 0x369   :  { %v1250_v12 = vsel %vm1243_vm4, %v1246_v9, %v1249_v10 }
 0x36a   :  { %v1251_v18 = vsel %vm1240_vm5, nan, %v1250_v12 }
 0x36b   :  { %v1255_v60 = vmul.f32 %v2517_v7, %v1251_v18 }
 0x36d   :  { %1258 = vrot.lane.b32.xlu1 %v1255_v60, %s2690_s2  ;;  %1256 = vrot.lane.b32.xlu0 %v1255_v60, %s2689_s27 }
 0x3df   :  { %v1257_v61 = vpop.permute.xlu0 %1256  ;;  %v1259_v23 = vpop.permute.xlu1 %1258 }
 0x3e0   :  { %v1260_v22 = vadd.f32 %v1257_v61, %v1255_v60 }
 0x3e2   :  { %v1261_v24 = vadd.f32 %v1260_v22, %v1259_v23 }
 0x3e4   :  { %v2956_v13 = vadd.f32 %v2518_v19, %v1261_v24 }
 0x3e6   :  { %v1267_v25 = vand.u32 2139095040, %v2956_v13  ;;  %v1264_v42 = vand.u32 2147483647, %v2956_v13  ;;  %vm1266_vm2 = vcmp.lt.s32.totalorder %v2956_v13, 0 }
 0x3e8   :  { %v1268_v26 = vshrl.u32 %v1267_v25, 23  ;;  %v1271_v27 = vand.u32 8388607, %v1264_v42  ;;  %vm1265_vm3 = vcmp.le.f32.partialorder %v1264_v42, 0.7853982 }
 0x3ea   :  { %v2412_v15 = vadd.s32 4294967169, %v1268_v26  ;;  %v1272_v62 = vor.u32 8388608, %v1271_v27 }
 0x3ec   :  { %v1274_v17 = vadd.s32 1, %v2412_v15  ;;  %v2974_v31 = vshll.u32 %v1272_v62, 8 }
 0x3ee   :  { %vm1275_vm6 = vcmp.gt.s32.totalorder %v1274_v17, 0  ;;  %v1313_v57 = vand.u32 65535, %v2974_v31  ;;  %v1314_v59 = vshrl.u32 %v2974_v31, 16 }
 0x3ef   :  { %v1276_v28 = vsel %vm1275_vm6, %v1274_v17, 0 }
 0x3f0   :  { %v1278_v29 = vand.u32 31, %v1276_v28  ;;  %v2962_v63 = vshrl.u32 %v1276_v28, 5 }
 0x3f2   :  { %v1279_v30 = vsub.s32 32, %v1278_v29  ;;  %v1290_v33 = vshll.u32 %v2694_v8, %v1278_v29  ;;  %v1293_v34 = vshll.u32 %v2695_v11, %v1278_v29  ;;  %v1281_v20 = vshll.u32 %v2691_v0, %v1278_v29 }
 0x3f3   :  { %v1284_v21 = vshll.u32 %v2692_v2, %v1278_v29  ;;  %v1287_v38 = vshll.u32 %v2693_v5, %v1278_v29  ;;  %vm1299_vm7 = vcmp.lt.s32.totalorder %v2962_v63, 4  ;;  %vm1296_vm8 = vcmp.lt.s32.totalorder %v2962_v63, 1 }
 0x3f4   :  { %v1291_v52 = vshrl.u32 %v2695_v11, %v1279_v30  ;;  %v1294_v35 = vshrl.u32 %v2696_v14, %v1279_v30  ;;  %v1282_v36 = vshrl.u32 %v2692_v2, %v1279_v30  ;;  %v1285_v37 = vshrl.u32 %v2693_v5, %v1279_v30 }
 0x3f5   :  { %v1288_v39 = vshrl.u32 %v2694_v8, %v1279_v30  ;;  %vm1298_vm9 = vcmp.lt.s32.totalorder %v2962_v63, 3  ;;  %vm1297_vm10 = vcmp.lt.s32.totalorder %v2962_v63, 2  ;;  %v1280_v17 = vshrl.u32 %v2691_v0, %v1279_v30 }
 0x3f6   :  { %v1292_v40 = vor.u32 %v1291_v52, %v1290_v33  ;;  %v1295_v41 = vor.u32 %v1294_v35, %v1293_v34  ;;  %v1283_v44 = vor.u32 %v1282_v36, %v1281_v20  ;;  %v1286_v45 = vor.u32 %v1285_v37, %v1284_v21 }
 0x3f7   :  { %v1289_v46 = vor.u32 %v1288_v39, %v1287_v38 }
 0x3f8   :  { %v1305_v49 = vsel %vm1299_vm7, %v1292_v40, 920167782  ;;  %v1309_v50 = vsel %vm1299_vm7, %v1295_v41, 1326507024  ;;  %v1304_v51 = vsel %vm1296_vm8, %v1283_v44, %v1286_v45  ;;  %v1300_v34 = vsel %vm1296_vm8, %v1280_v17, %v1283_v44 }
 0x3f9   :  { %v1306_v53 = vsel %vm1298_vm9, %v1289_v46, %v1305_v49  ;;  %v1308_v54 = vsel %vm1296_vm8, %v1286_v45, %v1289_v46  ;;  %v1310_v55 = vsel %vm1298_vm9, %v1292_v40, %v1309_v50  ;;  %v1301_v25 = vsel %vm1299_vm7, %v1289_v46, 2102212464 }
 0x3fa   :  { %v1307_v43 = vsel %vm1297_vm10, %v1304_v51, %v1306_v53  ;;  %v1311_v58 = vsel %vm1297_vm10, %v1308_v54, %v1310_v55  ;;  %v1302_v52 = vsel %vm1298_vm9, %v1286_v45, %v1301_v25  ;;  %vm1407_vm7 = vweird.f32 %v2956_v13 }
 0x3fb   :  { %v1337_v32 = vand.u32 65535, %v1307_v43  ;;  %v1338_v1 = vshrl.u32 %v1307_v43, 16  ;;  %v1315_v3 = vand.u32 65535, %v1311_v58  ;;  %v1316_v16 = vshrl.u32 %v1311_v58, 16 }
 0x3fc   :  { %v1303_v38 = vsel %vm1297_vm10, %v1300_v34, %v1302_v52 }
 0x3fd   :  { %v1340_v56 = vmul.u32 %v1338_v1, %v1313_v57  ;;  %v1341_v4 = vmul.u32 %v1337_v32, %v1314_v59  ;;  %v1318_v47 = vmul.u32 %v1316_v16, %v1313_v57  ;;  %v1319_v6 = vmul.u32 %v1315_v3, %v1314_v59 }
 0x3fe   :  { %v1339_v7 = vmul.u32 %v1337_v32, %v1313_v57  ;;  %v1317_v10 = vmul.u32 %v1315_v3, %v1313_v57  ;;  %v1342_v18 = vmul.u32 %v1338_v1, %v1314_v59  ;;  %v1320_v60 = vmul.u32 %v1316_v16, %v1314_v59 }
 0x3ff   :  { %v1343_v9 = vshll.u32 %v1340_v56, 16  ;;  %v1321_v12 = vshll.u32 %v1318_v47, 16  ;;  %v1345_v61 = vshll.u32 %v1341_v4, 16  ;;  %v1323_v22 = vshll.u32 %v1319_v6, 16 }
 0x400   :  { %v1344_v62 = vshrl.u32 %v1340_v56, 16  ;;  %v1322_v35 = vshrl.u32 %v1318_v47, 16  ;;  %v1346_v36 = vshrl.u32 %v1341_v4, 16  ;;  %v1324_v37 = vshrl.u32 %v1319_v6, 16 }
 0x401   :  { %vm1347_vm11 = vc.u32 %v1339_v7, %v1343_v9  ;;  %v1349_v19 = vadd.s32 %v1343_v9, %v1339_v7  ;;  %vm1325_vm12 = vc.u32 %v1317_v10, %v1321_v12  ;;  %v1327_v23 = vadd.s32 %v1321_v12, %v1317_v10 }
 0x402   :  { %v1348_v24 = vsel %vm1347_vm11, 1, %v2697_v48  ;;  %v1326_v26 = vsel %vm1325_vm12, 1, %v2697_v48  ;;  %v1357_v49 = vmul.u32 %v2974_v31, %v1303_v38 }
 0x403   :  { %v1350_v15 = vadd.s32 %v1348_v24, %v1342_v18  ;;  %vm1351_vm13 = vc.u32 %v1349_v19, %v1345_v61  ;;  %v1328_v27 = vadd.s32 %v1326_v26, %v1320_v60  ;;  %vm1329_vm14 = vc.u32 %v1327_v23, %v1323_v22 }
 0x404   :  { %v1352_v28 = vsel %vm1351_vm13, 1, %v2697_v48  ;;  %v1330_v29 = vsel %vm1329_vm14, 1, %v2697_v48  ;;  %v1353_v41 = vadd.s32 %v1349_v19, %v1345_v61 }
 0x405   :  { %v1354_v33 = vadd.s32 %v1352_v28, %v1350_v15  ;;  %v1332_v20 = vadd.s32 %v1330_v29, %v1328_v27 }
 0x407   :  { %v1355_v21 = vadd.s32 %v1354_v33, %v1344_v62  ;;  %v1333_v30 = vadd.s32 %v1332_v20, %v1322_v35 }
 0x409   :  { %v1356_v39 = vadd.s32 %v1355_v21, %v1346_v36  ;;  %v1334_v40 = vadd.s32 %v1333_v30, %v1324_v37  ;;  %v2519_v21 = vld [vmem:[#allocation7 + $0x4] ss:$0 sm:$0xff] }
 0x40b   :  { %v1360_v46 = vadd.s32 1, %v1356_v39  ;;  %vm1359_vm15 = vc.u32 %v1334_v40, %v1353_v41  ;;  %v1358_v59 = vadd.s32 %v1353_v41, %v1334_v40 }
 0x40d   :  { %v1361_v44 = vsel %vm1359_vm15, %v1360_v46, %v1356_v39 }
 0x40e   :  { %v1362_v50 = vadd.s32 %v1361_v44, %v1357_v49  ;;  %v2520_v49 = vld [vmem:[#allocation8 + $0x4] ss:$0 sm:$0xff] }
 0x410   :  { %v1363_v51 = vadd.s32 536870912, %v1362_v50 }
 0x412   :  { %v1364_v45 = vshrl.u32 %v1363_v51, 30 }
 0x414   :  { %v1365_v53 = vshll.u32 %v1364_v45, 30  ;;  %v1388_v18 = vsub.s32 4, %v1364_v45 }
 0x416   :  { %v1366_v54 = vsub.s32 %v1362_v50, %v1365_v53  ;;  %v1389_v23 = vsel %vm1266_vm2, %v1388_v18, %v1364_v45 }
 0x417   :  { %v1391_v26 = vsel %vm1265_vm3, 0, %v1389_v23 }
 0x418   :  { %vm1367_vm0 = vcmp.lt.s32.totalorder %v1366_v54, 0  ;;  %v1368_v43 = vsub.s32 0, %v1366_v54  ;;  %v1408_v29 = vadd.s32 3, %v1391_v26 }
 0x41a   :  { %v1369_v55 = vsel %vm1367_vm0, %v1368_v43, %v1366_v54  ;;  %v1409_v52 = vand.u32 3, %v1408_v29 }
 0x41b   :  { %v1370_v57 = vclz %v1369_v55 }
 0x41c   :  { %vm1411_vm4 = vcmp.eq.s32.totalorder %v1409_v52, 0  ;;  %vm1414_vm5 = vcmp.eq.s32.totalorder %v1409_v52, 2  ;;  %vm1410_vm6 = vcmp.lt.s32.totalorder %v1409_v52, 2 }
 0x41d   :  { %v2413_v58 = vadd.s32 4294967294, %v1370_v57 }
 0x41f   :  { %vm2414_vm1 = vcmp.lt.s32.totalorder %v2413_v58, 0 }
 0x420   :  { %v1373_v63 = vsel %vm2414_vm1, 0, %v2413_v58 }
 0x421   :  { %v1374_v32 = vsub.s32 32, %v1373_v63  ;;  %v1378_v1 = vsub.s32 4294967266, %v1373_v63  ;;  %v1375_v3 = vshll.u32 %v1366_v54, %v1373_v63 }
 0x423   :  { %v1376_v16 = vshrl.u32 %v1358_v59, %v1374_v32  ;;  %v1379_v31 = vadd.s32 127, %v1378_v1 }
 0x425   :  { %v1377_v56 = vor.u32 %v1376_v16, %v1375_v3  ;;  %v1380_v4 = vshll.u32 %v1379_v31, 23 }
 0x427   :  { %v1381_v47 = vor.u32 4788187, %v1380_v4  ;;  %v1384_v7 = vcvt.s32.f32 %v1377_v56 }
 0x429   :  { %v1382_v6 = vand.u32 2147483647, %v1381_v47 }
 0x42b   :  { %v1385_v9 = vmul.f32 %v1384_v7, %v1382_v6 }
 0x42d   :  { %v1386_v10 = vxor.u32 2147483648, %v1385_v9 }
 0x42f   :  { %v1387_v12 = vsel %vm1266_vm2, %v1386_v10, %v1385_v9 }
 0x430   :  { %v1390_v60 = vsel %vm1265_vm3, %v2956_v13, %v1387_v12 }
 0x431   :  { %v1392_v61 = vmul.f32 %v1390_v60, %v1390_v60 }
 0x433   :  { %v1393_v19 = vmul.f32 -0.001358992, %v1392_v61  ;;  %v1400_v22 = vmul.f32 -0.00019511016, %v1392_v61 }
 0x435   :  { %v1394_v24 = vadd.f32 0.041655596, %v1393_v19  ;;  %v1401_v25 = vadd.f32 0.008332121, %v1400_v22 }
 0x437   :  { %v1395_v15 = vmul.f32 %v1394_v24, %v1392_v61  ;;  %v1402_v17 = vmul.f32 %v1401_v25, %v1392_v61 }
 0x439   :  { %v1396_v27 = vadd.f32 -0.4999988, %v1395_v15  ;;  %v1403_v28 = vadd.f32 -0.16666654, %v1402_v17 }
 0x43b   :  { %v1397_v62 = vmul.f32 %v1396_v27, %v1392_v61  ;;  %v1404_v33 = vmul.f32 %v1403_v28, %v1392_v61 }
 0x43d   :  { %v1398_v34 = vadd.f32 1.0, %v1397_v62  ;;  %v1405_v42 = vadd.f32 1.0, %v1404_v33 }
 0x43f   :  { %v1406_v35 = vmul.f32 %v1405_v42, %v1390_v60  ;;  %v1415_v20 = vxor.u32 2147483648, %v1398_v34 }
 0x441   :  { %v1412_v36 = vxor.u32 2147483648, %v1406_v35  ;;  %v1416_v30 = vsel %vm1414_vm5, %v1415_v20, %v1406_v35 }
 0x443   :  { %v1413_v37 = vsel %vm1411_vm4, %v1398_v34, %v1412_v36 }
 0x444   :  { %v1417_v38 = vsel %vm1410_vm6, %v1413_v37, %v1416_v30 }
 0x445   :  { %v1418_v39 = vsel %vm1407_vm7, nan, %v1417_v38 }
 0x446   :  { %v1422_v40 = vmul.f32 %v2519_v21, %v1418_v39 }
 0x448   :  { %1425 = vrot.lane.b32.xlu0 %v1422_v40, %s2690_s2  ;;  %1423 = vrot.lane.b32.xlu2 %v1422_v40, %s2689_s27 }
 0x4a2   :  { %v1424_v41 = vpop.permute.xlu2 %1423 }
 0x4a3   :  { %v1427_v46 = vadd.f32 %v1424_v41, %v1422_v40 }
 0x4ba   :  { %v1426_v44 = vpop.permute.xlu0 %1425 }
 0x4bb   :  { %v1428_v50 = vadd.f32 %v1427_v46, %v1426_v44 }
 0x4bd   :  { %v3019_v51 = vadd.f32 %v2520_v49, %v1428_v50 }
 0x4bf   :  { %v1434_v45 = vand.u32 2139095040, %v3019_v51  ;;  %v1431_v13 = vand.u32 2147483647, %v3019_v51  ;;  %vm1433_vm4 = vcmp.lt.s32.totalorder %v3019_v51, 0 }
 0x4c1   :  { %v1435_v53 = vshrl.u32 %v1434_v45, 23  ;;  %v1438_v55 = vand.u32 8388607, %v1431_v13  ;;  %vm1432_vm5 = vcmp.le.f32.partialorder %v1431_v13, 0.7853982 }
 0x4c3   :  { %v2415_v54 = vadd.s32 4294967169, %v1435_v53  ;;  %v1439_v59 = vor.u32 8388608, %v1438_v55 }
 0x4c5   :  { %v1441_v43 = vadd.s32 1, %v2415_v54  ;;  %v3038_v19 = vshll.u32 %v1439_v59, 8 }
 0x4c7   :  { %vm1442_vm8 = vcmp.gt.s32.totalorder %v1441_v43, 0  ;;  %v1480_v28 = vand.u32 65535, %v3038_v19  ;;  %v1481_v29 = vshrl.u32 %v3038_v19, 16 }
 0x4c8   :  { %v1443_v57 = vsel %vm1442_vm8, %v1441_v43, 0 }
 0x4c9   :  { %v1445_v58 = vand.u32 31, %v1443_v57  ;;  %v3025_v32 = vshrl.u32 %v1443_v57, 5 }
 0x4cb   :  { %v1446_v63 = vsub.s32 32, %v1445_v58  ;;  %v1448_v1 = vshll.u32 %v2691_v0, %v1445_v58  ;;  %v1451_v3 = vshll.u32 %v2692_v2, %v1445_v58  ;;  %v1454_v56 = vshll.u32 %v2693_v5, %v1445_v58 }
 0x4cc   :  { %v1457_v47 = vshll.u32 %v2694_v8, %v1445_v58  ;;  %v1460_v7 = vshll.u32 %v2695_v11, %v1445_v58  ;;  %vm1463_vm9 = vcmp.lt.s32.totalorder %v3025_v32, 1  ;;  %vm1466_vm10 = vcmp.lt.s32.totalorder %v3025_v32, 4 }
 0x4cd   :  { %v1449_v16 = vshrl.u32 %v2692_v2, %v1446_v63  ;;  %v1452_v31 = vshrl.u32 %v2693_v5, %v1446_v63  ;;  %v1455_v4 = vshrl.u32 %v2694_v8, %v1446_v63  ;;  %v1458_v6 = vshrl.u32 %v2695_v11, %v1446_v63 }
 0x4ce   :  { %v1461_v9 = vshrl.u32 %v2696_v14, %v1446_v63  ;;  %vm1465_vm11 = vcmp.lt.s32.totalorder %v3025_v32, 3  ;;  %vm1464_vm12 = vcmp.lt.s32.totalorder %v3025_v32, 2  ;;  %v1447_v57 = vshrl.u32 %v2691_v0, %v1446_v63 }
 0x4cf   :  { %v1450_v10 = vor.u32 %v1449_v16, %v1448_v1  ;;  %v1453_v12 = vor.u32 %v1452_v31, %v1451_v3  ;;  %v1456_v18 = vor.u32 %v1455_v4, %v1454_v56  ;;  %v1459_v60 = vor.u32 %v1458_v6, %v1457_v47 }
 0x4d0   :  { %v1462_v61 = vor.u32 %v1461_v9, %v1460_v7 }
 0x4d1   :  { %v1471_v22 = vsel %vm1463_vm9, %v1450_v10, %v1453_v12  ;;  %v1475_v23 = vsel %vm1463_vm9, %v1453_v12, %v1456_v18  ;;  %v1472_v24 = vsel %vm1466_vm10, %v1459_v60, 920167782  ;;  %v1468_v54 = vsel %vm1466_vm10, %v1456_v18, 2102212464 }
 0x4d2   :  { %v1476_v25 = vsel %vm1466_vm10, %v1462_v61, 1326507024  ;;  %v1473_v26 = vsel %vm1465_vm11, %v1456_v18, %v1472_v24  ;;  %v1467_v31 = vsel %vm1463_vm9, %v1447_v57, %v1450_v10  ;;  %v1469_v56 = vsel %vm1465_vm11, %v1453_v12, %v1468_v54 }
 0x4d3   :  { %v1477_v15 = vsel %vm1465_vm11, %v1459_v60, %v1476_v25  ;;  %v1474_v17 = vsel %vm1464_vm12, %v1471_v22, %v1473_v26  ;;  %v1470_v63 = vsel %vm1464_vm12, %v1467_v31, %v1469_v56  ;;  %vm1574_vm9 = vweird.f32 %v3019_v51 }
 0x4d4   :  { %v1478_v27 = vsel %vm1464_vm12, %v1475_v23, %v1477_v15  ;;  %v1504_v34 = vand.u32 65535, %v1474_v17  ;;  %v1505_v42 = vshrl.u32 %v1474_v17, 16  ;;  %v1524_v22 = vmul.u32 %v3038_v19, %v1470_v63 }
 0x4d5   :  { %v1482_v62 = vand.u32 65535, %v1478_v27  ;;  %v1483_v33 = vshrl.u32 %v1478_v27, 16 }
 0x4d6   :  { %v1507_v20 = vmul.u32 %v1505_v42, %v1480_v28  ;;  %v1508_v36 = vmul.u32 %v1504_v34, %v1481_v29  ;;  %v1506_v38 = vmul.u32 %v1504_v34, %v1480_v28  ;;  %v1509_v46 = vmul.u32 %v1505_v42, %v1481_v29 }
 0x4d7   :  { %v1485_v52 = vmul.u32 %v1483_v33, %v1480_v28  ;;  %v1486_v35 = vmul.u32 %v1482_v62, %v1481_v29  ;;  %v1484_v21 = vmul.u32 %v1482_v62, %v1480_v28  ;;  %v1487_v30 = vmul.u32 %v1483_v33, %v1481_v29 }
 0x4d8   :  { %v1510_v39 = vshll.u32 %v1507_v20, 16  ;;  %v1512_v44 = vshll.u32 %v1508_v36, 16  ;;  %v1511_v3 = vshrl.u32 %v1507_v20, 16  ;;  %v1513_v6 = vshrl.u32 %v1508_v36, 16 }
 0x4d9   :  { %v1488_v37 = vshll.u32 %v1485_v52, 16  ;;  %v1490_v40 = vshll.u32 %v1486_v35, 16  ;;  %v1489_v58 = vshrl.u32 %v1485_v52, 16  ;;  %v1491_v4 = vshrl.u32 %v1486_v35, 16 }
 0x4da   :  { %vm1514_vm14 = vc.u32 %v1506_v38, %v1510_v39  ;;  %v1516_v50 = vadd.s32 %v1510_v39, %v1506_v38 }
 0x4db   :  { %vm1492_vm13 = vc.u32 %v1484_v21, %v1488_v37  ;;  %v1494_v41 = vadd.s32 %v1488_v37, %v1484_v21  ;;  %v1515_v53 = vsel %vm1514_vm14, 1, %v2697_v48 }
 0x4dc   :  { %v1493_v49 = vsel %vm1492_vm13, 1, %v2697_v48  ;;  %v1517_v55 = vadd.s32 %v1515_v53, %v1509_v46  ;;  %vm1518_vm0 = vc.u32 %v1516_v50, %v1512_v44  ;;  %v1520_v18 = vadd.s32 %v1516_v50, %v1512_v44 }
 0x4dd   :  { %v1495_v45 = vadd.s32 %v1493_v49, %v1487_v30  ;;  %vm1496_vm15 = vc.u32 %v1494_v41, %v1490_v40  ;;  %v1519_v1 = vsel %vm1518_vm0, 1, %v2697_v48 }
 0x4de   :  { %v1497_v43 = vsel %vm1496_vm15, 1, %v2697_v48  ;;  %v1521_v16 = vadd.s32 %v1519_v1, %v1517_v55 }
 0x4df   :  { %v1499_v59 = vadd.s32 %v1497_v43, %v1495_v45 }
 0x4e0   :  { %v1522_v7 = vadd.s32 %v1521_v16, %v1511_v3 }
 0x4e1   :  { %v1500_v47 = vadd.s32 %v1499_v59, %v1489_v58 }
 0x4e2   :  { %v1523_v60 = vadd.s32 %v1522_v7, %v1513_v6 }
 0x4e3   :  { %v1501_v9 = vadd.s32 %v1500_v47, %v1491_v4  ;;  %v2521_v47 = vld [vmem:[#allocation7 + $0x5] ss:$0 sm:$0xff] }
 0x4e4   :  { %v1527_v61 = vadd.s32 1, %v1523_v60 }
 0x4e5   :  { %vm1526_vm1 = vc.u32 %v1501_v9, %v1520_v18  ;;  %v1525_v32 = vadd.s32 %v1520_v18, %v1501_v9 }
 0x4e6   :  { %v1528_v23 = vsel %vm1526_vm1, %v1527_v61, %v1523_v60  ;;  %v2522_v61 = vld [vmem:[#allocation8 + $0x5] ss:$0 sm:$0xff] }
 0x4e7   :  { %v1529_v24 = vadd.s32 %v1528_v23, %v1524_v22 }
 0x4e9   :  { %v1530_v10 = vadd.s32 536870912, %v1529_v24 }
 0x4eb   :  { %v1531_v25 = vshrl.u32 %v1530_v10, 30 }
 0x4ed   :  { %v1532_v26 = vshll.u32 %v1531_v25, 30  ;;  %v1555_v39 = vsub.s32 4, %v1531_v25 }
 0x4ef   :  { %v1533_v12 = vsub.s32 %v1529_v24, %v1532_v26  ;;  %v1556_v44 = vsel %vm1433_vm4, %v1555_v39, %v1531_v25 }
 0x4f0   :  { %v1558_v53 = vsel %vm1432_vm5, 0, %v1556_v44 }
 0x4f1   :  { %vm1534_vm2 = vcmp.lt.s32.totalorder %v1533_v12, 0  ;;  %v1535_v15 = vsub.s32 0, %v1533_v12  ;;  %v1575_v58 = vadd.s32 3, %v1558_v53 }
 0x4f3   :  { %v1536_v17 = vsel %vm1534_vm2, %v1535_v15, %v1533_v12  ;;  %v1576_v16 = vand.u32 3, %v1575_v58 }
 0x4f4   :  { %v1537_v27 = vclz %v1536_v17 }
 0x4f5   :  { %vm1578_vm6 = vcmp.eq.s32.totalorder %v1576_v16, 0  ;;  %vm1581_vm7 = vcmp.eq.s32.totalorder %v1576_v16, 2  ;;  %vm1577_vm8 = vcmp.lt.s32.totalorder %v1576_v16, 2 }
 0x4f6   :  { %v2416_v28 = vadd.s32 4294967294, %v1537_v27 }
 0x4f8   :  { %vm2417_vm3 = vcmp.lt.s32.totalorder %v2416_v28, 0 }
 0x4f9   :  { %v1540_v29 = vsel %vm2417_vm3, 0, %v2416_v28 }
 0x4fa   :  { %v1541_v62 = vsub.s32 32, %v1540_v29  ;;  %v1545_v33 = vsub.s32 4294967266, %v1540_v29  ;;  %v1542_v34 = vshll.u32 %v1533_v12, %v1540_v29 }
 0x4fc   :  { %v1543_v42 = vshrl.u32 %v1525_v32, %v1541_v62  ;;  %v1546_v52 = vadd.s32 127, %v1545_v33 }
 0x4fe   :  { %v1544_v19 = vor.u32 %v1543_v42, %v1542_v34  ;;  %v1547_v35 = vshll.u32 %v1546_v52, 23 }
 0x500   :  { %v1548_v20 = vor.u32 4788187, %v1547_v35  ;;  %v1551_v21 = vcvt.s32.f32 %v1544_v19 }
 0x502   :  { %v1549_v36 = vand.u32 2147483647, %v1548_v20 }
 0x504   :  { %v1552_v37 = vmul.f32 %v1551_v21, %v1549_v36 }
 0x506   :  { %v1553_v30 = vxor.u32 2147483648, %v1552_v37 }
 0x508   :  { %v1554_v38 = vsel %vm1433_vm4, %v1553_v30, %v1552_v37 }
 0x509   :  { %v1557_v40 = vsel %vm1432_vm5, %v3019_v51, %v1554_v38 }
 0x50a   :  { %v1559_v41 = vmul.f32 %v1557_v40, %v1557_v40 }
 0x50c   :  { %v1560_v46 = vmul.f32 -0.001358992, %v1559_v41  ;;  %v1567_v49 = vmul.f32 -0.00019511016, %v1559_v41 }
 0x50e   :  { %v1561_v50 = vadd.f32 0.041655596, %v1560_v46  ;;  %v1568_v45 = vadd.f32 0.008332121, %v1567_v49 }
 0x510   :  { %v1562_v54 = vmul.f32 %v1561_v50, %v1559_v41  ;;  %v1569_v43 = vmul.f32 %v1568_v45, %v1559_v41 }
 0x512   :  { %v1563_v55 = vadd.f32 -0.4999988, %v1562_v54  ;;  %v1570_v57 = vadd.f32 -0.16666654, %v1569_v43 }
 0x514   :  { %v1564_v59 = vmul.f32 %v1563_v55, %v1559_v41  ;;  %v1571_v1 = vmul.f32 %v1570_v57, %v1559_v41 }
 0x516   :  { %v1565_v3 = vadd.f32 1.0, %v1564_v59  ;;  %v1572_v13 = vadd.f32 1.0, %v1571_v1 }
 0x518   :  { %v1573_v31 = vmul.f32 %v1572_v13, %v1557_v40  ;;  %v1582_v56 = vxor.u32 2147483648, %v1565_v3 }
 0x51a   :  { %v1579_v4 = vxor.u32 2147483648, %v1573_v31  ;;  %v1583_v7 = vsel %vm1581_vm7, %v1582_v56, %v1573_v31 }
 0x51c   :  { %v1580_v6 = vsel %vm1578_vm6, %v1565_v3, %v1579_v4 }
 0x51d   :  { %v1584_v9 = vsel %vm1577_vm8, %v1580_v6, %v1583_v7 }
 0x51e   :  { %v1585_v18 = vsel %vm1574_vm9, nan, %v1584_v9 }
 0x51f   :  { %v1589_v63 = vmul.f32 %v2521_v47, %v1585_v18 }
 0x521   :  { %1592 = vrot.lane.b32.xlu2 %v1589_v63, %s2690_s2  ;;  %1590 = vrot.lane.b32.xlu1 %v1589_v63, %s2689_s27 }
 0x57b   :  { %v1593_v23 = vpop.permute.xlu2 %1592 }
 0x593   :  { %v1591_v60 = vpop.permute.xlu1 %1590 }
 0x594   :  { %v1594_v22 = vadd.f32 %v1591_v60, %v1589_v63 }
 0x596   :  { %v1595_v24 = vadd.f32 %v1594_v22, %v1593_v23 }
 0x598   :  { %v3082_v10 = vadd.f32 %v2522_v61, %v1595_v24 }
 0x59a   :  { %v1601_v25 = vand.u32 2139095040, %v3082_v10  ;;  %v1598_v51 = vand.u32 2147483647, %v3082_v10  ;;  %vm1600_vm6 = vcmp.lt.s32.totalorder %v3082_v10, 0 }
 0x59c   :  { %v1602_v26 = vshrl.u32 %v1601_v25, 23  ;;  %v1605_v17 = vand.u32 8388607, %v1598_v51  ;;  %vm1599_vm7 = vcmp.le.f32.partialorder %v1598_v51, 0.7853982 }
 0x59e   :  { %v2418_v12 = vadd.s32 4294967169, %v1602_v26  ;;  %v1606_v32 = vor.u32 8388608, %v1605_v17 }
 0x5a0   :  { %v1608_v15 = vadd.s32 1, %v2418_v12  ;;  %v3100_v40 = vshll.u32 %v1606_v32, 8 }
 0x5a2   :  { %vm1609_vm10 = vcmp.gt.s32.totalorder %v1608_v15, 0  ;;  %v1647_v55 = vand.u32 65535, %v3100_v40  ;;  %v1648_v58 = vshrl.u32 %v3100_v40, 16 }
 0x5a3   :  { %v1610_v27 = vsel %vm1609_vm10, %v1608_v15, 0 }
 0x5a4   :  { %v1612_v28 = vand.u32 31, %v1610_v27  ;;  %v3088_v62 = vshrl.u32 %v1610_v27, 5 }
 0x5a6   :  { %v1613_v29 = vsub.s32 32, %v1612_v28  ;;  %v1624_v33 = vshll.u32 %v2694_v8, %v1612_v28  ;;  %v1627_v34 = vshll.u32 %v2695_v11, %v1612_v28  ;;  %v1615_v19 = vshll.u32 %v2691_v0, %v1612_v28 }
 0x5a7   :  { %v1618_v20 = vshll.u32 %v2692_v2, %v1612_v28  ;;  %v1621_v21 = vshll.u32 %v2693_v5, %v1612_v28  ;;  %vm1633_vm11 = vcmp.lt.s32.totalorder %v3088_v62, 4  ;;  %vm1630_vm12 = vcmp.lt.s32.totalorder %v3088_v62, 1 }
 0x5a8   :  { %v1625_v42 = vshrl.u32 %v2695_v11, %v1613_v29  ;;  %v1628_v52 = vshrl.u32 %v2696_v14, %v1613_v29  ;;  %v1616_v35 = vshrl.u32 %v2692_v2, %v1613_v29  ;;  %v1619_v36 = vshrl.u32 %v2693_v5, %v1613_v29 }
 0x5a9   :  { %v1622_v37 = vshrl.u32 %v2694_v8, %v1613_v29  ;;  %vm1632_vm13 = vcmp.lt.s32.totalorder %v3088_v62, 3  ;;  %vm1631_vm14 = vcmp.lt.s32.totalorder %v3088_v62, 2  ;;  %v1614_v15 = vshrl.u32 %v2691_v0, %v1613_v29 }
 0x5aa   :  { %v1626_v30 = vor.u32 %v1625_v42, %v1624_v33  ;;  %v1629_v38 = vor.u32 %v1628_v52, %v1627_v34  ;;  %v1617_v39 = vor.u32 %v1616_v35, %v1615_v19  ;;  %v1620_v41 = vor.u32 %v1619_v36, %v1618_v20 }
 0x5ab   :  { %v1623_v46 = vor.u32 %v1622_v37, %v1621_v21 }
 0x5ac   :  { %v1639_v49 = vsel %vm1633_vm11, %v1626_v30, 920167782  ;;  %v1643_v44 = vsel %vm1633_vm11, %v1629_v38, 1326507024  ;;  %v1638_v50 = vsel %vm1630_vm12, %v1617_v39, %v1620_v41  ;;  %v1634_v34 = vsel %vm1630_vm12, %v1614_v15, %v1617_v39 }
 0x5ad   :  { %v1640_v45 = vsel %vm1632_vm13, %v1623_v46, %v1639_v49  ;;  %v1642_v53 = vsel %vm1630_vm12, %v1620_v41, %v1623_v46  ;;  %v1644_v43 = vsel %vm1632_vm13, %v1626_v30, %v1643_v44  ;;  %v1635_v25 = vsel %vm1633_vm11, %v1623_v46, 2102212464 }
 0x5ae   :  { %v1641_v54 = vsel %vm1631_vm14, %v1638_v50, %v1640_v45  ;;  %v1645_v57 = vsel %vm1631_vm14, %v1642_v53, %v1644_v43  ;;  %v1636_v42 = vsel %vm1632_vm13, %v1620_v41, %v1635_v25  ;;  %vm1741_vm11 = vweird.f32 %v3082_v10 }
 0x5af   :  { %v1671_v59 = vand.u32 65535, %v1641_v54  ;;  %v1672_v1 = vshrl.u32 %v1641_v54, 16  ;;  %v1649_v3 = vand.u32 65535, %v1645_v57  ;;  %v1650_v13 = vshrl.u32 %v1645_v57, 16 }
 0x5b0   :  { %v1637_v21 = vsel %vm1631_vm14, %v1634_v34, %v1636_v42 }
 0x5b1   :  { %v1674_v16 = vmul.u32 %v1672_v1, %v1647_v55  ;;  %v1675_v31 = vmul.u32 %v1671_v59, %v1648_v58  ;;  %v1652_v56 = vmul.u32 %v1650_v13, %v1647_v55  ;;  %v1653_v4 = vmul.u32 %v1649_v3, %v1648_v58 }
 0x5b2   :  { %v1673_v47 = vmul.u32 %v1671_v59, %v1647_v55  ;;  %v1651_v7 = vmul.u32 %v1649_v3, %v1647_v55  ;;  %v1676_v18 = vmul.u32 %v1672_v1, %v1648_v58  ;;  %v1654_v63 = vmul.u32 %v1650_v13, %v1648_v58 }
 0x5b3   :  { %v1677_v6 = vshll.u32 %v1674_v16, 16  ;;  %v1655_v9 = vshll.u32 %v1652_v56, 16  ;;  %v1679_v60 = vshll.u32 %v1675_v31, 16  ;;  %v1657_v22 = vshll.u32 %v1653_v4, 16 }
 0x5b4   :  { %v1678_v32 = vshrl.u32 %v1674_v16, 16  ;;  %v1656_v52 = vshrl.u32 %v1652_v56, 16  ;;  %v1680_v35 = vshrl.u32 %v1675_v31, 16  ;;  %v1658_v36 = vshrl.u32 %v1653_v4, 16 }
 0x5b5   :  { %vm1681_vm15 = vc.u32 %v1673_v47, %v1677_v6  ;;  %v1683_v61 = vadd.s32 %v1677_v6, %v1673_v47  ;;  %vm1659_vm0 = vc.u32 %v1651_v7, %v1655_v9  ;;  %v1661_v23 = vadd.s32 %v1655_v9, %v1651_v7 }
 0x5b6   :  { %v1682_v24 = vsel %vm1681_vm15, 1, %v2697_v48  ;;  %v1660_v26 = vsel %vm1659_vm0, 1, %v2697_v48  ;;  %v1691_v49 = vmul.u32 %v3100_v40, %v1637_v21 }
 0x5b7   :  { %v1684_v12 = vadd.s32 %v1682_v24, %v1676_v18  ;;  %vm1685_vm1 = vc.u32 %v1683_v61, %v1679_v60  ;;  %v1662_v17 = vadd.s32 %v1660_v26, %v1654_v63  ;;  %vm1663_vm2 = vc.u32 %v1661_v23, %v1657_v22 }
 0x5b8   :  { %v1686_v27 = vsel %vm1685_vm1, 1, %v2697_v48  ;;  %v1664_v28 = vsel %vm1663_vm2, 1, %v2697_v48  ;;  %v1687_v38 = vadd.s32 %v1683_v61, %v1679_v60 }
 0x5b9   :  { %v1688_v33 = vadd.s32 %v1686_v27, %v1684_v12  ;;  %v1666_v19 = vadd.s32 %v1664_v28, %v1662_v17 }
 0x5bb   :  { %v1689_v20 = vadd.s32 %v1688_v33, %v1678_v32  ;;  %v1667_v29 = vadd.s32 %v1666_v19, %v1656_v52 }
 0x5bd   :  { %v1690_v37 = vadd.s32 %v1689_v20, %v1680_v35  ;;  %v1668_v30 = vadd.s32 %v1667_v29, %v1658_v36  ;;  %v2523_v20 = vld [vmem:[#allocation7 + $0x6] ss:$0 sm:$0xff] }
 0x5bf   :  { %v1694_v46 = vadd.s32 1, %v1690_v37  ;;  %vm1693_vm3 = vc.u32 %v1668_v30, %v1687_v38  ;;  %v1692_v58 = vadd.s32 %v1687_v38, %v1668_v30 }
 0x5c1   :  { %v1695_v39 = vsel %vm1693_vm3, %v1694_v46, %v1690_v37  ;;  %v2524_v46 = vld [vmem:[#allocation8 + $0x6] ss:$0 sm:$0xff] }
 0x5c2   :  { %v1696_v44 = vadd.s32 %v1695_v39, %v1691_v49 }
 0x5c4   :  { %v1697_v50 = vadd.s32 536870912, %v1696_v44 }
 0x5c6   :  { %v1698_v41 = vshrl.u32 %v1697_v50, 30 }
 0x5c8   :  { %v1699_v45 = vshll.u32 %v1698_v41, 30  ;;  %v1722_v18 = vsub.s32 4, %v1698_v41 }
 0x5ca   :  { %v1700_v53 = vsub.s32 %v1696_v44, %v1699_v45  ;;  %v1723_v23 = vsel %vm1600_vm6, %v1722_v18, %v1698_v41 }
 0x5cb   :  { %v1725_v26 = vsel %vm1599_vm7, 0, %v1723_v23 }
 0x5cc   :  { %vm1701_vm4 = vcmp.lt.s32.totalorder %v1700_v53, 0  ;;  %v1702_v54 = vsub.s32 0, %v1700_v53  ;;  %v1742_v28 = vadd.s32 3, %v1725_v26 }
 0x5ce   :  { %v1703_v43 = vsel %vm1701_vm4, %v1702_v54, %v1700_v53  ;;  %v1743_v42 = vand.u32 3, %v1742_v28 }
 0x5cf   :  { %v1704_v55 = vclz %v1703_v43 }
 0x5d0   :  { %vm1745_vm8 = vcmp.eq.s32.totalorder %v1743_v42, 0  ;;  %vm1748_vm9 = vcmp.eq.s32.totalorder %v1743_v42, 2  ;;  %vm1744_vm10 = vcmp.lt.s32.totalorder %v1743_v42, 2 }
 0x5d1   :  { %v2419_v57 = vadd.s32 4294967294, %v1704_v55 }
 0x5d3   :  { %vm2420_vm5 = vcmp.lt.s32.totalorder %v2419_v57, 0 }
 0x5d4   :  { %v1707_v62 = vsel %vm2420_vm5, 0, %v2419_v57 }
 0x5d5   :  { %v1708_v59 = vsub.s32 32, %v1707_v62  ;;  %v1712_v1 = vsub.s32 4294967266, %v1707_v62  ;;  %v1709_v3 = vshll.u32 %v1700_v53, %v1707_v62 }
 0x5d7   :  { %v1710_v13 = vshrl.u32 %v1692_v58, %v1708_v59  ;;  %v1713_v40 = vadd.s32 127, %v1712_v1 }
 0x5d9   :  { %v1711_v16 = vor.u32 %v1710_v13, %v1709_v3  ;;  %v1714_v31 = vshll.u32 %v1713_v40, 23 }
 0x5db   :  { %v1715_v56 = vor.u32 4788187, %v1714_v31  ;;  %v1718_v47 = vcvt.s32.f32 %v1711_v16 }
 0x5dd   :  { %v1716_v4 = vand.u32 2147483647, %v1715_v56 }
 0x5df   :  { %v1719_v6 = vmul.f32 %v1718_v47, %v1716_v4 }
 0x5e1   :  { %v1720_v7 = vxor.u32 2147483648, %v1719_v6 }
 0x5e3   :  { %v1721_v9 = vsel %vm1600_vm6, %v1720_v7, %v1719_v6 }
 0x5e4   :  { %v1724_v63 = vsel %vm1599_vm7, %v3082_v10, %v1721_v9 }
 0x5e5   :  { %v1726_v60 = vmul.f32 %v1724_v63, %v1724_v63 }
 0x5e7   :  { %v1727_v61 = vmul.f32 -0.001358992, %v1726_v60  ;;  %v1734_v22 = vmul.f32 -0.00019511016, %v1726_v60 }
 0x5e9   :  { %v1728_v24 = vadd.f32 0.041655596, %v1727_v61  ;;  %v1735_v25 = vadd.f32 0.008332121, %v1734_v22 }
 0x5eb   :  { %v1729_v12 = vmul.f32 %v1728_v24, %v1726_v60  ;;  %v1736_v15 = vmul.f32 %v1735_v25, %v1726_v60 }
 0x5ed   :  { %v1730_v17 = vadd.f32 -0.4999988, %v1729_v12  ;;  %v1737_v27 = vadd.f32 -0.16666654, %v1736_v15 }
 0x5ef   :  { %v1731_v32 = vmul.f32 %v1730_v17, %v1726_v60  ;;  %v1738_v33 = vmul.f32 %v1737_v27, %v1726_v60 }
 0x5f1   :  { %v1732_v34 = vadd.f32 1.0, %v1731_v32  ;;  %v1739_v51 = vadd.f32 1.0, %v1738_v33 }
 0x5f3   :  { %v1740_v52 = vmul.f32 %v1739_v51, %v1724_v63  ;;  %v1749_v19 = vxor.u32 2147483648, %v1732_v34 }
 0x5f5   :  { %v1746_v35 = vxor.u32 2147483648, %v1740_v52  ;;  %v1750_v29 = vsel %vm1748_vm9, %v1749_v19, %v1740_v52 }
 0x5f7   :  { %v1747_v36 = vsel %vm1745_vm8, %v1732_v34, %v1746_v35 }
 0x5f8   :  { %v1751_v21 = vsel %vm1744_vm10, %v1747_v36, %v1750_v29 }
 0x5f9   :  { %v1752_v37 = vsel %vm1741_vm11, nan, %v1751_v21 }
 0x5fa   :  { %v1756_v30 = vmul.f32 %v2523_v20, %v1752_v37 }
 0x5fc   :  { %1759 = vrot.lane.b32.xlu1 %v1756_v30, %s2690_s2  ;;  %1757 = vrot.lane.b32.xlu0 %v1756_v30, %s2689_s27 }
 0x66e   :  { %v1758_v38 = vpop.permute.xlu0 %1757  ;;  %v1760_v39 = vpop.permute.xlu1 %1759 }
 0x66f   :  { %v1761_v49 = vadd.f32 %v1758_v38, %v1756_v30 }
 0x671   :  { %v1762_v44 = vadd.f32 %v1761_v49, %v1760_v39 }
 0x673   :  { %v3145_v50 = vadd.f32 %v2524_v46, %v1762_v44 }
 0x675   :  { %v1768_v41 = vand.u32 2139095040, %v3145_v50  ;;  %v1765_v10 = vand.u32 2147483647, %v3145_v50  ;;  %vm1767_vm8 = vcmp.lt.s32.totalorder %v3145_v50, 0 }
 0x677   :  { %v1769_v45 = vshrl.u32 %v1768_v41, 23  ;;  %v1772_v43 = vand.u32 8388607, %v1765_v10  ;;  %vm1766_vm9 = vcmp.le.f32.partialorder %v1765_v10, 0.7853982 }
 0x679   :  { %v2421_v53 = vadd.s32 4294967169, %v1769_v45  ;;  %v1773_v58 = vor.u32 8388608, %v1772_v43 }
 0x67b   :  { %v1775_v54 = vadd.s32 1, %v2421_v53  ;;  %v3163_v63 = vshll.u32 %v1773_v58, 8 }
 0x67d   :  { %vm1776_vm12 = vcmp.gt.s32.totalorder %v1775_v54, 0  ;;  %v1814_v17 = vand.u32 65535, %v3163_v63  ;;  %v1815_v28 = vshrl.u32 %v3163_v63, 16 }
 0x67e   :  { %v1777_v55 = vsel %vm1776_vm12, %v1775_v54, 0 }
 0x67f   :  { %v1779_v57 = vand.u32 31, %v1777_v55  ;;  %v3151_v59 = vshrl.u32 %v1777_v55, 5 }
 0x681   :  { %v1780_v62 = vsub.s32 32, %v1779_v57  ;;  %v1791_v1 = vshll.u32 %v2694_v8, %v1779_v57  ;;  %v1794_v3 = vshll.u32 %v2695_v11, %v1779_v57  ;;  %v1782_v16 = vshll.u32 %v2691_v0, %v1779_v57 }
 0x682   :  { %v1785_v56 = vshll.u32 %v2692_v2, %v1779_v57  ;;  %v1788_v47 = vshll.u32 %v2693_v5, %v1779_v57  ;;  %vm1800_vm13 = vcmp.lt.s32.totalorder %v3151_v59, 4  ;;  %vm1797_vm14 = vcmp.lt.s32.totalorder %v3151_v59, 1 }
 0x683   :  { %v1792_v13 = vshrl.u32 %v2695_v11, %v1780_v62  ;;  %v1795_v40 = vshrl.u32 %v2696_v14, %v1780_v62  ;;  %v1783_v31 = vshrl.u32 %v2692_v2, %v1780_v62  ;;  %v1786_v4 = vshrl.u32 %v2693_v5, %v1780_v62 }
 0x684   :  { %v1789_v6 = vshrl.u32 %v2694_v8, %v1780_v62  ;;  %vm1799_vm15 = vcmp.lt.s32.totalorder %v3151_v59, 3  ;;  %vm1798_vm0 = vcmp.lt.s32.totalorder %v3151_v59, 2  ;;  %v1781_v54 = vshrl.u32 %v2691_v0, %v1780_v62 }
 0x685   :  { %v1793_v7 = vor.u32 %v1792_v13, %v1791_v1  ;;  %v1796_v9 = vor.u32 %v1795_v40, %v1794_v3  ;;  %v1784_v18 = vor.u32 %v1783_v31, %v1782_v16  ;;  %v1787_v60 = vor.u32 %v1786_v4, %v1785_v56 }
 0x686   :  { %v1790_v61 = vor.u32 %v1789_v6, %v1788_v47 }
 0x687   :  { %v1806_v22 = vsel %vm1800_vm13, %v1793_v7, 920167782  ;;  %v1810_v23 = vsel %vm1800_vm13, %v1796_v9, 1326507024  ;;  %v1805_v24 = vsel %vm1797_vm14, %v1784_v18, %v1787_v60  ;;  %v1801_v3 = vsel %vm1797_vm14, %v1781_v54, %v1784_v18 }
 0x688   :  { %v1807_v25 = vsel %vm1799_vm15, %v1790_v61, %v1806_v22  ;;  %v1809_v26 = vsel %vm1797_vm14, %v1787_v60, %v1790_v61  ;;  %v1811_v15 = vsel %vm1799_vm15, %v1793_v7, %v1810_v23  ;;  %v1802_v41 = vsel %vm1800_vm13, %v1790_v61, 2102212464 }
 0x689   :  { %v1808_v12 = vsel %vm1798_vm0, %v1805_v24, %v1807_v25  ;;  %v1812_v27 = vsel %vm1798_vm0, %v1809_v26, %v1811_v15  ;;  %v1803_v13 = vsel %vm1799_vm15, %v1787_v60, %v1802_v41  ;;  %vm1908_vm13 = vweird.f32 %v3145_v50 }
 0x68a   :  { %v1838_v32 = vand.u32 65535, %v1808_v12  ;;  %v1839_v33 = vshrl.u32 %v1808_v12, 16  ;;  %v1816_v34 = vand.u32 65535, %v1812_v27  ;;  %v1817_v51 = vshrl.u32 %v1812_v27, 16 }
 0x68b   :  { %v1804_v47 = vsel %vm1798_vm0, %v1801_v3, %v1803_v13 }
 0x68c   :  { %v1841_v42 = vmul.u32 %v1839_v33, %v1814_v17  ;;  %v1842_v52 = vmul.u32 %v1838_v32, %v1815_v28  ;;  %v1819_v19 = vmul.u32 %v1817_v51, %v1814_v17  ;;  %v1820_v35 = vmul.u32 %v1816_v34, %v1815_v28 }
 0x68d   :  { %v1840_v20 = vmul.u32 %v1838_v32, %v1814_v17  ;;  %v1818_v29 = vmul.u32 %v1816_v34, %v1814_v17  ;;  %v1843_v37 = vmul.u32 %v1839_v33, %v1815_v28  ;;  %v1821_v30 = vmul.u32 %v1817_v51, %v1815_v28 }
 0x68e   :  { %v1844_v36 = vshll.u32 %v1841_v42, 16  ;;  %v1822_v21 = vshll.u32 %v1819_v19, 16  ;;  %v1846_v38 = vshll.u32 %v1842_v52, 16  ;;  %v1824_v49 = vshll.u32 %v1820_v35, 16 }
 0x68f   :  { %v1845_v58 = vshrl.u32 %v1841_v42, 16  ;;  %v1823_v40 = vshrl.u32 %v1819_v19, 16  ;;  %v1847_v31 = vshrl.u32 %v1842_v52, 16  ;;  %v1825_v4 = vshrl.u32 %v1820_v35, 16 }
 0x690   :  { %vm1848_vm1 = vc.u32 %v1840_v20, %v1844_v36  ;;  %v1850_v46 = vadd.s32 %v1844_v36, %v1840_v20  ;;  %vm1826_vm2 = vc.u32 %v1818_v29, %v1822_v21  ;;  %v1828_v39 = vadd.s32 %v1822_v21, %v1818_v29 }
 0x691   :  { %v1849_v44 = vsel %vm1848_vm1, 1, %v2697_v48  ;;  %v1827_v45 = vsel %vm1826_vm2, 1, %v2697_v48  ;;  %v1858_v22 = vmul.u32 %v3163_v63, %v1804_v47 }
 0x692   :  { %v1851_v53 = vadd.s32 %v1849_v44, %v1843_v37  ;;  %vm1852_vm3 = vc.u32 %v1850_v46, %v1846_v38  ;;  %v1829_v43 = vadd.s32 %v1827_v45, %v1821_v30  ;;  %vm1830_vm4 = vc.u32 %v1828_v39, %v1824_v49 }
 0x693   :  { %v1853_v55 = vsel %vm1852_vm3, 1, %v2697_v48  ;;  %v1831_v57 = vsel %vm1830_vm4, 1, %v2697_v48  ;;  %v1854_v9 = vadd.s32 %v1850_v46, %v1846_v38 }
 0x694   :  { %v1855_v1 = vadd.s32 %v1853_v55, %v1851_v53  ;;  %v1833_v16 = vadd.s32 %v1831_v57, %v1829_v43 }
 0x696   :  { %v1856_v56 = vadd.s32 %v1855_v1, %v1845_v58  ;;  %v1834_v62 = vadd.s32 %v1833_v16, %v1823_v40 }
 0x698   :  { %v1857_v6 = vadd.s32 %v1856_v56, %v1847_v31  ;;  %v1835_v7 = vadd.s32 %v1834_v62, %v1825_v4  ;;  %v2525_v56 = vld [vmem:[#allocation7 + $0x7] ss:$0 sm:$0xff] }
 0x69a   :  { %v1861_v61 = vadd.s32 1, %v1857_v6  ;;  %vm1860_vm5 = vc.u32 %v1835_v7, %v1854_v9  ;;  %v1859_v28 = vadd.s32 %v1854_v9, %v1835_v7  ;;  %v2102_v9 = vld [vmem:[#allocation10 + $0x78] sm:$0xff] }
 0x69b   :  { %2107 = vmatpush.msra.mxu0 %v2102_v9 }
 0x69c   :  { %v1862_v18 = vsel %vm1860_vm5, %v1861_v61, %v1857_v6  ;;  %v2101_v61 = vld [vmem:[#allocation10 + $0x70] sm:$0xff] }
 0x69d   :  { %v1863_v23 = vadd.s32 %v1862_v18, %v1858_v22  ;;  %v2100_v22 = vld [vmem:[#allocation10 + $0x68] sm:$0xff]  ;;  %2108 = vmatpush.msra.mxu0 %v2101_v61  ;;  %v2099_v18 = vld [vmem:[#allocation10 + $0x60] sm:$0xff] }
 0x69f   :  { %v1864_v24 = vadd.s32 536870912, %v1863_v23  ;;  %2109 = vmatpush.msra.mxu0 %v2100_v22 }
 0x6a1   :  { %v1865_v60 = vshrl.u32 %v1864_v24, 30  ;;  %v2098_v24 = vld [vmem:[#allocation10 + $0x58] sm:$0xff]  ;;  %2110 = vmatpush.msra.mxu0 %v2099_v18 }
 0x6a3   :  { %v1866_v25 = vshll.u32 %v1865_v60, 30  ;;  %v1889_v37 = vsub.s32 4, %v1865_v60  ;;  %2111 = vmatpush.msra.mxu0 %v2098_v24 }
 0x6a5   :  { %v1867_v26 = vsub.s32 %v1863_v23, %v1866_v25  ;;  %v1890_v39 = vsel %vm1767_vm8, %v1889_v37, %v1865_v60  ;;  %v2526_v25 = vld [vmem:[#allocation8 + $0x7] ss:$0 sm:$0xff]  ;;  %v2088_v37 = vld [vmem:[#allocation10 + $0x8] sm:$0xff] }
 0x6a6   :  { %v1892_v45 = vsel %vm1766_vm9, 0, %v1890_v39 }
 0x6a7   :  { %vm1868_vm6 = vcmp.lt.s32.totalorder %v1867_v26, 0  ;;  %v1869_v12 = vsub.s32 0, %v1867_v26  ;;  %v1909_v57 = vadd.s32 3, %v1892_v45 }
 0x6a9   :  { %v1870_v15 = vsel %vm1868_vm6, %v1869_v12, %v1867_v26  ;;  %v1910_v13 = vand.u32 3, %v1909_v57 }
 0x6aa   :  { %v1871_v17 = vclz %v1870_v15  ;;  %v2096_v15 = vld [vmem:[#allocation10 + $0x48] sm:$0xff] }
 0x6ab   :  { %vm1912_vm10 = vcmp.eq.s32.totalorder %v1910_v13, 0  ;;  %vm1915_vm11 = vcmp.eq.s32.totalorder %v1910_v13, 2  ;;  %vm1911_vm12 = vcmp.lt.s32.totalorder %v1910_v13, 2 }
 0x6ac   :  { %v2422_v27 = vadd.s32 4294967294, %v1871_v17 }
 0x6ae   :  { %vm2423_vm7 = vcmp.lt.s32.totalorder %v2422_v27, 0 }
 0x6af   :  { %v1874_v59 = vsel %vm2423_vm7, 0, %v2422_v27  ;;  %v2095_v27 = vld [vmem:[#allocation10 + $0x40] sm:$0xff] }
 0x6b0   :  { %v1875_v32 = vsub.s32 32, %v1874_v59  ;;  %v1879_v33 = vsub.s32 4294967266, %v1874_v59  ;;  %v1876_v34 = vshll.u32 %v1867_v26, %v1874_v59 }
 0x6b2   :  { %v1877_v51 = vshrl.u32 %v1859_v28, %v1875_v32  ;;  %v1880_v63 = vadd.s32 127, %v1879_v33  ;;  %v2094_v28 = vld [vmem:[#allocation10 + $0x38] sm:$0xff]  ;;  %v2093_v33 = vld [vmem:[#allocation10 + $0x30] sm:$0xff] }
 0x6b4   :  { %v1878_v42 = vor.u32 %v1877_v51, %v1876_v34  ;;  %v1881_v52 = vshll.u32 %v1880_v63, 23  ;;  %v2092_v51 = vld [vmem:[#allocation10 + $0x28] sm:$0xff] }
 0x6b6   :  { %v1882_v19 = vor.u32 4788187, %v1881_v52  ;;  %v1885_v20 = vcvt.s32.f32 %v1878_v42  ;;  %v2091_v52 = vld [vmem:[#allocation10 + $0x20] sm:$0xff] }
 0x6b8   :  { %v1883_v35 = vand.u32 2147483647, %v1882_v19  ;;  %v2090_v19 = vld [vmem:[#allocation10 + $0x18] sm:$0xff] }
 0x6ba   :  { %v1886_v36 = vmul.f32 %v1885_v20, %v1883_v35 }
 0x6bc   :  { %v1887_v29 = vxor.u32 2147483648, %v1886_v36 }
 0x6be   :  { %v1888_v21 = vsel %vm1767_vm8, %v1887_v29, %v1886_v36  ;;  %v2089_v29 = vld [vmem:[#allocation10 + $0x10] sm:$0xff] }
 0x6bf   :  { %v1891_v30 = vsel %vm1766_vm9, %v3145_v50, %v1888_v21  ;;  %v2097_v50 = vld [vmem:[#allocation10 + $0x50] sm:$0xff] }
 0x6c0   :  { %v1893_v38 = vmul.f32 %v1891_v30, %v1891_v30  ;;  %2112 = vmatpush.msra.mxu0 %v2097_v50 }
 0x6c2   :  { %v1894_v46 = vmul.f32 -0.001358992, %v1893_v38  ;;  %v1901_v49 = vmul.f32 -0.00019511016, %v1893_v38  ;;  %2113 = vmatpush.msra.mxu0 %v2096_v15 }
 0x6c4   :  { %v1895_v44 = vadd.f32 0.041655596, %v1894_v46  ;;  %v1902_v41 = vadd.f32 0.008332121, %v1901_v49  ;;  %2114 = vmatpush.msra.mxu0 %v2095_v27 }
 0x6c6   :  { %v1896_v53 = vmul.f32 %v1895_v44, %v1893_v38  ;;  %v1903_v54 = vmul.f32 %v1902_v41, %v1893_v38  ;;  %2115 = vmatpush.msra.mxu0 %v2094_v28  ;;  %v2087_v41 = vld [vmem:[#allocation10] sm:$0xff] }
 0x6c8   :  { %v1897_v43 = vadd.f32 -0.4999988, %v1896_v53  ;;  %v1904_v55 = vadd.f32 -0.16666654, %v1903_v54  ;;  %2116 = vmatpush.msra.mxu0 %v2093_v33 }
 0x6ca   :  { %v1898_v58 = vmul.f32 %v1897_v43, %v1893_v38  ;;  %v1905_v1 = vmul.f32 %v1904_v55, %v1893_v38  ;;  %2117 = vmatpush.msra.mxu0 %v2092_v51 }
 0x6cc   :  { %v1899_v3 = vadd.f32 1.0, %v1898_v58  ;;  %v1906_v10 = vadd.f32 1.0, %v1905_v1  ;;  %2118 = vmatpush.msra.mxu0 %v2091_v52 }
 0x6ce   :  { %v1907_v40 = vmul.f32 %v1906_v10, %v1891_v30  ;;  %v1916_v16 = vxor.u32 2147483648, %v1899_v3  ;;  %2119 = vmatpush.msra.mxu0 %v2090_v19 }
 0x6d0   :  { %v1913_v31 = vxor.u32 2147483648, %v1907_v40  ;;  %v1917_v62 = vsel %vm1915_vm11, %v1916_v16, %v1907_v40  ;;  %2120 = vmatpush.msra.mxu0 %v2089_v29 }
 0x6d2   :  { %v1914_v4 = vsel %vm1912_vm10, %v1899_v3, %v1913_v31  ;;  %2121 = vmatpush.msra.mxu0 %v2088_v37 }
 0x6d3   :  { %v1918_v47 = vsel %vm1911_vm12, %v1914_v4, %v1917_v62 }
 0x6d4   :  { %v1919_v6 = vsel %vm1908_vm13, nan, %v1918_v47  ;;  %2122 = vmatpush.msra.mxu0 %v2087_v41 }
 0x6d5   :  { %v1923_v7 = vmul.f32 %v2525_v56, %v1919_v6 }
 0x6d7   :  { %1926 = vrot.lane.b32.xlu0 %v1923_v7, %s2690_s2  ;;  %1924 = vrot.lane.b32.xlu2 %v1923_v7, %s2689_s27 }
 0x731   :  { %v1925_v23 = vpop.permute.xlu2 %1924 }
 0x732   :  { %v1928_v60 = vadd.f32 %v1925_v23, %v1923_v7 }
 0x749   :  { %v1927_v26 = vpop.permute.xlu0 %1926 }
 0x74a   :  { %v1929_v12 = vadd.f32 %v1928_v60, %v1927_v26 }
 0x74c   :  { %v3208_v17 = vadd.f32 %v2526_v25, %v1929_v12 }
 0x74e   :  { %v1935_v59 = vand.u32 2139095040, %v3208_v17  ;;  %v1932_v63 = vand.u32 2147483647, %v3208_v17  ;;  %vm1934_vm10 = vcmp.lt.s32.totalorder %v3208_v17, 0 }
 0x750   :  { %v1936_v32 = vshrl.u32 %v1935_v59, 23  ;;  %v1939_v35 = vand.u32 8388607, %v1932_v63  ;;  %vm1933_vm11 = vcmp.le.f32.partialorder %v1932_v63, 0.7853982 }
 0x752   :  { %v2424_v34 = vadd.s32 4294967169, %v1936_v32  ;;  %v1940_v30 = vor.u32 8388608, %v1939_v35 }
 0x754   :  { %v1942_v42 = vadd.s32 1, %v2424_v34  ;;  %v3233_v1 = vshll.u32 %v1940_v30, 8 }
 0x756   :  { %vm1943_vm14 = vcmp.gt.s32.totalorder %v1942_v42, 0  ;;  %v1981_v56 = vand.u32 65535, %v3233_v1  ;;  %v1982_v62 = vshrl.u32 %v3233_v1, 16 }
 0x757   :  { %v1944_v20 = vsel %vm1943_vm14, %v1942_v42, 0 }
 0x758   :  { %v1946_v36 = vand.u32 31, %v1944_v20  ;;  %v3216_v38 = vshrl.u32 %v1944_v20, 5 }
 0x75a   :  { %v3214_v21 = vsub.s32 32, %v1946_v36  ;;  %v1958_v46 = vshll.u32 %v2694_v8, %v1946_v36  ;;  %v1961_v49 = vshll.u32 %v2695_v11, %v1946_v36  ;;  %v1949_v45 = vshll.u32 %v2691_v0, %v1946_v36 }
 0x75b   :  { %v1952_v54 = vshll.u32 %v2692_v2, %v1946_v36  ;;  %v1955_v55 = vshll.u32 %v2693_v5, %v1946_v36  ;;  %vm1967_vm15 = vcmp.lt.s32.totalorder %v3216_v38, 4  ;;  %vm1964_vm0 = vcmp.lt.s32.totalorder %v3216_v38, 1 }
 0x75c   :  { %v1959_v39 = vshrl.u32 %v2695_v11, %v3214_v21  ;;  %v1962_v44 = vshrl.u32 %v2696_v14, %v3214_v21  ;;  %v1950_v53 = vshrl.u32 %v2692_v2, %v3214_v21  ;;  %v1953_v43 = vshrl.u32 %v2693_v5, %v3214_v21 }
 0x75d   :  { %v1956_v11 = vshrl.u32 %v2694_v8, %v3214_v21  ;;  %vm1966_vm1 = vcmp.lt.s32.totalorder %v3216_v38, 3  ;;  %vm1965_vm2 = vcmp.lt.s32.totalorder %v3216_v38, 2  ;;  %v1948_v42 = vshrl.u32 %v2691_v0, %v3214_v21 }
 0x75e   :  { %v1960_v57 = vor.u32 %v1959_v39, %v1958_v46  ;;  %v1963_v58 = vor.u32 %v1962_v44, %v1961_v49  ;;  %v1951_v14 = vor.u32 %v1950_v53, %v1949_v45  ;;  %v1954_v3 = vor.u32 %v1953_v43, %v1952_v54 }
 0x75f   :  { %v1957_v10 = vor.u32 %v1956_v11, %v1955_v55 }
 0x760   :  { %v1973_v2 = vsel %vm1967_vm15, %v1960_v57, 920167782  ;;  %v1977_v13 = vsel %vm1967_vm15, %v1963_v58, 1326507024  ;;  %v1972_v5 = vsel %vm1964_vm0, %v1951_v14, %v1954_v3  ;;  %v1968_v29 = vsel %vm1964_vm0, %v1948_v42, %v1951_v14 }
 0x761   :  { %v1974_v8 = vsel %vm1966_vm1, %v1957_v10, %v1973_v2  ;;  %v1976_v40 = vsel %vm1964_vm0, %v1954_v3, %v1957_v10  ;;  %v1978_v31 = vsel %vm1966_vm1, %v1960_v57, %v1977_v13  ;;  %v1969_v33 = vsel %vm1967_vm15, %v1957_v10, 2102212464 }
 0x762   :  { %v1975_v16 = vsel %vm1965_vm2, %v1972_v5, %v1974_v8  ;;  %v1979_v4 = vsel %vm1965_vm2, %v1976_v40, %v1978_v31  ;;  %v1970_v37 = vsel %vm1966_vm1, %v1954_v3, %v1969_v33  ;;  %vm2075_vm15 = vweird.f32 %v3208_v17 }
 0x763   :  { %v2005_v47 = vand.u32 65535, %v1975_v16  ;;  %v2006_v6 = vshrl.u32 %v1975_v16, 16  ;;  %v1983_v7 = vand.u32 65535, %v1979_v4  ;;  %v1984_v9 = vshrl.u32 %v1979_v4, 16 }
 0x764   :  { %v1971_v21 = vsel %vm1965_vm2, %v1968_v29, %v1970_v37 }
 0x765   :  { %v2008_v61 = vmul.u32 %v2006_v6, %v1981_v56  ;;  %v2009_v22 = vmul.u32 %v2005_v47, %v1982_v62  ;;  %v1986_v18 = vmul.u32 %v1984_v9, %v1981_v56  ;;  %v1987_v23 = vmul.u32 %v1983_v7, %v1982_v62 }
 0x766   :  { %v2007_v24 = vmul.u32 %v2005_v47, %v1981_v56  ;;  %v1985_v25 = vmul.u32 %v1983_v7, %v1981_v56  ;;  %v2010_v26 = vmul.u32 %v2006_v6, %v1982_v62  ;;  %v1988_v12 = vmul.u32 %v1984_v9, %v1982_v62 }
 0x767   :  { %v2011_v60 = vshll.u32 %v2008_v61, 16  ;;  %v1989_v50 = vshll.u32 %v1986_v18, 16  ;;  %v2013_v15 = vshll.u32 %v2009_v22, 16  ;;  %v1991_v59 = vshll.u32 %v1987_v23, 16 }
 0x768   :  { %v2012_v20 = vshrl.u32 %v2008_v61, 16  ;;  %v1990_v30 = vshrl.u32 %v1986_v18, 16  ;;  %v2014_v49 = vshrl.u32 %v2009_v22, 16  ;;  %v1992_v44 = vshrl.u32 %v1987_v23, 16 }
 0x769   :  { %vm2015_vm3 = vc.u32 %v2007_v24, %v2011_v60  ;;  %v2017_v27 = vadd.s32 %v2011_v60, %v2007_v24  ;;  %vm1993_vm4 = vc.u32 %v1985_v25, %v1989_v50  ;;  %v1995_v28 = vadd.s32 %v1989_v50, %v1985_v25 }
 0x76a   :  { %v2016_v32 = vsel %vm2015_vm3, 1, %v2697_v48  ;;  %v1994_v34 = vsel %vm1993_vm4, 1, %v2697_v48  ;;  %v2025_v54 = vmul.u32 %v3233_v1, %v1971_v21 }
 0x76b   :  { %v2018_v51 = vadd.s32 %v2016_v32, %v2010_v26  ;;  %vm2019_vm5 = vc.u32 %v2017_v27, %v2013_v15  ;;  %v1996_v52 = vadd.s32 %v1994_v34, %v1988_v12  ;;  %vm1997_vm6 = vc.u32 %v1995_v28, %v1991_v59 }
 0x76c   :  { %v2020_v19 = vsel %vm2019_vm5, 1, %v2697_v48  ;;  %v1998_v35 = vsel %vm1997_vm6, 1, %v2697_v48  ;;  %v2021_v48 = vadd.s32 %v2017_v27, %v2013_v15 }
 0x76d   :  { %v2022_v36 = vadd.s32 %v2020_v19, %v2018_v51  ;;  %v2000_v46 = vadd.s32 %v1998_v35, %v1996_v52 }
 0x76f   :  { %v2023_v39 = vadd.s32 %v2022_v36, %v2012_v20  ;;  %v2001_v0 = vadd.s32 %v2000_v46, %v1990_v30  ;;  %v2527_v30 = vld [vmem:[%s3289_s6] ss:$0 sm:$0xff] }
 0x771   :  { %v2024_v41 = vadd.s32 %v2023_v39, %v2014_v49  ;;  %v2002_v45 = vadd.s32 %v2001_v0, %v1992_v44 }
 0x773   :  { %v2028_v53 = vadd.s32 1, %v2024_v41  ;;  %vm2027_vm7 = vc.u32 %v2002_v45, %v2021_v48  ;;  %v2026_v5 = vadd.s32 %v2021_v48, %v2002_v45 }
 0x775   :  { %v2029_v43 = vsel %vm2027_vm7, %v2028_v53, %v2024_v41 }
 0x776   :  { %v2030_v55 = vadd.s32 %v2029_v43, %v2025_v54 }
 0x778   :  { %v2031_v11 = vadd.s32 536870912, %v2030_v55 }
 0x77a   :  { %v2032_v57 = vshrl.u32 %v2031_v11, 30 }
 0x77c   :  { %v2033_v58 = vshll.u32 %v2032_v57, 30  ;;  %v2056_v22 = vsub.s32 4, %v2032_v57 }
 0x77e   :  { %v2034_v14 = vsub.s32 %v2030_v55, %v2033_v58  ;;  %v2057_v25 = vsel %vm1934_vm10, %v2056_v22, %v2032_v57 }
 0x77f   :  { %v2059_v12 = vsel %vm1933_vm11, 0, %v2057_v25 }
 0x780   :  { %vm2035_vm8 = vcmp.lt.s32.totalorder %v2034_v14, 0  ;;  %v2036_v3 = vsub.s32 0, %v2034_v14  ;;  %v2076_v32 = vadd.s32 3, %v2059_v12 }
 0x782   :  { %v2037_v10 = vsel %vm2035_vm8, %v2036_v3, %v2034_v14  ;;  %v2077_v42 = vand.u32 3, %v2076_v32 }
 0x783   :  { %v2038_v2 = vclz %v2037_v10 }
 0x784   :  { %vm2079_vm12 = vcmp.eq.s32.totalorder %v2077_v42, 0  ;;  %vm2082_vm13 = vcmp.eq.s32.totalorder %v2077_v42, 2  ;;  %vm2078_vm14 = vcmp.lt.s32.totalorder %v2077_v42, 2 }
 0x785   :  { %v2425_v13 = vadd.s32 4294967294, %v2038_v2 }
 0x787   :  { %vm2426_vm9 = vcmp.lt.s32.totalorder %v2425_v13, 0 }
 0x788   :  { %v2041_v38 = vsel %vm2426_vm9, 0, %v2425_v13 }
 0x789   :  { %v2042_v8 = vsub.s32 32, %v2041_v38  ;;  %v2046_v40 = vsub.s32 4294967266, %v2041_v38  ;;  %v2043_v16 = vshll.u32 %v2034_v14, %v2041_v38 }
 0x78b   :  { %v2044_v31 = vshrl.u32 %v2026_v5, %v2042_v8  ;;  %v2047_v1 = vadd.s32 127, %v2046_v40 }
 0x78d   :  { %v2045_v56 = vor.u32 %v2044_v31, %v2043_v16  ;;  %v2048_v4 = vshll.u32 %v2047_v1, 23 }
 0x78f   :  { %v2049_v62 = vor.u32 4788187, %v2048_v4  ;;  %v2052_v6 = vcvt.s32.f32 %v2045_v56 }
 0x791   :  { %v2050_v47 = vand.u32 2147483647, %v2049_v62 }
 0x793   :  { %v2053_v7 = vmul.f32 %v2052_v6, %v2050_v47 }
 0x795   :  { %v2054_v9 = vxor.u32 2147483648, %v2053_v7 }
 0x797   :  { %v2055_v61 = vsel %vm1934_vm10, %v2054_v9, %v2053_v7 }
 0x798   :  { %v2058_v18 = vsel %vm1933_vm11, %v3208_v17, %v2055_v61 }
 0x799   :  { %v2060_v23 = vmul.f32 %v2058_v18, %v2058_v18 }
 0x79b   :  { %v2061_v24 = vmul.f32 -0.001358992, %v2060_v23  ;;  %v2068_v60 = vmul.f32 -0.00019511016, %v2060_v23 }
 0x79d   :  { %v2062_v50 = vadd.f32 0.041655596, %v2061_v24  ;;  %v2069_v26 = vadd.f32 0.008332121, %v2068_v60 }
 0x79f   :  { %v2063_v15 = vmul.f32 %v2062_v50, %v2060_v23  ;;  %v2070_v27 = vmul.f32 %v2069_v26, %v2060_v23 }
 0x7a1   :  { %v2064_v59 = vadd.f32 -0.4999988, %v2063_v15  ;;  %v2071_v28 = vadd.f32 -0.16666654, %v2070_v27 }
 0x7a3   :  { %v2065_v33 = vmul.f32 %v2064_v59, %v2060_v23  ;;  %v2072_v34 = vmul.f32 %v2071_v28, %v2060_v23 }
 0x7a5   :  { %v2066_v51 = vadd.f32 1.0, %v2065_v33  ;;  %v2073_v63 = vadd.f32 1.0, %v2072_v34 }
 0x7a7   :  { %v2074_v52 = vmul.f32 %v2073_v63, %v2058_v18  ;;  %v2083_v19 = vxor.u32 2147483648, %v2066_v51 }
 0x7a9   :  { %v2080_v35 = vxor.u32 2147483648, %v2074_v52  ;;  %v2084_v36 = vsel %vm2082_vm13, %v2083_v19, %v2074_v52 }
 0x7ab   :  { %v2081_v20 = vsel %vm2079_vm12, %v2066_v51, %v2080_v35 }
 0x7ac   :  { %v2085_v29 = vsel %vm2078_vm14, %v2081_v20, %v2084_v36 }
 0x7ad   :  { %v2086_v37 = vsel %vm2075_vm15, nan, %v2085_v29 }
 0x7ae   :  { %2123 = vmatmul.f32.vlgmr.msra.gmra.mxu0 %v2086_v37 }
 0x82b   :  { %v2124_v46 = vpop.f32.mrf.mxu0 }
 0x82c   :  { %v2125_v49 = vadd.f32 %v2527_v30, %v2124_v46 }
 0x82e   :  { %2127 = vst [vmem:[#allocation11] sm:$0xff] %v2125_v49 }
 0x82f   :  { %2138 = dma.vmem_to_hbm [thread:$0]  %s2134_s8, 128, %s2136_s11, [#allocation4]  }
 0x830   :  { %2678 = dma.done.wait [#allocation4], 128  }
 0x831   :  { %2679 = vsyncadd [#allocation4], 4294967168 }
 0x832   :  { %2143 = vsyncpa [#allocation3], 1 }
 0x833   :  { %2144 = vsyncpa [#allocation6], 1 }
 0x834   :  { %2145 = vsyncpa [#allocation9], 1 }
 0x835   :  { %2146 = vsyncpa [#allocation4], 1 }

// kernel: tpu_custom_call.1
= control target key start
LH: loop header
LB: loop body
LE: loop exit
PB: predicated region body
PF: predicated region fallthrough
CT: control target
= control target key end

     0   :  { %12 = vsyncpa [#allocation3], 0  ;;  %s3283_s0 = inlined_call_operand.hbm [shape: bf16[8,1024], index: 0, kind: input, shape index: {}]   ;;  %s3284_s1 = inlined_call_operand.hbm [shape: bf16[1024,128], index: 1, kind: input, shape index: {}]   ;;  %s3285_s2 = inlined_call_operand.vmem [shape: f32[1,128], index: 2, kind: input, shape index: {}]   ;;  %s3286_s3 = inlined_call_operand.hbm [shape: f32[8,128], index: 3, kind: input, shape index: {}]   ;;  %s3287_s4 = inlined_call_operand.hbm [shape: f32[8,128], index: 4, kind: input, shape index: {}]   ;;  %s3288_s5 = inlined_call_operand.hbm [shape: f32[128,128], index: 5, kind: input, shape index: {}]   ;;  %s3289_s6 = inlined_call_operand.vmem [shape: f32[1,128], index: 6, kind: input, shape index: {}]   ;;  %s3290_s7 = inlined_call_operand.hbm [shape: f32[8,128], index: 7, kind: output, shape index: {}]  }
   0x1   :  { %13 = vsyncpa [#allocation6], 0 }
   0x2   :  { %14 = vsyncpa [#allocation9], 0  ;;  %s31_s26 = sshll.u32 %s3284_s1, 4  ;;  %s32_s26 = int_to_ptr.hbm [resolvable:$true] %s31_s26 }
   0x3   :  { %15 = vsyncpa [#allocation4], 0  ;;  %s2680_s27 = smov [#allocation5]   ;;  %s58_s8 = sshll.u32 %s3287_s4, 4  ;;  %s59_s8 = int_to_ptr.hbm [resolvable:$true] %s58_s8 }
   0x4   :  { %s33_s28 = sshll.u32 %s2680_s27, 4  ;;  %s2681_s9 = smov 64   ;;  %s34_s28 = int_to_ptr.vmem [resolvable:$true] %s33_s28 }
   0x5   :  { %s2682_s10 = smov 4   ;;  %s2683_s11 = smov [#allocation8]  }
   0x6   :  { %39 = dma.hbm_to_vmem [thread:$0]  %s32_s26, 8192, %s34_s28, [#allocation6], %s2681_s9, %s2681_s9, %s2682_s10  }
   0x7   :  { %s60_s12 = sshll.u32 %s2683_s11, 4  ;;  %s21_s15 = sshll.u32 %s3283_s0, 4  ;;  %s61_s12 = int_to_ptr.vmem [resolvable:$true] %s60_s12  ;;  %s22_s15 = int_to_ptr.hbm [resolvable:$true] %s21_s15 }
   0x8   :  { %63 = dma.hbm_to_vmem [thread:$0]  %s59_s8, 128, %s61_s12, [#allocation9]  }
   0x9   :  { %s47_s17 = sshll.u32 %s3286_s3, 4  ;;  %s2684_s18 = smov [#allocation2]   ;;  %s48_s17 = int_to_ptr.hbm [resolvable:$true] %s47_s17 }
   0xa   :  { %s23_s19 = sshll.u32 %s2684_s18, 4  ;;  %s2685_s4 = smov [#allocation7]   ;;  %s24_s19 = int_to_ptr.vmem [resolvable:$true] %s23_s19 }
   0xb   :  { %26 = dma.hbm_to_vmem [thread:$0]  %s22_s15, 512, %s24_s19, [#allocation3]  }
   0xc   :  { %s49_s20 = sshll.u32 %s2685_s4, 4  ;;  %s68_s23 = sshll.u32 %s3288_s5, 4  ;;  %s50_s20 = int_to_ptr.vmem [resolvable:$true] %s49_s20  ;;  %s69_s23 = int_to_ptr.hbm [resolvable:$true] %s68_s23 }
   0xd   :  { %52 = dma.hbm_to_vmem [thread:$0]  %s48_s17, 128, %s50_s20, [#allocation6]  }
   0xe   :  { %s2686_s0 = smov [#allocation10]   ;;  %s2687_s25 = smov 128  }
   0xf   :  { %s70_s24 = sshll.u32 %s2686_s0, 4  ;;  %s2688_s26 = smov 8   ;;  %s71_s24 = int_to_ptr.vmem [resolvable:$true] %s70_s24 }
  0x10   :  { %76 = dma.hbm_to_vmem [thread:$0]  %s69_s23, 2048, %s71_s24, [#allocation9], %s2687_s25, %s2687_s25, %s2688_s26  }
  0x11   :  { %2672 = dma.done.wait [#allocation3], 512  }
  0x12   :  { %2673 = vsyncadd [#allocation3], 4294966784 }
  0x13   :  { %2674 = dma.done.wait [#allocation6], 8320  }
  0x14   :  { %2675 = vsyncadd [#allocation6], 4294958976 }
  0x15   :  { %2676 = dma.done.wait [#allocation9], 2176  }
  0x16   :  { %2677 = vsyncadd [#allocation9], 4294965120  ;;  %v2434_v0 = vld [vmem:[#allocation5 + $0x38] sm:$0xff]  ;;  %v2433_v4 = vld [vmem:[#allocation5 + $0x30] sm:$0xff]  ;;  %s2689_s27 = smov 1   ;;  %s2698_s30 = smov [#allocation11]  }
  0x17   :  { %v2442_v1 = vld [vmem:[#allocation5 + $0x78] sm:$0xff]  ;;  %647 = vmatpush.bf16.msra.mxu0 %v2434_v0  ;;  %v2441_v5 = vld [vmem:[#allocation5 + $0x70] sm:$0xff]  ;;  %v2432_v8 = vld [vmem:[#allocation5 + $0x28] sm:$0xff]  ;;  %s2133_s8 = sshll.u32 %s2698_s30, 4  ;;  %s2135_s11 = sshll.u32 %s3290_s7, 4  ;;  %s2134_s8 = int_to_ptr.vmem [resolvable:$true] %s2133_s8  ;;  %s2136_s11 = int_to_ptr.hbm [resolvable:$true] %s2135_s11 }
  0x18   :  { %v2450_v2 = vld [vmem:[#allocation5 + $0xb8] sm:$0xff]  ;;  %660 = vmatpush.bf16.msra.mxu1 %v2442_v1  ;;  %v2449_v6 = vld [vmem:[#allocation5 + $0xb0] sm:$0xff]  ;;  %v2440_v9 = vld [vmem:[#allocation5 + $0x68] sm:$0xff] }
  0x19   :  { %v2458_v3 = vld [vmem:[#allocation5 + $0xf8] sm:$0xff]  ;;  %673 = vmatpush.bf16.msra.mxu2 %v2450_v2  ;;  %v2457_v7 = vld [vmem:[#allocation5 + $0xf0] sm:$0xff]  ;;  %v2448_v10 = vld [vmem:[#allocation5 + $0xa8] sm:$0xff] }
  0x1a   :  { %686 = vmatpush.bf16.msra.mxu3 %v2458_v3  ;;  %v2456_v11 = vld [vmem:[#allocation5 + $0xe8] sm:$0xff]  ;;  %v2431_v12 = vld [vmem:[#allocation5 + $0x20] sm:$0xff]  ;;  %v2430_v16 = vld [vmem:[#allocation5 + $0x18] sm:$0xff] }
  0x1b   :  { %648 = vmatpush.bf16.msra.mxu0 %v2433_v4  ;;  %v2439_v13 = vld [vmem:[#allocation5 + $0x60] sm:$0xff]  ;;  %v2438_v17 = vld [vmem:[#allocation5 + $0x58] sm:$0xff]  ;;  %v2429_v20 = vld [vmem:[#allocation5 + $0x10] sm:$0xff] }
  0x1c   :  { %661 = vmatpush.bf16.msra.mxu1 %v2441_v5  ;;  %v2447_v14 = vld [vmem:[#allocation5 + $0xa0] sm:$0xff]  ;;  %v2446_v18 = vld [vmem:[#allocation5 + $0x98] sm:$0xff]  ;;  %v2437_v21 = vld [vmem:[#allocation5 + $0x50] sm:$0xff] }
  0x1d   :  { %674 = vmatpush.bf16.msra.mxu2 %v2449_v6  ;;  %v2455_v15 = vld [vmem:[#allocation5 + $0xe0] sm:$0xff]  ;;  %v2454_v19 = vld [vmem:[#allocation5 + $0xd8] sm:$0xff]  ;;  %v2445_v22 = vld [vmem:[#allocation5 + $0x90] sm:$0xff] }
  0x1e   :  { %687 = vmatpush.bf16.msra.mxu3 %v2457_v7  ;;  %v2453_v23 = vld [vmem:[#allocation5 + $0xd0] sm:$0xff]  ;;  %v2428_v24 = vld [vmem:[#allocation5 + $0x8] sm:$0xff]  ;;  %v99_v29 = vld [vmem:[#allocation2] sm:$0xff] }
  0x1f   :  { %649 = vmatpush.bf16.msra.mxu0 %v2432_v8  ;;  %v2436_v25 = vld [vmem:[#allocation5 + $0x48] sm:$0xff]  ;;  %v2427_v30 = vld [vmem:[#allocation5] sm:$0xff]  ;;  %v239_v33 = vunpack.c.l.b16 %v99_v29  ;;  %v240_v37 = vunpack.c.h.b16 %v99_v29  ;;  %v2466_v38 = vld [vmem:[#allocation5 + $0x138] sm:$0xff] }
  0x20   :  { %662 = vmatpush.bf16.msra.mxu1 %v2440_v9  ;;  %v2444_v26 = vld [vmem:[#allocation5 + $0x88] sm:$0xff]  ;;  %v2435_v31 = vld [vmem:[#allocation5 + $0x40] sm:$0xff]  ;;  %v2474_v39 = vld [vmem:[#allocation5 + $0x178] sm:$0xff] }
  0x21   :  { %675 = vmatpush.bf16.msra.mxu2 %v2448_v10  ;;  %v2452_v27 = vld [vmem:[#allocation5 + $0xc8] sm:$0xff]  ;;  %v2443_v34 = vld [vmem:[#allocation5 + $0x80] sm:$0xff]  ;;  %v2482_v40 = vld [vmem:[#allocation5 + $0x1b8] sm:$0xff]  ;;  %v247_v43 = vpack.c.b16 %v239_v33, %v239_v33  ;;  %v248_v45 = vpack.c.b16 %v240_v37, %v240_v37 }
  0x22   :  { %688 = vmatpush.bf16.msra.mxu3 %v2456_v11  ;;  %v100_v28 = vld [vmem:[#allocation2 + $0x8] sm:$0xff]  ;;  %v2451_v35 = vld [vmem:[#allocation5 + $0xc0] sm:$0xff]  ;;  %v2490_v41 = vld [vmem:[#allocation5 + $0x1f8] sm:$0xff] }
  0x23   :  { %650 = vmatpush.bf16.msra.mxu0 %v2431_v12  ;;  %v241_v32 = vunpack.c.l.b16 %v100_v28  ;;  %v242_v36 = vunpack.c.h.b16 %v100_v28  ;;  %v2465_v46 = vld [vmem:[#allocation5 + $0x130] sm:$0xff]  ;;  %v2464_v50 = vld [vmem:[#allocation5 + $0x128] sm:$0xff]  ;;  %v2463_v54 = vld [vmem:[#allocation5 + $0x120] sm:$0xff] }
  0x24   :  { %663 = vmatpush.bf16.msra.mxu1 %v2439_v13  ;;  %v2473_v47 = vld [vmem:[#allocation5 + $0x170] sm:$0xff]  ;;  %v2472_v51 = vld [vmem:[#allocation5 + $0x168] sm:$0xff]  ;;  %v2471_v55 = vld [vmem:[#allocation5 + $0x160] sm:$0xff] }
  0x25   :  { %676 = vmatpush.bf16.msra.mxu2 %v2447_v14  ;;  %v249_v42 = vpack.c.b16 %v241_v32, %v241_v32  ;;  %v250_v44 = vpack.c.b16 %v242_v36, %v242_v36  ;;  %v2481_v48 = vld [vmem:[#allocation5 + $0x1b0] sm:$0xff]  ;;  %v2480_v52 = vld [vmem:[#allocation5 + $0x1a8] sm:$0xff]  ;;  %v2479_v56 = vld [vmem:[#allocation5 + $0x1a0] sm:$0xff] }
  0x26   :  { %689 = vmatpush.bf16.msra.mxu3 %v2455_v15  ;;  %v2489_v49 = vld [vmem:[#allocation5 + $0x1f0] sm:$0xff]  ;;  %v2488_v53 = vld [vmem:[#allocation5 + $0x1e8] sm:$0xff]  ;;  %v2487_v57 = vld [vmem:[#allocation5 + $0x1e0] sm:$0xff] }
  0x27   :  { %651 = vmatpush.bf16.msra.mxu0 %v2430_v16  ;;  %v2462_v58 = vld [vmem:[#allocation5 + $0x118] sm:$0xff]  ;;  %v2461_v62 = vld [vmem:[#allocation5 + $0x110] sm:$0xff]  ;;  %v2460_v2 = vld [vmem:[#allocation5 + $0x108] sm:$0xff] }
  0x28   :  { %664 = vmatpush.bf16.msra.mxu1 %v2438_v17  ;;  %v2470_v59 = vld [vmem:[#allocation5 + $0x158] sm:$0xff]  ;;  %v2469_v63 = vld [vmem:[#allocation5 + $0x150] sm:$0xff]  ;;  %v2468_v3 = vld [vmem:[#allocation5 + $0x148] sm:$0xff] }
  0x29   :  { %677 = vmatpush.bf16.msra.mxu2 %v2446_v18  ;;  %v2478_v60 = vld [vmem:[#allocation5 + $0x198] sm:$0xff]  ;;  %v2477_v0 = vld [vmem:[#allocation5 + $0x190] sm:$0xff]  ;;  %v2476_v5 = vld [vmem:[#allocation5 + $0x188] sm:$0xff] }
  0x2a   :  { %690 = vmatpush.bf16.msra.mxu3 %v2454_v19  ;;  %v2486_v61 = vld [vmem:[#allocation5 + $0x1d8] sm:$0xff]  ;;  %v2485_v1 = vld [vmem:[#allocation5 + $0x1d0] sm:$0xff]  ;;  %v2484_v6 = vld [vmem:[#allocation5 + $0x1c8] sm:$0xff] }
  0x2b   :  { %652 = vmatpush.bf16.msra.mxu0 %v2429_v20  ;;  %v101_v4 = vld [vmem:[#allocation2 + $0x10] sm:$0xff]  ;;  %v102_v7 = vld [vmem:[#allocation2 + $0x18] sm:$0xff]  ;;  %v2459_v10 = vld [vmem:[#allocation5 + $0x100] sm:$0xff] }
  0x2c   :  { %665 = vmatpush.bf16.msra.mxu1 %v2437_v21  ;;  %v243_v8 = vunpack.c.l.b16 %v101_v4  ;;  %v244_v9 = vunpack.c.h.b16 %v101_v4  ;;  %v2467_v11 = vld [vmem:[#allocation5 + $0x140] sm:$0xff]  ;;  %v245_v12 = vunpack.c.l.b16 %v102_v7  ;;  %v246_v13 = vunpack.c.h.b16 %v102_v7 }
  0x2d   :  { %678 = vmatpush.bf16.msra.mxu2 %v2445_v22  ;;  %v2475_v14 = vld [vmem:[#allocation5 + $0x180] sm:$0xff] }
  0x2e   :  { %691 = vmatpush.bf16.msra.mxu3 %v2453_v23  ;;  %v2483_v15 = vld [vmem:[#allocation5 + $0x1c0] sm:$0xff]  ;;  %v251_v16 = vpack.c.b16 %v243_v8, %v243_v8  ;;  %v252_v17 = vpack.c.b16 %v244_v9, %v244_v9  ;;  %v253_v18 = vpack.c.b16 %v245_v12, %v245_v12  ;;  %v254_v19 = vpack.c.b16 %v246_v13, %v246_v13 }
  0x2f   :  { %653 = vmatpush.bf16.msra.mxu0 %v2428_v24  ;;  %v2694_v8 = vmov 2102212464  }
  0x30   :  { %666 = vmatpush.bf16.msra.mxu1 %v2436_v25 }
  0x31   :  { %679 = vmatpush.bf16.msra.mxu2 %v2444_v26  ;;  %v2510_v26 = vld [vmem:[%s3285_s2] ss:$0 sm:$0xff]  ;;  %s2690_s2 = smov 127  }
  0x32   :  { %692 = vmatpush.bf16.msra.mxu3 %v2452_v27 }
  0x33   :  { %654 = vmatpush.bf16.msra.mxu0 %v2427_v30 }
  0x34   :  { %667 = vmatpush.bf16.msra.mxu1 %v2435_v31 }
  0x35   :  { %680 = vmatpush.bf16.msra.mxu2 %v2443_v34 }
  0x36   :  { %693 = vmatpush.bf16.msra.mxu3 %v2451_v35  ;;  %655 = vmatmul.bf16.vlgmr.msra.gmra.mxu0 %v247_v43 }
  0x37   :  { %699 = vmatpush.bf16.msrb.mxu0 %v2466_v38  ;;  %668 = vmatmul.bf16.vlgmr.msra.gmra.mxu1 %v248_v45 }
  0x38   :  { %712 = vmatpush.bf16.msrb.mxu1 %v2474_v39  ;;  %681 = vmatmul.bf16.vlgmr.msra.gmra.mxu2 %v249_v42 }
  0x39   :  { %725 = vmatpush.bf16.msrb.mxu2 %v2482_v40  ;;  %694 = vmatmul.bf16.vlgmr.msra.gmra.mxu3 %v250_v44  ;;  %v2511_v40 = vld [vmem:[#allocation7] ss:$0 sm:$0xff] }
  0x3a   :  { %738 = vmatpush.bf16.msrb.mxu3 %v2490_v41 }
  0x3b   :  { %700 = vmatpush.bf16.msrb.mxu0 %v2465_v46 }
  0x3c   :  { %713 = vmatpush.bf16.msrb.mxu1 %v2473_v47 }
  0x3d   :  { %726 = vmatpush.bf16.msrb.mxu2 %v2481_v48 }
  0x3e   :  { %739 = vmatpush.bf16.msrb.mxu3 %v2489_v49  ;;  %v2512_v49 = vld [vmem:[#allocation8] ss:$0 sm:$0xff] }
  0x3f   :  { %701 = vmatpush.bf16.msrb.mxu0 %v2464_v50 }
  0x40   :  { %714 = vmatpush.bf16.msrb.mxu1 %v2472_v51 }
  0x41   :  { %727 = vmatpush.bf16.msrb.mxu2 %v2480_v52 }
  0x42   :  { %740 = vmatpush.bf16.msrb.mxu3 %v2488_v53 }
  0x43   :  { %702 = vmatpush.bf16.msrb.mxu0 %v2463_v54 }
  0x44   :  { %715 = vmatpush.bf16.msrb.mxu1 %v2471_v55 }
  0x45   :  { %728 = vmatpush.bf16.msrb.mxu2 %v2479_v56 }
  0x46   :  { %741 = vmatpush.bf16.msrb.mxu3 %v2487_v57 }
  0x47   :  { %703 = vmatpush.bf16.msrb.mxu0 %v2462_v58 }
  0x48   :  { %716 = vmatpush.bf16.msrb.mxu1 %v2470_v59 }
  0x49   :  { %729 = vmatpush.bf16.msrb.mxu2 %v2478_v60 }
  0x4a   :  { %742 = vmatpush.bf16.msrb.mxu3 %v2486_v61 }
  0x4b   :  { %704 = vmatpush.bf16.msrb.mxu0 %v2461_v62 }
  0x4c   :  { %717 = vmatpush.bf16.msrb.mxu1 %v2469_v63 }
  0x4d   :  { %730 = vmatpush.bf16.msrb.mxu2 %v2477_v0  ;;  %v2691_v0 = vmov 683565275  }
  0x4e   :  { %743 = vmatpush.bf16.msrb.mxu3 %v2485_v1 }
  0x4f   :  { %705 = vmatpush.bf16.msrb.mxu0 %v2460_v2  ;;  %v2692_v2 = vmov 2475754826  }
  0x50   :  { %718 = vmatpush.bf16.msrb.mxu1 %v2468_v3 }
  0x51   :  { %731 = vmatpush.bf16.msrb.mxu2 %v2476_v5  ;;  %v2693_v5 = vmov 2131351028  }
  0x52   :  { %744 = vmatpush.bf16.msrb.mxu3 %v2484_v6 }
  0x53   :  { %706 = vmatpush.bf16.msrb.mxu0 %v2459_v10 }
  0x54   :  { %719 = vmatpush.bf16.msrb.mxu1 %v2467_v11  ;;  %v2695_v11 = vmov 920167782  }
  0x55   :  { %732 = vmatpush.bf16.msrb.mxu2 %v2475_v14  ;;  %v2696_v14 = vmov 1326507024  }
  0x56   :  { %745 = vmatpush.bf16.msrb.mxu3 %v2483_v15  ;;  %707 = vmatmul.bf16.vlgmr.msrb.gmra.mxu0 %v251_v16 }
  0x57   :  { %720 = vmatmul.bf16.vlgmr.msrb.gmra.mxu1 %v252_v17 }
  0x58   :  { %733 = vmatmul.bf16.vlgmr.msrb.gmra.mxu2 %v253_v18 }
  0x59   :  { %746 = vmatmul.bf16.vlgmr.msrb.gmra.mxu3 %v254_v19 }
  0xb3   :  { %v656_v20 = vpop.f32.mrf.mxu0 }
  0xb4   :  { %v669_v21 = vpop.f32.mrf.mxu1  ;;  %v657_v29 = vadd.f32 %v2510_v26, %v656_v20 }
  0xb6   :  { %v670_v30 = vadd.f32 %v669_v21, %v657_v29 }
  0xbb   :  { %v682_v22 = vpop.f32.mrf.mxu2  ;;  %v658_v24 = vpop.f32.mrf.mxu0 }
  0xbc   :  { %v695_v23 = vpop.f32.mrf.mxu3  ;;  %v671_v25 = vpop.f32.mrf.mxu1  ;;  %v683_v31 = vadd.f32 %v682_v22, %v670_v30 }
  0xbe   :  { %v696_v32 = vadd.f32 %v695_v23, %v683_v31 }
  0xc3   :  { %v684_v27 = vpop.f32.mrf.mxu2 }
  0xc4   :  { %v697_v28 = vpop.f32.mrf.mxu3 }
  0xd3   :  { %v708_v33 = vpop.f32.mrf.mxu0 }
  0xd4   :  { %v721_v34 = vpop.f32.mrf.mxu1  ;;  %v709_v35 = vadd.f32 %v708_v33, %v696_v32 }
  0xd6   :  { %v722_v36 = vadd.f32 %v721_v34, %v709_v35 }
  0xdb   :  { %v734_v37 = vpop.f32.mrf.mxu2  ;;  %v710_v41 = vpop.f32.mrf.mxu0 }
  0xdc   :  { %v747_v38 = vpop.f32.mrf.mxu3  ;;  %v735_v39 = vadd.f32 %v734_v37, %v722_v36  ;;  %v723_v42 = vpop.f32.mrf.mxu1 }
  0xde   :  { %v748_v43 = vadd.f32 %v747_v38, %v735_v39 }
  0xe0   :  { %v754_v44 = vmul.f32 %v2511_v40, %v748_v43 }
  0xe2   :  { %755 = vrot.lane.b32.xlu0 %v754_v44, %s2689_s27 }
  0xe3   :  { %v736_v45 = vpop.f32.mrf.mxu2 }
  0xe4   :  { %v749_v46 = vpop.f32.mrf.mxu3 }
  0xea   :  { %757 = vrot.lane.b32.xlu0 %v754_v44, %s2690_s2 }
 0x154   :  { %v756_v47 = vpop.permute.xlu0 %755 }
 0x155   :  { %v759_v48 = vadd.f32 %v756_v47, %v754_v44 }
 0x15c   :  { %v758_v50 = vpop.permute.xlu0 %757 }
 0x15d   :  { %v760_v51 = vadd.f32 %v759_v48, %v758_v50  ;;  %v2697_v48 = vmov 0  }
 0x15f   :  { %v2759_v52 = vadd.f32 %v2512_v49, %v760_v51 }
 0x161   :  { %v766_v53 = vand.u32 2139095040, %v2759_v52  ;;  %v763_v56 = vand.u32 2147483647, %v2759_v52  ;;  %vm765_vm12 = vcmp.lt.s32.totalorder %v2759_v52, 0 }
 0x163   :  { %v767_v54 = vshrl.u32 %v766_v53, 23  ;;  %v770_v58 = vand.u32 8388607, %v763_v56  ;;  %vm764_vm13 = vcmp.le.f32.partialorder %v763_v56, 0.7853982 }
 0x165   :  { %v2403_v55 = vadd.s32 4294967169, %v767_v54  ;;  %v771_v62 = vor.u32 8388608, %v770_v58 }
 0x167   :  { %v773_v57 = vadd.s32 1, %v2403_v55  ;;  %v2785_v21 = vshll.u32 %v771_v62, 8 }
 0x169   :  { %vm774_vm0 = vcmp.gt.s32.totalorder %v773_v57, 0  ;;  %v812_v30 = vand.u32 65535, %v2785_v21  ;;  %v813_v31 = vshrl.u32 %v2785_v21, 16 }
 0x16a   :  { %v775_v59 = vsel %vm774_vm0, %v773_v57, 0 }
 0x16b   :  { %v777_v60 = vand.u32 31, %v775_v59  ;;  %v2767_v63 = vshrl.u32 %v775_v59, 5 }
 0x16d   :  { %v2765_v61 = vsub.s32 32, %v777_v60  ;;  %v780_v1 = vshll.u32 %v2691_v0, %v777_v60  ;;  %v783_v3 = vshll.u32 %v2692_v2, %v777_v60  ;;  %v786_v7 = vshll.u32 %v2693_v5, %v777_v60 }
 0x16e   :  { %v789_v10 = vshll.u32 %v2694_v8, %v777_v60  ;;  %v792_v13 = vshll.u32 %v2695_v11, %v777_v60  ;;  %vm795_vm1 = vcmp.lt.s32.totalorder %v2767_v63, 1  ;;  %vm798_vm2 = vcmp.lt.s32.totalorder %v2767_v63, 4 }
 0x16f   :  { %v781_v4 = vshrl.u32 %v2692_v2, %v2765_v61  ;;  %v784_v6 = vshrl.u32 %v2693_v5, %v2765_v61  ;;  %v787_v9 = vshrl.u32 %v2694_v8, %v2765_v61  ;;  %v790_v12 = vshrl.u32 %v2695_v11, %v2765_v61 }
 0x170   :  { %v793_v15 = vshrl.u32 %v2696_v14, %v2765_v61  ;;  %vm797_vm3 = vcmp.lt.s32.totalorder %v2767_v63, 3  ;;  %vm796_vm4 = vcmp.lt.s32.totalorder %v2767_v63, 2  ;;  %v779_v59 = vshrl.u32 %v2691_v0, %v2765_v61 }
 0x171   :  { %v782_v16 = vor.u32 %v781_v4, %v780_v1  ;;  %v785_v17 = vor.u32 %v784_v6, %v783_v3  ;;  %v788_v18 = vor.u32 %v787_v9, %v786_v7  ;;  %v791_v19 = vor.u32 %v790_v12, %v789_v10 }
 0x172   :  { %v794_v20 = vor.u32 %v793_v15, %v792_v13 }
 0x173   :  { %v803_v22 = vsel %vm795_vm1, %v782_v16, %v785_v17  ;;  %v807_v23 = vsel %vm795_vm1, %v785_v17, %v788_v18  ;;  %v804_v24 = vsel %vm798_vm2, %v791_v19, 920167782  ;;  %v800_v55 = vsel %vm798_vm2, %v788_v18, 2102212464 }
 0x174   :  { %v808_v25 = vsel %vm798_vm2, %v794_v20, 1326507024  ;;  %v805_v26 = vsel %vm797_vm3, %v788_v18, %v804_v24  ;;  %v799_v6 = vsel %vm795_vm1, %v779_v59, %v782_v16  ;;  %v801_v7 = vsel %vm797_vm3, %v785_v17, %v800_v55 }
 0x175   :  { %v809_v27 = vsel %vm797_vm3, %v791_v19, %v808_v25  ;;  %v806_v28 = vsel %vm796_vm4, %v803_v22, %v805_v26  ;;  %v802_v61 = vsel %vm796_vm4, %v799_v6, %v801_v7  ;;  %vm906_vm1 = vweird.f32 %v2759_v52 }
 0x176   :  { %v810_v29 = vsel %vm796_vm4, %v807_v23, %v809_v27  ;;  %v836_v34 = vand.u32 65535, %v806_v28  ;;  %v837_v35 = vshrl.u32 %v806_v28, 16  ;;  %v856_v22 = vmul.u32 %v2785_v21, %v802_v61 }
 0x177   :  { %v814_v32 = vand.u32 65535, %v810_v29  ;;  %v815_v33 = vshrl.u32 %v810_v29, 16 }
 0x178   :  { %v839_v38 = vmul.u32 %v837_v35, %v812_v30  ;;  %v840_v39 = vmul.u32 %v836_v34, %v813_v31  ;;  %v838_v43 = vmul.u32 %v836_v34, %v812_v30  ;;  %v841_v47 = vmul.u32 %v837_v35, %v813_v31 }
 0x179   :  { %v817_v36 = vmul.u32 %v815_v33, %v812_v30  ;;  %v818_v37 = vmul.u32 %v814_v32, %v813_v31  ;;  %v816_v40 = vmul.u32 %v814_v32, %v812_v30  ;;  %v819_v42 = vmul.u32 %v815_v33, %v813_v31 }
 0x17a   :  { %v842_v44 = vshll.u32 %v839_v38, 16  ;;  %v844_v50 = vshll.u32 %v840_v39, 16  ;;  %v843_v3 = vshrl.u32 %v839_v38, 16  ;;  %v845_v12 = vshrl.u32 %v840_v39, 16 }
 0x17b   :  { %v820_v41 = vshll.u32 %v817_v36, 16  ;;  %v822_v45 = vshll.u32 %v818_v37, 16  ;;  %v821_v60 = vshrl.u32 %v817_v36, 16  ;;  %v823_v9 = vshrl.u32 %v818_v37, 16 }
 0x17c   :  { %vm846_vm6 = vc.u32 %v838_v43, %v842_v44  ;;  %v848_v51 = vadd.s32 %v842_v44, %v838_v43 }
 0x17d   :  { %vm824_vm5 = vc.u32 %v816_v40, %v820_v41  ;;  %v826_v46 = vadd.s32 %v820_v41, %v816_v40  ;;  %v847_v54 = vsel %vm846_vm6, 1, %v2697_v48 }
 0x17e   :  { %v825_v49 = vsel %vm824_vm5, 1, %v2697_v48  ;;  %v849_v58 = vadd.s32 %v847_v54, %v841_v47  ;;  %vm850_vm8 = vc.u32 %v848_v51, %v844_v50  ;;  %v852_v18 = vadd.s32 %v848_v51, %v844_v50 }
 0x17f   :  { %v827_v53 = vadd.s32 %v825_v49, %v819_v42  ;;  %vm828_vm7 = vc.u32 %v826_v46, %v822_v45  ;;  %v851_v1 = vsel %vm850_vm8, 1, %v2697_v48 }
 0x180   :  { %v829_v57 = vsel %vm828_vm7, 1, %v2697_v48  ;;  %v853_v4 = vadd.s32 %v851_v1, %v849_v58 }
 0x181   :  { %v831_v62 = vadd.s32 %v829_v57, %v827_v53 }
 0x182   :  { %v854_v13 = vadd.s32 %v853_v4, %v843_v3 }
 0x183   :  { %v832_v10 = vadd.s32 %v831_v62, %v821_v60 }
 0x184   :  { %v855_v19 = vadd.s32 %v854_v13, %v845_v12 }
 0x185   :  { %v833_v15 = vadd.s32 %v832_v10, %v823_v9  ;;  %v2513_v10 = vld [vmem:[#allocation7 + $0x1] ss:$0 sm:$0xff] }
 0x186   :  { %v859_v20 = vadd.s32 1, %v855_v19 }
 0x187   :  { %vm858_vm9 = vc.u32 %v833_v15, %v852_v18  ;;  %v857_v63 = vadd.s32 %v852_v18, %v833_v15 }
 0x188   :  { %v860_v23 = vsel %vm858_vm9, %v859_v20, %v855_v19 }
 0x189   :  { %v861_v24 = vadd.s32 %v860_v23, %v856_v22  ;;  %v2514_v22 = vld [vmem:[#allocation8 + $0x1] ss:$0 sm:$0xff] }
 0x18b   :  { %v862_v16 = vadd.s32 536870912, %v861_v24 }
 0x18d   :  { %v863_v25 = vshrl.u32 %v862_v16, 30 }
 0x18f   :  { %v864_v26 = vshll.u32 %v863_v25, 30  ;;  %v887_v44 = vsub.s32 4, %v863_v25 }
 0x191   :  { %v865_v17 = vsub.s32 %v861_v24, %v864_v26  ;;  %v888_v50 = vsel %vm765_vm12, %v887_v44, %v863_v25 }
 0x192   :  { %v890_v54 = vsel %vm764_vm13, 0, %v888_v50 }
 0x193   :  { %vm866_vm10 = vcmp.lt.s32.totalorder %v865_v17, 0  ;;  %v867_v27 = vsub.s32 0, %v865_v17  ;;  %v907_v60 = vadd.s32 3, %v890_v54 }
 0x195   :  { %v868_v28 = vsel %vm866_vm10, %v867_v27, %v865_v17  ;;  %v908_v4 = vand.u32 3, %v907_v60 }
 0x196   :  { %v869_v29 = vclz %v868_v28 }
 0x197   :  { %vm910_vm14 = vcmp.eq.s32.totalorder %v908_v4, 0  ;;  %vm913_vm15 = vcmp.eq.s32.totalorder %v908_v4, 2  ;;  %vm909_vm0 = vcmp.lt.s32.totalorder %v908_v4, 2 }
 0x198   :  { %v2404_v30 = vadd.s32 4294967294, %v869_v29 }
 0x19a   :  { %vm2405_vm11 = vcmp.lt.s32.totalorder %v2404_v30, 0 }
 0x19b   :  { %v872_v31 = vsel %vm2405_vm11, 0, %v2404_v30 }
 0x19c   :  { %v873_v32 = vsub.s32 32, %v872_v31  ;;  %v877_v33 = vsub.s32 4294967266, %v872_v31  ;;  %v874_v34 = vshll.u32 %v865_v17, %v872_v31 }
 0x19e   :  { %v875_v35 = vshrl.u32 %v857_v63, %v873_v32  ;;  %v878_v36 = vadd.s32 127, %v877_v33 }
 0x1a0   :  { %v876_v21 = vor.u32 %v875_v35, %v874_v34  ;;  %v879_v37 = vshll.u32 %v878_v36, 23 }
 0x1a2   :  { %v880_v38 = vor.u32 4788187, %v879_v37  ;;  %v883_v40 = vcvt.s32.f32 %v876_v21 }
 0x1a4   :  { %v881_v39 = vand.u32 2147483647, %v880_v38 }
 0x1a6   :  { %v884_v41 = vmul.f32 %v883_v40, %v881_v39 }
 0x1a8   :  { %v885_v42 = vxor.u32 2147483648, %v884_v41 }
 0x1aa   :  { %v886_v43 = vsel %vm765_vm12, %v885_v42, %v884_v41 }
 0x1ab   :  { %v889_v45 = vsel %vm764_vm13, %v2759_v52, %v886_v43 }
 0x1ac   :  { %v891_v46 = vmul.f32 %v889_v45, %v889_v45 }
 0x1ae   :  { %v892_v47 = vmul.f32 -0.001358992, %v891_v46  ;;  %v899_v49 = vmul.f32 -0.00019511016, %v891_v46 }
 0x1b0   :  { %v893_v51 = vadd.f32 0.041655596, %v892_v47  ;;  %v900_v53 = vadd.f32 0.008332121, %v899_v49 }
 0x1b2   :  { %v894_v55 = vmul.f32 %v893_v51, %v891_v46  ;;  %v901_v57 = vmul.f32 %v900_v53, %v891_v46 }
 0x1b4   :  { %v895_v58 = vadd.f32 -0.4999988, %v894_v55  ;;  %v902_v59 = vadd.f32 -0.16666654, %v901_v57 }
 0x1b6   :  { %v896_v62 = vmul.f32 %v895_v58, %v891_v46  ;;  %v903_v1 = vmul.f32 %v902_v59, %v891_v46 }
 0x1b8   :  { %v897_v3 = vadd.f32 1.0, %v896_v62  ;;  %v904_v56 = vadd.f32 1.0, %v903_v1 }
 0x1ba   :  { %v905_v6 = vmul.f32 %v904_v56, %v889_v45  ;;  %v914_v7 = vxor.u32 2147483648, %v897_v3 }
 0x1bc   :  { %v911_v9 = vxor.u32 2147483648, %v905_v6  ;;  %v915_v13 = vsel %vm913_vm15, %v914_v7, %v905_v6 }
 0x1be   :  { %v912_v12 = vsel %vm910_vm14, %v897_v3, %v911_v9 }
 0x1bf   :  { %v916_v15 = vsel %vm909_vm0, %v912_v12, %v915_v13 }
 0x1c0   :  { %v917_v18 = vsel %vm906_vm1, nan, %v916_v15 }
 0x1c1   :  { %v921_v61 = vmul.f32 %v2513_v10, %v917_v18 }
 0x1c3   :  { %922 = vrot.lane.b32.xlu1 %v921_v61, %s2689_s27 }
 0x1cb   :  { %924 = vrot.lane.b32.xlu1 %v921_v61, %s2690_s2 }
 0x235   :  { %v923_v19 = vpop.permute.xlu1 %922 }
 0x236   :  { %v926_v20 = vadd.f32 %v923_v19, %v921_v61 }
 0x23d   :  { %v925_v23 = vpop.permute.xlu1 %924 }
 0x23e   :  { %v927_v24 = vadd.f32 %v926_v20, %v925_v23 }
 0x240   :  { %v2830_v16 = vadd.f32 %v2514_v22, %v927_v24 }
 0x242   :  { %v933_v25 = vand.u32 2139095040, %v2830_v16  ;;  %v930_v52 = vand.u32 2147483647, %v2830_v16  ;;  %vm932_vm14 = vcmp.lt.s32.totalorder %v2830_v16, 0 }
 0x244   :  { %v934_v26 = vshrl.u32 %v933_v25, 23  ;;  %v937_v28 = vand.u32 8388607, %v930_v52  ;;  %vm931_vm15 = vcmp.le.f32.partialorder %v930_v52, 0.7853982 }
 0x246   :  { %v2406_v17 = vadd.s32 4294967169, %v934_v26  ;;  %v938_v63 = vor.u32 8388608, %v937_v28 }
 0x248   :  { %v940_v27 = vadd.s32 1, %v2406_v17  ;;  %v2849_v47 = vshll.u32 %v938_v63, 8 }
 0x24a   :  { %vm941_vm2 = vcmp.gt.s32.totalorder %v940_v27, 0  ;;  %v979_v59 = vand.u32 65535, %v2849_v47  ;;  %v980_v60 = vshrl.u32 %v2849_v47, 16 }
 0x24b   :  { %v942_v29 = vsel %vm941_vm2, %v940_v27, 0 }
 0x24c   :  { %v944_v30 = vand.u32 31, %v942_v29  ;;  %v2836_v32 = vshrl.u32 %v942_v29, 5 }
 0x24e   :  { %v945_v31 = vsub.s32 32, %v944_v30  ;;  %v947_v33 = vshll.u32 %v2691_v0, %v944_v30  ;;  %v950_v34 = vshll.u32 %v2692_v2, %v944_v30  ;;  %v953_v21 = vshll.u32 %v2693_v5, %v944_v30 }
 0x24f   :  { %v956_v38 = vshll.u32 %v2694_v8, %v944_v30  ;;  %v959_v40 = vshll.u32 %v2695_v11, %v944_v30  ;;  %vm962_vm3 = vcmp.lt.s32.totalorder %v2836_v32, 1  ;;  %vm965_vm4 = vcmp.lt.s32.totalorder %v2836_v32, 4 }
 0x250   :  { %v948_v35 = vshrl.u32 %v2692_v2, %v945_v31  ;;  %v951_v36 = vshrl.u32 %v2693_v5, %v945_v31  ;;  %v954_v37 = vshrl.u32 %v2694_v8, %v945_v31  ;;  %v957_v39 = vshrl.u32 %v2695_v11, %v945_v31 }
 0x251   :  { %v960_v41 = vshrl.u32 %v2696_v14, %v945_v31  ;;  %vm964_vm5 = vcmp.lt.s32.totalorder %v2836_v32, 3  ;;  %vm963_vm6 = vcmp.lt.s32.totalorder %v2836_v32, 2  ;;  %v946_v29 = vshrl.u32 %v2691_v0, %v945_v31 }
 0x252   :  { %v949_v42 = vor.u32 %v948_v35, %v947_v33  ;;  %v952_v43 = vor.u32 %v951_v36, %v950_v34  ;;  %v955_v44 = vor.u32 %v954_v37, %v953_v21  ;;  %v958_v45 = vor.u32 %v957_v39, %v956_v38 }
 0x253   :  { %v961_v46 = vor.u32 %v960_v41, %v959_v40 }
 0x254   :  { %v970_v49 = vsel %vm962_vm3, %v949_v42, %v952_v43  ;;  %v974_v50 = vsel %vm962_vm3, %v952_v43, %v955_v44  ;;  %v971_v51 = vsel %vm965_vm4, %v958_v45, 920167782  ;;  %v967_v17 = vsel %vm965_vm4, %v955_v44, 2102212464 }
 0x255   :  { %v975_v53 = vsel %vm965_vm4, %v961_v46, 1326507024  ;;  %v972_v54 = vsel %vm964_vm5, %v955_v44, %v971_v51  ;;  %v966_v36 = vsel %vm962_vm3, %v946_v29, %v949_v42  ;;  %v968_v21 = vsel %vm964_vm5, %v952_v43, %v967_v17 }
 0x256   :  { %v976_v55 = vsel %vm964_vm5, %v958_v45, %v975_v53  ;;  %v973_v57 = vsel %vm963_vm6, %v970_v49, %v972_v54  ;;  %v969_v31 = vsel %vm963_vm6, %v966_v36, %v968_v21  ;;  %vm1073_vm3 = vweird.f32 %v2830_v16 }
 0x257   :  { %v977_v58 = vsel %vm963_vm6, %v974_v50, %v976_v55  ;;  %v1003_v3 = vand.u32 65535, %v973_v57  ;;  %v1004_v56 = vshrl.u32 %v973_v57, 16  ;;  %v1023_v49 = vmul.u32 %v2849_v47, %v969_v31 }
 0x258   :  { %v981_v62 = vand.u32 65535, %v977_v58  ;;  %v982_v1 = vshrl.u32 %v977_v58, 16 }
 0x259   :  { %v1006_v7 = vmul.u32 %v1004_v56, %v979_v59  ;;  %v1007_v9 = vmul.u32 %v1003_v3, %v980_v60  ;;  %v1005_v15 = vmul.u32 %v1003_v3, %v979_v59  ;;  %v1008_v20 = vmul.u32 %v1004_v56, %v980_v60 }
 0x25a   :  { %v984_v4 = vmul.u32 %v982_v1, %v979_v59  ;;  %v985_v6 = vmul.u32 %v981_v62, %v980_v60  ;;  %v983_v10 = vmul.u32 %v981_v62, %v979_v59  ;;  %v986_v13 = vmul.u32 %v982_v1, %v980_v60 }
 0x25b   :  { %v1009_v18 = vshll.u32 %v1006_v7, 16  ;;  %v1011_v23 = vshll.u32 %v1007_v9, 16  ;;  %v1010_v34 = vshrl.u32 %v1006_v7, 16  ;;  %v1012_v39 = vshrl.u32 %v1007_v9, 16 }
 0x25c   :  { %v987_v12 = vshll.u32 %v984_v4, 16  ;;  %v989_v61 = vshll.u32 %v985_v6, 16  ;;  %v988_v30 = vshrl.u32 %v984_v4, 16  ;;  %v990_v37 = vshrl.u32 %v985_v6, 16 }
 0x25d   :  { %vm1013_vm8 = vc.u32 %v1005_v15, %v1009_v18  ;;  %v1015_v24 = vadd.s32 %v1009_v18, %v1005_v15 }
 0x25e   :  { %vm991_vm7 = vc.u32 %v983_v10, %v987_v12  ;;  %v993_v19 = vadd.s32 %v987_v12, %v983_v10  ;;  %v1014_v26 = vsel %vm1013_vm8, 1, %v2697_v48 }
 0x25f   :  { %v992_v22 = vsel %vm991_vm7, 1, %v2697_v48  ;;  %v1016_v28 = vadd.s32 %v1014_v26, %v1008_v20  ;;  %vm1017_vm10 = vc.u32 %v1015_v24, %v1011_v23  ;;  %v1019_v44 = vadd.s32 %v1015_v24, %v1011_v23 }
 0x260   :  { %v994_v25 = vadd.s32 %v992_v22, %v986_v13  ;;  %vm995_vm9 = vc.u32 %v993_v19, %v989_v61  ;;  %v1018_v33 = vsel %vm1017_vm10, 1, %v2697_v48 }
 0x261   :  { %v996_v27 = vsel %vm995_vm9, 1, %v2697_v48  ;;  %v1020_v35 = vadd.s32 %v1018_v33, %v1016_v28 }
 0x262   :  { %v998_v63 = vadd.s32 %v996_v27, %v994_v25 }
 0x263   :  { %v1021_v40 = vadd.s32 %v1020_v35, %v1010_v34 }
 0x264   :  { %v999_v38 = vadd.s32 %v998_v63, %v988_v30 }
 0x265   :  { %v1022_v45 = vadd.s32 %v1021_v40, %v1012_v39 }
 0x266   :  { %v1000_v41 = vadd.s32 %v999_v38, %v990_v37  ;;  %v2515_v38 = vld [vmem:[#allocation7 + $0x2] ss:$0 sm:$0xff] }
 0x267   :  { %v1026_v46 = vadd.s32 1, %v1022_v45 }
 0x268   :  { %vm1025_vm11 = vc.u32 %v1000_v41, %v1019_v44  ;;  %v1024_v32 = vadd.s32 %v1019_v44, %v1000_v41 }
 0x269   :  { %v1027_v50 = vsel %vm1025_vm11, %v1026_v46, %v1022_v45 }
 0x26a   :  { %v1028_v51 = vadd.s32 %v1027_v50, %v1023_v49  ;;  %v2516_v49 = vld [vmem:[#allocation8 + $0x2] ss:$0 sm:$0xff] }
 0x26c   :  { %v1029_v42 = vadd.s32 536870912, %v1028_v51 }
 0x26e   :  { %v1030_v53 = vshrl.u32 %v1029_v42, 30 }
 0x270   :  { %v1031_v54 = vshll.u32 %v1030_v53, 30  ;;  %v1054_v18 = vsub.s32 4, %v1030_v53 }
 0x272   :  { %v1032_v43 = vsub.s32 %v1028_v51, %v1031_v54  ;;  %v1055_v23 = vsel %vm932_vm14, %v1054_v18, %v1030_v53 }
 0x273   :  { %v1057_v26 = vsel %vm931_vm15, 0, %v1055_v23 }
 0x274   :  { %vm1033_vm12 = vcmp.lt.s32.totalorder %v1032_v43, 0  ;;  %v1034_v55 = vsub.s32 0, %v1032_v43  ;;  %v1074_v30 = vadd.s32 3, %v1057_v26 }
 0x276   :  { %v1035_v57 = vsel %vm1033_vm12, %v1034_v55, %v1032_v43  ;;  %v1075_v35 = vand.u32 3, %v1074_v30 }
 0x277   :  { %v1036_v58 = vclz %v1035_v57 }
 0x278   :  { %vm1077_vm0 = vcmp.eq.s32.totalorder %v1075_v35, 0  ;;  %vm1080_vm1 = vcmp.eq.s32.totalorder %v1075_v35, 2  ;;  %vm1076_vm2 = vcmp.lt.s32.totalorder %v1075_v35, 2 }
 0x279   :  { %v2407_v59 = vadd.s32 4294967294, %v1036_v58 }
 0x27b   :  { %vm2408_vm13 = vcmp.lt.s32.totalorder %v2407_v59, 0 }
 0x27c   :  { %v1039_v60 = vsel %vm2408_vm13, 0, %v2407_v59 }
 0x27d   :  { %v1040_v62 = vsub.s32 32, %v1039_v60  ;;  %v1044_v1 = vsub.s32 4294967266, %v1039_v60  ;;  %v1041_v3 = vshll.u32 %v1032_v43, %v1039_v60 }
 0x27f   :  { %v1042_v56 = vshrl.u32 %v1024_v32, %v1040_v62  ;;  %v1045_v4 = vadd.s32 127, %v1044_v1 }
 0x281   :  { %v1043_v47 = vor.u32 %v1042_v56, %v1041_v3  ;;  %v1046_v6 = vshll.u32 %v1045_v4, 23 }
 0x283   :  { %v1047_v7 = vor.u32 4788187, %v1046_v6  ;;  %v1050_v10 = vcvt.s32.f32 %v1043_v47 }
 0x285   :  { %v1048_v9 = vand.u32 2147483647, %v1047_v7 }
 0x287   :  { %v1051_v12 = vmul.f32 %v1050_v10, %v1048_v9 }
 0x289   :  { %v1052_v13 = vxor.u32 2147483648, %v1051_v12 }
 0x28b   :  { %v1053_v15 = vsel %vm932_vm14, %v1052_v13, %v1051_v12 }
 0x28c   :  { %v1056_v61 = vsel %vm931_vm15, %v2830_v16, %v1053_v15 }
 0x28d   :  { %v1058_v19 = vmul.f32 %v1056_v61, %v1056_v61 }
 0x28f   :  { %v1059_v20 = vmul.f32 -0.001358992, %v1058_v19  ;;  %v1066_v22 = vmul.f32 -0.00019511016, %v1058_v19 }
 0x291   :  { %v1060_v24 = vadd.f32 0.041655596, %v1059_v20  ;;  %v1067_v25 = vadd.f32 0.008332121, %v1066_v22 }
 0x293   :  { %v1061_v17 = vmul.f32 %v1060_v24, %v1058_v19  ;;  %v1068_v27 = vmul.f32 %v1067_v25, %v1058_v19 }
 0x295   :  { %v1062_v28 = vadd.f32 -0.4999988, %v1061_v17  ;;  %v1069_v29 = vadd.f32 -0.16666654, %v1068_v27 }
 0x297   :  { %v1063_v63 = vmul.f32 %v1062_v28, %v1058_v19  ;;  %v1070_v33 = vmul.f32 %v1069_v29, %v1058_v19 }
 0x299   :  { %v1064_v34 = vadd.f32 1.0, %v1063_v63  ;;  %v1071_v52 = vadd.f32 1.0, %v1070_v33 }
 0x29b   :  { %v1072_v36 = vmul.f32 %v1071_v52, %v1056_v61  ;;  %v1081_v21 = vxor.u32 2147483648, %v1064_v34 }
 0x29d   :  { %v1078_v37 = vxor.u32 2147483648, %v1072_v36  ;;  %v1082_v40 = vsel %vm1080_vm1, %v1081_v21, %v1072_v36 }
 0x29f   :  { %v1079_v39 = vsel %vm1077_vm0, %v1064_v34, %v1078_v37 }
 0x2a0   :  { %v1083_v41 = vsel %vm1076_vm2, %v1079_v39, %v1082_v40 }
 0x2a1   :  { %v1084_v44 = vsel %vm1073_vm3, nan, %v1083_v41 }
 0x2a2   :  { %v1088_v31 = vmul.f32 %v2515_v38, %v1084_v44 }
 0x2a4   :  { %1089 = vrot.lane.b32.xlu2 %v1088_v31, %s2689_s27 }
 0x2ac   :  { %1091 = vrot.lane.b32.xlu2 %v1088_v31, %s2690_s2 }
 0x2fe   :  { %v1090_v45 = vpop.permute.xlu2 %1089 }
 0x2ff   :  { %v1093_v46 = vadd.f32 %v1090_v45, %v1088_v31 }
 0x306   :  { %v1092_v50 = vpop.permute.xlu2 %1091 }
 0x307   :  { %v1094_v51 = vadd.f32 %v1093_v46, %v1092_v50 }
 0x309   :  { %v2893_v42 = vadd.f32 %v2516_v49, %v1094_v51 }
 0x30b   :  { %v1100_v53 = vand.u32 2139095040, %v2893_v42  ;;  %v1097_v16 = vand.u32 2147483647, %v2893_v42  ;;  %vm1099_vm0 = vcmp.lt.s32.totalorder %v2893_v42, 0 }
 0x30d   :  { %v1101_v54 = vshrl.u32 %v1100_v53, 23  ;;  %v1104_v57 = vand.u32 8388607, %v1097_v16  ;;  %vm1098_vm1 = vcmp.le.f32.partialorder %v1097_v16, 0.7853982 }
 0x30f   :  { %v2409_v43 = vadd.s32 4294967169, %v1101_v54  ;;  %v1105_v32 = vor.u32 8388608, %v1104_v57 }
 0x311   :  { %v1107_v55 = vadd.s32 1, %v2409_v43  ;;  %v2912_v20 = vshll.u32 %v1105_v32, 8 }
 0x313   :  { %vm1108_vm4 = vcmp.gt.s32.totalorder %v1107_v55, 0  ;;  %v1146_v29 = vand.u32 65535, %v2912_v20  ;;  %v1147_v30 = vshrl.u32 %v2912_v20, 16 }
 0x314   :  { %v1109_v58 = vsel %vm1108_vm4, %v1107_v55, 0 }
 0x315   :  { %v1111_v59 = vand.u32 31, %v1109_v58  ;;  %v2899_v62 = vshrl.u32 %v1109_v58, 5 }
 0x317   :  { %v1112_v60 = vsub.s32 32, %v1111_v59  ;;  %v1114_v1 = vshll.u32 %v2691_v0, %v1111_v59  ;;  %v1117_v3 = vshll.u32 %v2692_v2, %v1111_v59  ;;  %v1120_v47 = vshll.u32 %v2693_v5, %v1111_v59 }
 0x318   :  { %v1123_v7 = vshll.u32 %v2694_v8, %v1111_v59  ;;  %v1126_v10 = vshll.u32 %v2695_v11, %v1111_v59  ;;  %vm1129_vm5 = vcmp.lt.s32.totalorder %v2899_v62, 1  ;;  %vm1132_vm6 = vcmp.lt.s32.totalorder %v2899_v62, 4 }
 0x319   :  { %v1115_v56 = vshrl.u32 %v2692_v2, %v1112_v60  ;;  %v1118_v4 = vshrl.u32 %v2693_v5, %v1112_v60  ;;  %v1121_v6 = vshrl.u32 %v2694_v8, %v1112_v60  ;;  %v1124_v9 = vshrl.u32 %v2695_v11, %v1112_v60 }
 0x31a   :  { %v1127_v12 = vshrl.u32 %v2696_v14, %v1112_v60  ;;  %vm1131_vm7 = vcmp.lt.s32.totalorder %v2899_v62, 3  ;;  %vm1130_vm8 = vcmp.lt.s32.totalorder %v2899_v62, 2  ;;  %v1113_v58 = vshrl.u32 %v2691_v0, %v1112_v60 }
 0x31b   :  { %v1116_v13 = vor.u32 %v1115_v56, %v1114_v1  ;;  %v1119_v15 = vor.u32 %v1118_v4, %v1117_v3  ;;  %v1122_v18 = vor.u32 %v1121_v6, %v1120_v47  ;;  %v1125_v61 = vor.u32 %v1124_v9, %v1123_v7 }
 0x31c   :  { %v1128_v19 = vor.u32 %v1127_v12, %v1126_v10 }
 0x31d   :  { %v1137_v22 = vsel %vm1129_vm5, %v1116_v13, %v1119_v15  ;;  %v1141_v23 = vsel %vm1129_vm5, %v1119_v15, %v1122_v18  ;;  %v1138_v24 = vsel %vm1132_vm6, %v1125_v61, 920167782  ;;  %v1134_v43 = vsel %vm1132_vm6, %v1122_v18, 2102212464 }
 0x31e   :  { %v1142_v25 = vsel %vm1132_vm6, %v1128_v19, 1326507024  ;;  %v1139_v26 = vsel %vm1131_vm7, %v1122_v18, %v1138_v24  ;;  %v1133_v4 = vsel %vm1129_vm5, %v1113_v58, %v1116_v13  ;;  %v1135_v47 = vsel %vm1131_vm7, %v1119_v15, %v1134_v43 }
 0x31f   :  { %v1143_v17 = vsel %vm1131_vm7, %v1125_v61, %v1142_v25  ;;  %v1140_v27 = vsel %vm1130_vm8, %v1137_v22, %v1139_v26  ;;  %v1136_v60 = vsel %vm1130_vm8, %v1133_v4, %v1135_v47  ;;  %vm1240_vm5 = vweird.f32 %v2893_v42 }
 0x320   :  { %v1144_v28 = vsel %vm1130_vm8, %v1141_v23, %v1143_v17  ;;  %v1170_v34 = vand.u32 65535, %v1140_v27  ;;  %v1171_v52 = vshrl.u32 %v1140_v27, 16  ;;  %v1190_v22 = vmul.u32 %v2912_v20, %v1136_v60 }
 0x321   :  { %v1148_v63 = vand.u32 65535, %v1144_v28  ;;  %v1149_v33 = vshrl.u32 %v1144_v28, 16 }
 0x322   :  { %v1173_v21 = vmul.u32 %v1171_v52, %v1146_v29  ;;  %v1174_v37 = vmul.u32 %v1170_v34, %v1147_v30  ;;  %v1172_v41 = vmul.u32 %v1170_v34, %v1146_v29  ;;  %v1175_v46 = vmul.u32 %v1171_v52, %v1147_v30 }
 0x323   :  { %v1151_v35 = vmul.u32 %v1149_v33, %v1146_v29  ;;  %v1152_v36 = vmul.u32 %v1148_v63, %v1147_v30  ;;  %v1150_v38 = vmul.u32 %v1148_v63, %v1146_v29  ;;  %v1153_v40 = vmul.u32 %v1149_v33, %v1147_v30 }
 0x324   :  { %v1176_v44 = vshll.u32 %v1173_v21, 16  ;;  %v1178_v50 = vshll.u32 %v1174_v37, 16  ;;  %v1177_v3 = vshrl.u32 %v1173_v21, 16  ;;  %v1179_v9 = vshrl.u32 %v1174_v37, 16 }
 0x325   :  { %v1154_v39 = vshll.u32 %v1151_v35, 16  ;;  %v1156_v31 = vshll.u32 %v1152_v36, 16  ;;  %v1155_v59 = vshrl.u32 %v1151_v35, 16  ;;  %v1157_v6 = vshrl.u32 %v1152_v36, 16 }
 0x326   :  { %vm1180_vm10 = vc.u32 %v1172_v41, %v1176_v44  ;;  %v1182_v51 = vadd.s32 %v1176_v44, %v1172_v41 }
 0x327   :  { %vm1158_vm9 = vc.u32 %v1150_v38, %v1154_v39  ;;  %v1160_v45 = vadd.s32 %v1154_v39, %v1150_v38  ;;  %v1181_v54 = vsel %vm1180_vm10, 1, %v2697_v48 }
 0x328   :  { %v1159_v49 = vsel %vm1158_vm9, 1, %v2697_v48  ;;  %v1183_v57 = vadd.s32 %v1181_v54, %v1175_v46  ;;  %vm1184_vm12 = vc.u32 %v1182_v51, %v1178_v50  ;;  %v1186_v18 = vadd.s32 %v1182_v51, %v1178_v50 }
 0x329   :  { %v1161_v53 = vadd.s32 %v1159_v49, %v1153_v40  ;;  %vm1162_vm11 = vc.u32 %v1160_v45, %v1156_v31  ;;  %v1185_v1 = vsel %vm1184_vm12, 1, %v2697_v48 }
 0x32a   :  { %v1163_v55 = vsel %vm1162_vm11, 1, %v2697_v48  ;;  %v1187_v56 = vadd.s32 %v1185_v1, %v1183_v57 }
 0x32b   :  { %v1165_v32 = vadd.s32 %v1163_v55, %v1161_v53 }
 0x32c   :  { %v1188_v10 = vadd.s32 %v1187_v56, %v1177_v3 }
 0x32d   :  { %v1166_v7 = vadd.s32 %v1165_v32, %v1155_v59 }
 0x32e   :  { %v1189_v61 = vadd.s32 %v1188_v10, %v1179_v9 }
 0x32f   :  { %v1167_v12 = vadd.s32 %v1166_v7, %v1157_v6  ;;  %v2517_v7 = vld [vmem:[#allocation7 + $0x3] ss:$0 sm:$0xff] }
 0x330   :  { %v1193_v19 = vadd.s32 1, %v1189_v61 }
 0x331   :  { %vm1192_vm13 = vc.u32 %v1167_v12, %v1186_v18  ;;  %v1191_v62 = vadd.s32 %v1186_v18, %v1167_v12 }
 0x332   :  { %v1194_v23 = vsel %vm1192_vm13, %v1193_v19, %v1189_v61  ;;  %v2518_v19 = vld [vmem:[#allocation8 + $0x3] ss:$0 sm:$0xff] }
 0x333   :  { %v1195_v24 = vadd.s32 %v1194_v23, %v1190_v22 }
 0x335   :  { %v1196_v13 = vadd.s32 536870912, %v1195_v24 }
 0x337   :  { %v1197_v25 = vshrl.u32 %v1196_v13, 30 }
 0x339   :  { %v1198_v26 = vshll.u32 %v1197_v25, 30  ;;  %v1221_v44 = vsub.s32 4, %v1197_v25 }
 0x33b   :  { %v1199_v15 = vsub.s32 %v1195_v24, %v1198_v26  ;;  %v1222_v50 = vsel %vm1099_vm0, %v1221_v44, %v1197_v25 }
 0x33c   :  { %v1224_v54 = vsel %vm1098_vm1, 0, %v1222_v50 }
 0x33d   :  { %vm1200_vm14 = vcmp.lt.s32.totalorder %v1199_v15, 0  ;;  %v1201_v17 = vsub.s32 0, %v1199_v15  ;;  %v1241_v59 = vadd.s32 3, %v1224_v54 }
 0x33f   :  { %v1202_v27 = vsel %vm1200_vm14, %v1201_v17, %v1199_v15  ;;  %v1242_v56 = vand.u32 3, %v1241_v59 }
 0x340   :  { %v1203_v28 = vclz %v1202_v27 }
 0x341   :  { %vm1244_vm2 = vcmp.eq.s32.totalorder %v1242_v56, 0  ;;  %vm1247_vm3 = vcmp.eq.s32.totalorder %v1242_v56, 2  ;;  %vm1243_vm4 = vcmp.lt.s32.totalorder %v1242_v56, 2 }
 0x342   :  { %v2410_v29 = vadd.s32 4294967294, %v1203_v28 }
 0x344   :  { %vm2411_vm15 = vcmp.lt.s32.totalorder %v2410_v29, 0 }
 0x345   :  { %v1206_v30 = vsel %vm2411_vm15, 0, %v2410_v29 }
 0x346   :  { %v1207_v63 = vsub.s32 32, %v1206_v30  ;;  %v1211_v33 = vsub.s32 4294967266, %v1206_v30  ;;  %v1208_v34 = vshll.u32 %v1199_v15, %v1206_v30 }
 0x348   :  { %v1209_v52 = vshrl.u32 %v1191_v62, %v1207_v63  ;;  %v1212_v35 = vadd.s32 127, %v1211_v33 }
 0x34a   :  { %v1210_v20 = vor.u32 %v1209_v52, %v1208_v34  ;;  %v1213_v36 = vshll.u32 %v1212_v35, 23 }
 0x34c   :  { %v1214_v21 = vor.u32 4788187, %v1213_v36  ;;  %v1217_v38 = vcvt.s32.f32 %v1210_v20 }
 0x34e   :  { %v1215_v37 = vand.u32 2147483647, %v1214_v21 }
 0x350   :  { %v1218_v39 = vmul.f32 %v1217_v38, %v1215_v37 }
 0x352   :  { %v1219_v40 = vxor.u32 2147483648, %v1218_v39 }
 0x354   :  { %v1220_v41 = vsel %vm1099_vm0, %v1219_v40, %v1218_v39 }
 0x355   :  { %v1223_v31 = vsel %vm1098_vm1, %v2893_v42, %v1220_v41 }
 0x356   :  { %v1225_v45 = vmul.f32 %v1223_v31, %v1223_v31 }
 0x358   :  { %v1226_v46 = vmul.f32 -0.001358992, %v1225_v45  ;;  %v1233_v49 = vmul.f32 -0.00019511016, %v1225_v45 }
 0x35a   :  { %v1227_v51 = vadd.f32 0.041655596, %v1226_v46  ;;  %v1234_v53 = vadd.f32 0.008332121, %v1233_v49 }
 0x35c   :  { %v1228_v43 = vmul.f32 %v1227_v51, %v1225_v45  ;;  %v1235_v55 = vmul.f32 %v1234_v53, %v1225_v45 }
 0x35e   :  { %v1229_v57 = vadd.f32 -0.4999988, %v1228_v43  ;;  %v1236_v58 = vadd.f32 -0.16666654, %v1235_v55 }
 0x360   :  { %v1230_v32 = vmul.f32 %v1229_v57, %v1225_v45  ;;  %v1237_v1 = vmul.f32 %v1236_v58, %v1225_v45 }
 0x362   :  { %v1231_v3 = vadd.f32 1.0, %v1230_v32  ;;  %v1238_v16 = vadd.f32 1.0, %v1237_v1 }
 0x364   :  { %v1239_v4 = vmul.f32 %v1238_v16, %v1223_v31  ;;  %v1248_v47 = vxor.u32 2147483648, %v1231_v3 }
 0x366   :  { %v1245_v6 = vxor.u32 2147483648, %v1239_v4  ;;  %v1249_v10 = vsel %vm1247_vm3, %v1248_v47, %v1239_v4 }
 0x368   :  { %v1246_v9 = vsel %vm1244_vm2, %v1231_v3, %v1245_v6 }
 0x369   :  { %v1250_v12 = vsel %vm1243_vm4, %v1246_v9, %v1249_v10 }
 0x36a   :  { %v1251_v18 = vsel %vm1240_vm5, nan, %v1250_v12 }
 0x36b   :  { %v1255_v60 = vmul.f32 %v2517_v7, %v1251_v18 }
 0x36d   :  { %1258 = vrot.lane.b32.xlu1 %v1255_v60, %s2690_s2  ;;  %1256 = vrot.lane.b32.xlu0 %v1255_v60, %s2689_s27 }
 0x3df   :  { %v1257_v61 = vpop.permute.xlu0 %1256  ;;  %v1259_v23 = vpop.permute.xlu1 %1258 }
 0x3e0   :  { %v1260_v22 = vadd.f32 %v1257_v61, %v1255_v60 }
 0x3e2   :  { %v1261_v24 = vadd.f32 %v1260_v22, %v1259_v23 }
 0x3e4   :  { %v2956_v13 = vadd.f32 %v2518_v19, %v1261_v24 }
 0x3e6   :  { %v1267_v25 = vand.u32 2139095040, %v2956_v13  ;;  %v1264_v42 = vand.u32 2147483647, %v2956_v13  ;;  %vm1266_vm2 = vcmp.lt.s32.totalorder %v2956_v13, 0 }
 0x3e8   :  { %v1268_v26 = vshrl.u32 %v1267_v25, 23  ;;  %v1271_v27 = vand.u32 8388607, %v1264_v42  ;;  %vm1265_vm3 = vcmp.le.f32.partialorder %v1264_v42, 0.7853982 }
 0x3ea   :  { %v2412_v15 = vadd.s32 4294967169, %v1268_v26  ;;  %v1272_v62 = vor.u32 8388608, %v1271_v27 }
 0x3ec   :  { %v1274_v17 = vadd.s32 1, %v2412_v15  ;;  %v2974_v31 = vshll.u32 %v1272_v62, 8 }
 0x3ee   :  { %vm1275_vm6 = vcmp.gt.s32.totalorder %v1274_v17, 0  ;;  %v1313_v57 = vand.u32 65535, %v2974_v31  ;;  %v1314_v59 = vshrl.u32 %v2974_v31, 16 }
 0x3ef   :  { %v1276_v28 = vsel %vm1275_vm6, %v1274_v17, 0 }
 0x3f0   :  { %v1278_v29 = vand.u32 31, %v1276_v28  ;;  %v2962_v63 = vshrl.u32 %v1276_v28, 5 }
 0x3f2   :  { %v1279_v30 = vsub.s32 32, %v1278_v29  ;;  %v1290_v33 = vshll.u32 %v2694_v8, %v1278_v29  ;;  %v1293_v34 = vshll.u32 %v2695_v11, %v1278_v29  ;;  %v1281_v20 = vshll.u32 %v2691_v0, %v1278_v29 }
 0x3f3   :  { %v1284_v21 = vshll.u32 %v2692_v2, %v1278_v29  ;;  %v1287_v38 = vshll.u32 %v2693_v5, %v1278_v29  ;;  %vm1299_vm7 = vcmp.lt.s32.totalorder %v2962_v63, 4  ;;  %vm1296_vm8 = vcmp.lt.s32.totalorder %v2962_v63, 1 }
 0x3f4   :  { %v1291_v52 = vshrl.u32 %v2695_v11, %v1279_v30  ;;  %v1294_v35 = vshrl.u32 %v2696_v14, %v1279_v30  ;;  %v1282_v36 = vshrl.u32 %v2692_v2, %v1279_v30  ;;  %v1285_v37 = vshrl.u32 %v2693_v5, %v1279_v30 }
 0x3f5   :  { %v1288_v39 = vshrl.u32 %v2694_v8, %v1279_v30  ;;  %vm1298_vm9 = vcmp.lt.s32.totalorder %v2962_v63, 3  ;;  %vm1297_vm10 = vcmp.lt.s32.totalorder %v2962_v63, 2  ;;  %v1280_v17 = vshrl.u32 %v2691_v0, %v1279_v30 }
 0x3f6   :  { %v1292_v40 = vor.u32 %v1291_v52, %v1290_v33  ;;  %v1295_v41 = vor.u32 %v1294_v35, %v1293_v34  ;;  %v1283_v44 = vor.u32 %v1282_v36, %v1281_v20  ;;  %v1286_v45 = vor.u32 %v1285_v37, %v1284_v21 }
 0x3f7   :  { %v1289_v46 = vor.u32 %v1288_v39, %v1287_v38 }
 0x3f8   :  { %v1305_v49 = vsel %vm1299_vm7, %v1292_v40, 920167782  ;;  %v1309_v50 = vsel %vm1299_vm7, %v1295_v41, 1326507024  ;;  %v1304_v51 = vsel %vm1296_vm8, %v1283_v44, %v1286_v45  ;;  %v1300_v34 = vsel %vm1296_vm8, %v1280_v17, %v1283_v44 }
 0x3f9   :  { %v1306_v53 = vsel %vm1298_vm9, %v1289_v46, %v1305_v49  ;;  %v1308_v54 = vsel %vm1296_vm8, %v1286_v45, %v1289_v46  ;;  %v1310_v55 = vsel %vm1298_vm9, %v1292_v40, %v1309_v50  ;;  %v1301_v25 = vsel %vm1299_vm7, %v1289_v46, 2102212464 }
 0x3fa   :  { %v1307_v43 = vsel %vm1297_vm10, %v1304_v51, %v1306_v53  ;;  %v1311_v58 = vsel %vm1297_vm10, %v1308_v54, %v1310_v55  ;;  %v1302_v52 = vsel %vm1298_vm9, %v1286_v45, %v1301_v25  ;;  %vm1407_vm7 = vweird.f32 %v2956_v13 }
 0x3fb   :  { %v1337_v32 = vand.u32 65535, %v1307_v43  ;;  %v1338_v1 = vshrl.u32 %v1307_v43, 16  ;;  %v1315_v3 = vand.u32 65535, %v1311_v58  ;;  %v1316_v16 = vshrl.u32 %v1311_v58, 16 }
 0x3fc   :  { %v1303_v38 = vsel %vm1297_vm10, %v1300_v34, %v1302_v52 }
 0x3fd   :  { %v1340_v56 = vmul.u32 %v1338_v1, %v1313_v57  ;;  %v1341_v4 = vmul.u32 %v1337_v32, %v1314_v59  ;;  %v1318_v47 = vmul.u32 %v1316_v16, %v1313_v57  ;;  %v1319_v6 = vmul.u32 %v1315_v3, %v1314_v59 }
 0x3fe   :  { %v1339_v7 = vmul.u32 %v1337_v32, %v1313_v57  ;;  %v1317_v10 = vmul.u32 %v1315_v3, %v1313_v57  ;;  %v1342_v18 = vmul.u32 %v1338_v1, %v1314_v59  ;;  %v1320_v60 = vmul.u32 %v1316_v16, %v1314_v59 }
 0x3ff   :  { %v1343_v9 = vshll.u32 %v1340_v56, 16  ;;  %v1321_v12 = vshll.u32 %v1318_v47, 16  ;;  %v1345_v61 = vshll.u32 %v1341_v4, 16  ;;  %v1323_v22 = vshll.u32 %v1319_v6, 16 }
 0x400   :  { %v1344_v62 = vshrl.u32 %v1340_v56, 16  ;;  %v1322_v35 = vshrl.u32 %v1318_v47, 16  ;;  %v1346_v36 = vshrl.u32 %v1341_v4, 16  ;;  %v1324_v37 = vshrl.u32 %v1319_v6, 16 }
 0x401   :  { %vm1347_vm11 = vc.u32 %v1339_v7, %v1343_v9  ;;  %v1349_v19 = vadd.s32 %v1343_v9, %v1339_v7  ;;  %vm1325_vm12 = vc.u32 %v1317_v10, %v1321_v12  ;;  %v1327_v23 = vadd.s32 %v1321_v12, %v1317_v10 }
 0x402   :  { %v1348_v24 = vsel %vm1347_vm11, 1, %v2697_v48  ;;  %v1326_v26 = vsel %vm1325_vm12, 1, %v2697_v48  ;;  %v1357_v49 = vmul.u32 %v2974_v31, %v1303_v38 }
 0x403   :  { %v1350_v15 = vadd.s32 %v1348_v24, %v1342_v18  ;;  %vm1351_vm13 = vc.u32 %v1349_v19, %v1345_v61  ;;  %v1328_v27 = vadd.s32 %v1326_v26, %v1320_v60  ;;  %vm1329_vm14 = vc.u32 %v1327_v23, %v1323_v22 }
 0x404   :  { %v1352_v28 = vsel %vm1351_vm13, 1, %v2697_v48  ;;  %v1330_v29 = vsel %vm1329_vm14, 1, %v2697_v48  ;;  %v1353_v41 = vadd.s32 %v1349_v19, %v1345_v61 }
 0x405   :  { %v1354_v33 = vadd.s32 %v1352_v28, %v1350_v15  ;;  %v1332_v20 = vadd.s32 %v1330_v29, %v1328_v27 }
 0x407   :  { %v1355_v21 = vadd.s32 %v1354_v33, %v1344_v62  ;;  %v1333_v30 = vadd.s32 %v1332_v20, %v1322_v35 }
 0x409   :  { %v1356_v39 = vadd.s32 %v1355_v21, %v1346_v36  ;;  %v1334_v40 = vadd.s32 %v1333_v30, %v1324_v37  ;;  %v2519_v21 = vld [vmem:[#allocation7 + $0x4] ss:$0 sm:$0xff] }
 0x40b   :  { %v1360_v46 = vadd.s32 1, %v1356_v39  ;;  %vm1359_vm15 = vc.u32 %v1334_v40, %v1353_v41  ;;  %v1358_v59 = vadd.s32 %v1353_v41, %v1334_v40 }
 0x40d   :  { %v1361_v44 = vsel %vm1359_vm15, %v1360_v46, %v1356_v39 }
 0x40e   :  { %v1362_v50 = vadd.s32 %v1361_v44, %v1357_v49  ;;  %v2520_v49 = vld [vmem:[#allocation8 + $0x4] ss:$0 sm:$0xff] }
 0x410   :  { %v1363_v51 = vadd.s32 536870912, %v1362_v50 }
 0x412   :  { %v1364_v45 = vshrl.u32 %v1363_v51, 30 }
 0x414   :  { %v1365_v53 = vshll.u32 %v1364_v45, 30  ;;  %v1388_v18 = vsub.s32 4, %v1364_v45 }
 0x416   :  { %v1366_v54 = vsub.s32 %v1362_v50, %v1365_v53  ;;  %v1389_v23 = vsel %vm1266_vm2, %v1388_v18, %v1364_v45 }
 0x417   :  { %v1391_v26 = vsel %vm1265_vm3, 0, %v1389_v23 }
 0x418   :  { %vm1367_vm0 = vcmp.lt.s32.totalorder %v1366_v54, 0  ;;  %v1368_v43 = vsub.s32 0, %v1366_v54  ;;  %v1408_v29 = vadd.s32 3, %v1391_v26 }
 0x41a   :  { %v1369_v55 = vsel %vm1367_vm0, %v1368_v43, %v1366_v54  ;;  %v1409_v52 = vand.u32 3, %v1408_v29 }
 0x41b   :  { %v1370_v57 = vclz %v1369_v55 }
 0x41c   :  { %vm1411_vm4 = vcmp.eq.s32.totalorder %v1409_v52, 0  ;;  %vm1414_vm5 = vcmp.eq.s32.totalorder %v1409_v52, 2  ;;  %vm1410_vm6 = vcmp.lt.s32.totalorder %v1409_v52, 2 }
 0x41d   :  { %v2413_v58 = vadd.s32 4294967294, %v1370_v57 }
 0x41f   :  { %vm2414_vm1 = vcmp.lt.s32.totalorder %v2413_v58, 0 }
 0x420   :  { %v1373_v63 = vsel %vm2414_vm1, 0, %v2413_v58 }
 0x421   :  { %v1374_v32 = vsub.s32 32, %v1373_v63  ;;  %v1378_v1 = vsub.s32 4294967266, %v1373_v63  ;;  %v1375_v3 = vshll.u32 %v1366_v54, %v1373_v63 }
 0x423   :  { %v1376_v16 = vshrl.u32 %v1358_v59, %v1374_v32  ;;  %v1379_v31 = vadd.s32 127, %v1378_v1 }
 0x425   :  { %v1377_v56 = vor.u32 %v1376_v16, %v1375_v3  ;;  %v1380_v4 = vshll.u32 %v1379_v31, 23 }
 0x427   :  { %v1381_v47 = vor.u32 4788187, %v1380_v4  ;;  %v1384_v7 = vcvt.s32.f32 %v1377_v56 }
 0x429   :  { %v1382_v6 = vand.u32 2147483647, %v1381_v47 }
 0x42b   :  { %v1385_v9 = vmul.f32 %v1384_v7, %v1382_v6 }
 0x42d   :  { %v1386_v10 = vxor.u32 2147483648, %v1385_v9 }
 0x42f   :  { %v1387_v12 = vsel %vm1266_vm2, %v1386_v10, %v1385_v9 }
 0x430   :  { %v1390_v60 = vsel %vm1265_vm3, %v2956_v13, %v1387_v12 }
 0x431   :  { %v1392_v61 = vmul.f32 %v1390_v60, %v1390_v60 }
 0x433   :  { %v1393_v19 = vmul.f32 -0.001358992, %v1392_v61  ;;  %v1400_v22 = vmul.f32 -0.00019511016, %v1392_v61 }
 0x435   :  { %v1394_v24 = vadd.f32 0.041655596, %v1393_v19  ;;  %v1401_v25 = vadd.f32 0.008332121, %v1400_v22 }
 0x437   :  { %v1395_v15 = vmul.f32 %v1394_v24, %v1392_v61  ;;  %v1402_v17 = vmul.f32 %v1401_v25, %v1392_v61 }
 0x439   :  { %v1396_v27 = vadd.f32 -0.4999988, %v1395_v15  ;;  %v1403_v28 = vadd.f32 -0.16666654, %v1402_v17 }
 0x43b   :  { %v1397_v62 = vmul.f32 %v1396_v27, %v1392_v61  ;;  %v1404_v33 = vmul.f32 %v1403_v28, %v1392_v61 }
 0x43d   :  { %v1398_v34 = vadd.f32 1.0, %v1397_v62  ;;  %v1405_v42 = vadd.f32 1.0, %v1404_v33 }
 0x43f   :  { %v1406_v35 = vmul.f32 %v1405_v42, %v1390_v60  ;;  %v1415_v20 = vxor.u32 2147483648, %v1398_v34 }
 0x441   :  { %v1412_v36 = vxor.u32 2147483648, %v1406_v35  ;;  %v1416_v30 = vsel %vm1414_vm5, %v1415_v20, %v1406_v35 }
 0x443   :  { %v1413_v37 = vsel %vm1411_vm4, %v1398_v34, %v1412_v36 }
 0x444   :  { %v1417_v38 = vsel %vm1410_vm6, %v1413_v37, %v1416_v30 }
 0x445   :  { %v1418_v39 = vsel %vm1407_vm7, nan, %v1417_v38 }
 0x446   :  { %v1422_v40 = vmul.f32 %v2519_v21, %v1418_v39 }
 0x448   :  { %1425 = vrot.lane.b32.xlu0 %v1422_v40, %s2690_s2  ;;  %1423 = vrot.lane.b32.xlu2 %v1422_v40, %s2689_s27 }
 0x4a2   :  { %v1424_v41 = vpop.permute.xlu2 %1423 }
 0x4a3   :  { %v1427_v46 = vadd.f32 %v1424_v41, %v1422_v40 }
 0x4ba   :  { %v1426_v44 = vpop.permute.xlu0 %1425 }
 0x4bb   :  { %v1428_v50 = vadd.f32 %v1427_v46, %v1426_v44 }
 0x4bd   :  { %v3019_v51 = vadd.f32 %v2520_v49, %v1428_v50 }
 0x4bf   :  { %v1434_v45 = vand.u32 2139095040, %v3019_v51  ;;  %v1431_v13 = vand.u32 2147483647, %v3019_v51  ;;  %vm1433_vm4 = vcmp.lt.s32.totalorder %v3019_v51, 0 }
 0x4c1   :  { %v1435_v53 = vshrl.u32 %v1434_v45, 23  ;;  %v1438_v55 = vand.u32 8388607, %v1431_v13  ;;  %vm1432_vm5 = vcmp.le.f32.partialorder %v1431_v13, 0.7853982 }
 0x4c3   :  { %v2415_v54 = vadd.s32 4294967169, %v1435_v53  ;;  %v1439_v59 = vor.u32 8388608, %v1438_v55 }
 0x4c5   :  { %v1441_v43 = vadd.s32 1, %v2415_v54  ;;  %v3038_v19 = vshll.u32 %v1439_v59, 8 }
 0x4c7   :  { %vm1442_vm8 = vcmp.gt.s32.totalorder %v1441_v43, 0  ;;  %v1480_v28 = vand.u32 65535, %v3038_v19  ;;  %v1481_v29 = vshrl.u32 %v3038_v19, 16 }
 0x4c8   :  { %v1443_v57 = vsel %vm1442_vm8, %v1441_v43, 0 }
 0x4c9   :  { %v1445_v58 = vand.u32 31, %v1443_v57  ;;  %v3025_v32 = vshrl.u32 %v1443_v57, 5 }
 0x4cb   :  { %v1446_v63 = vsub.s32 32, %v1445_v58  ;;  %v1448_v1 = vshll.u32 %v2691_v0, %v1445_v58  ;;  %v1451_v3 = vshll.u32 %v2692_v2, %v1445_v58  ;;  %v1454_v56 = vshll.u32 %v2693_v5, %v1445_v58 }
 0x4cc   :  { %v1457_v47 = vshll.u32 %v2694_v8, %v1445_v58  ;;  %v1460_v7 = vshll.u32 %v2695_v11, %v1445_v58  ;;  %vm1463_vm9 = vcmp.lt.s32.totalorder %v3025_v32, 1  ;;  %vm1466_vm10 = vcmp.lt.s32.totalorder %v3025_v32, 4 }
 0x4cd   :  { %v1449_v16 = vshrl.u32 %v2692_v2, %v1446_v63  ;;  %v1452_v31 = vshrl.u32 %v2693_v5, %v1446_v63  ;;  %v1455_v4 = vshrl.u32 %v2694_v8, %v1446_v63  ;;  %v1458_v6 = vshrl.u32 %v2695_v11, %v1446_v63 }
 0x4ce   :  { %v1461_v9 = vshrl.u32 %v2696_v14, %v1446_v63  ;;  %vm1465_vm11 = vcmp.lt.s32.totalorder %v3025_v32, 3  ;;  %vm1464_vm12 = vcmp.lt.s32.totalorder %v3025_v32, 2  ;;  %v1447_v57 = vshrl.u32 %v2691_v0, %v1446_v63 }
 0x4cf   :  { %v1450_v10 = vor.u32 %v1449_v16, %v1448_v1  ;;  %v1453_v12 = vor.u32 %v1452_v31, %v1451_v3  ;;  %v1456_v18 = vor.u32 %v1455_v4, %v1454_v56  ;;  %v1459_v60 = vor.u32 %v1458_v6, %v1457_v47 }
 0x4d0   :  { %v1462_v61 = vor.u32 %v1461_v9, %v1460_v7 }
 0x4d1   :  { %v1471_v22 = vsel %vm1463_vm9, %v1450_v10, %v1453_v12  ;;  %v1475_v23 = vsel %vm1463_vm9, %v1453_v12, %v1456_v18  ;;  %v1472_v24 = vsel %vm1466_vm10, %v1459_v60, 920167782  ;;  %v1468_v54 = vsel %vm1466_vm10, %v1456_v18, 2102212464 }
 0x4d2   :  { %v1476_v25 = vsel %vm1466_vm10, %v1462_v61, 1326507024  ;;  %v1473_v26 = vsel %vm1465_vm11, %v1456_v18, %v1472_v24  ;;  %v1467_v31 = vsel %vm1463_vm9, %v1447_v57, %v1450_v10  ;;  %v1469_v56 = vsel %vm1465_vm11, %v1453_v12, %v1468_v54 }
 0x4d3   :  { %v1477_v15 = vsel %vm1465_vm11, %v1459_v60, %v1476_v25  ;;  %v1474_v17 = vsel %vm1464_vm12, %v1471_v22, %v1473_v26  ;;  %v1470_v63 = vsel %vm1464_vm12, %v1467_v31, %v1469_v56  ;;  %vm1574_vm9 = vweird.f32 %v3019_v51 }
 0x4d4   :  { %v1478_v27 = vsel %vm1464_vm12, %v1475_v23, %v1477_v15  ;;  %v1504_v34 = vand.u32 65535, %v1474_v17  ;;  %v1505_v42 = vshrl.u32 %v1474_v17, 16  ;;  %v1524_v22 = vmul.u32 %v3038_v19, %v1470_v63 }
 0x4d5   :  { %v1482_v62 = vand.u32 65535, %v1478_v27  ;;  %v1483_v33 = vshrl.u32 %v1478_v27, 16 }
 0x4d6   :  { %v1507_v20 = vmul.u32 %v1505_v42, %v1480_v28  ;;  %v1508_v36 = vmul.u32 %v1504_v34, %v1481_v29  ;;  %v1506_v38 = vmul.u32 %v1504_v34, %v1480_v28  ;;  %v1509_v46 = vmul.u32 %v1505_v42, %v1481_v29 }
 0x4d7   :  { %v1485_v52 = vmul.u32 %v1483_v33, %v1480_v28  ;;  %v1486_v35 = vmul.u32 %v1482_v62, %v1481_v29  ;;  %v1484_v21 = vmul.u32 %v1482_v62, %v1480_v28  ;;  %v1487_v30 = vmul.u32 %v1483_v33, %v1481_v29 }
 0x4d8   :  { %v1510_v39 = vshll.u32 %v1507_v20, 16  ;;  %v1512_v44 = vshll.u32 %v1508_v36, 16  ;;  %v1511_v3 = vshrl.u32 %v1507_v20, 16  ;;  %v1513_v6 = vshrl.u32 %v1508_v36, 16 }
 0x4d9   :  { %v1488_v37 = vshll.u32 %v1485_v52, 16  ;;  %v1490_v40 = vshll.u32 %v1486_v35, 16  ;;  %v1489_v58 = vshrl.u32 %v1485_v52, 16  ;;  %v1491_v4 = vshrl.u32 %v1486_v35, 16 }
 0x4da   :  { %vm1514_vm14 = vc.u32 %v1506_v38, %v1510_v39  ;;  %v1516_v50 = vadd.s32 %v1510_v39, %v1506_v38 }
 0x4db   :  { %vm1492_vm13 = vc.u32 %v1484_v21, %v1488_v37  ;;  %v1494_v41 = vadd.s32 %v1488_v37, %v1484_v21  ;;  %v1515_v53 = vsel %vm1514_vm14, 1, %v2697_v48 }
 0x4dc   :  { %v1493_v49 = vsel %vm1492_vm13, 1, %v2697_v48  ;;  %v1517_v55 = vadd.s32 %v1515_v53, %v1509_v46  ;;  %vm1518_vm0 = vc.u32 %v1516_v50, %v1512_v44  ;;  %v1520_v18 = vadd.s32 %v1516_v50, %v1512_v44 }
 0x4dd   :  { %v1495_v45 = vadd.s32 %v1493_v49, %v1487_v30  ;;  %vm1496_vm15 = vc.u32 %v1494_v41, %v1490_v40  ;;  %v1519_v1 = vsel %vm1518_vm0, 1, %v2697_v48 }
 0x4de   :  { %v1497_v43 = vsel %vm1496_vm15, 1, %v2697_v48  ;;  %v1521_v16 = vadd.s32 %v1519_v1, %v1517_v55 }
 0x4df   :  { %v1499_v59 = vadd.s32 %v1497_v43, %v1495_v45 }
 0x4e0   :  { %v1522_v7 = vadd.s32 %v1521_v16, %v1511_v3 }
 0x4e1   :  { %v1500_v47 = vadd.s32 %v1499_v59, %v1489_v58 }
 0x4e2   :  { %v1523_v60 = vadd.s32 %v1522_v7, %v1513_v6 }
 0x4e3   :  { %v1501_v9 = vadd.s32 %v1500_v47, %v1491_v4  ;;  %v2521_v47 = vld [vmem:[#allocation7 + $0x5] ss:$0 sm:$0xff] }
 0x4e4   :  { %v1527_v61 = vadd.s32 1, %v1523_v60 }
 0x4e5   :  { %vm1526_vm1 = vc.u32 %v1501_v9, %v1520_v18  ;;  %v1525_v32 = vadd.s32 %v1520_v18, %v1501_v9 }
 0x4e6   :  { %v1528_v23 = vsel %vm1526_vm1, %v1527_v61, %v1523_v60  ;;  %v2522_v61 = vld [vmem:[#allocation8 + $0x5] ss:$0 sm:$0xff] }
 0x4e7   :  { %v1529_v24 = vadd.s32 %v1528_v23, %v1524_v22 }
 0x4e9   :  { %v1530_v10 = vadd.s32 536870912, %v1529_v24 }
 0x4eb   :  { %v1531_v25 = vshrl.u32 %v1530_v10, 30 }
 0x4ed   :  { %v1532_v26 = vshll.u32 %v1531_v25, 30  ;;  %v1555_v39 = vsub.s32 4, %v1531_v25 }
 0x4ef   :  { %v1533_v12 = vsub.s32 %v1529_v24, %v1532_v26  ;;  %v1556_v44 = vsel %vm1433_vm4, %v1555_v39, %v1531_v25 }
 0x4f0   :  { %v1558_v53 = vsel %vm1432_vm5, 0, %v1556_v44 }
 0x4f1   :  { %vm1534_vm2 = vcmp.lt.s32.totalorder %v1533_v12, 0  ;;  %v1535_v15 = vsub.s32 0, %v1533_v12  ;;  %v1575_v58 = vadd.s32 3, %v1558_v53 }
 0x4f3   :  { %v1536_v17 = vsel %vm1534_vm2, %v1535_v15, %v1533_v12  ;;  %v1576_v16 = vand.u32 3, %v1575_v58 }
 0x4f4   :  { %v1537_v27 = vclz %v1536_v17 }
 0x4f5   :  { %vm1578_vm6 = vcmp.eq.s32.totalorder %v1576_v16, 0  ;;  %vm1581_vm7 = vcmp.eq.s32.totalorder %v1576_v16, 2  ;;  %vm1577_vm8 = vcmp.lt.s32.totalorder %v1576_v16, 2 }
 0x4f6   :  { %v2416_v28 = vadd.s32 4294967294, %v1537_v27 }
 0x4f8   :  { %vm2417_vm3 = vcmp.lt.s32.totalorder %v2416_v28, 0 }
 0x4f9   :  { %v1540_v29 = vsel %vm2417_vm3, 0, %v2416_v28 }
 0x4fa   :  { %v1541_v62 = vsub.s32 32, %v1540_v29  ;;  %v1545_v33 = vsub.s32 4294967266, %v1540_v29  ;;  %v1542_v34 = vshll.u32 %v1533_v12, %v1540_v29 }
 0x4fc   :  { %v1543_v42 = vshrl.u32 %v1525_v32, %v1541_v62  ;;  %v1546_v52 = vadd.s32 127, %v1545_v33 }
 0x4fe   :  { %v1544_v19 = vor.u32 %v1543_v42, %v1542_v34  ;;  %v1547_v35 = vshll.u32 %v1546_v52, 23 }
 0x500   :  { %v1548_v20 = vor.u32 4788187, %v1547_v35  ;;  %v1551_v21 = vcvt.s32.f32 %v1544_v19 }
 0x502   :  { %v1549_v36 = vand.u32 2147483647, %v1548_v20 }
 0x504   :  { %v1552_v37 = vmul.f32 %v1551_v21, %v1549_v36 }
 0x506   :  { %v1553_v30 = vxor.u32 2147483648, %v1552_v37 }
 0x508   :  { %v1554_v38 = vsel %vm1433_vm4, %v1553_v30, %v1552_v37 }
 0x509   :  { %v1557_v40 = vsel %vm1432_vm5, %v3019_v51, %v1554_v38 }
 0x50a   :  { %v1559_v41 = vmul.f32 %v1557_v40, %v1557_v40 }
 0x50c   :  { %v1560_v46 = vmul.f32 -0.001358992, %v1559_v41  ;;  %v1567_v49 = vmul.f32 -0.00019511016, %v1559_v41 }
 0x50e   :  { %v1561_v50 = vadd.f32 0.041655596, %v1560_v46  ;;  %v1568_v45 = vadd.f32 0.008332121, %v1567_v49 }
 0x510   :  { %v1562_v54 = vmul.f32 %v1561_v50, %v1559_v41  ;;  %v1569_v43 = vmul.f32 %v1568_v45, %v1559_v41 }
 0x512   :  { %v1563_v55 = vadd.f32 -0.4999988, %v1562_v54  ;;  %v1570_v57 = vadd.f32 -0.16666654, %v1569_v43 }
 0x514   :  { %v1564_v59 = vmul.f32 %v1563_v55, %v1559_v41  ;;  %v1571_v1 = vmul.f32 %v1570_v57, %v1559_v41 }
 0x516   :  { %v1565_v3 = vadd.f32 1.0, %v1564_v59  ;;  %v1572_v13 = vadd.f32 1.0, %v1571_v1 }
 0x518   :  { %v1573_v31 = vmul.f32 %v1572_v13, %v1557_v40  ;;  %v1582_v56 = vxor.u32 2147483648, %v1565_v3 }
 0x51a   :  { %v1579_v4 = vxor.u32 2147483648, %v1573_v31  ;;  %v1583_v7 = vsel %vm1581_vm7, %v1582_v56, %v1573_v31 }
 0x51c   :  { %v1580_v6 = vsel %vm1578_vm6, %v1565_v3, %v1579_v4 }
 0x51d   :  { %v1584_v9 = vsel %vm1577_vm8, %v1580_v6, %v1583_v7 }
 0x51e   :  { %v1585_v18 = vsel %vm1574_vm9, nan, %v1584_v9 }
 0x51f   :  { %v1589_v63 = vmul.f32 %v2521_v47, %v1585_v18 }
 0x521   :  { %1592 = vrot.lane.b32.xlu2 %v1589_v63, %s2690_s2  ;;  %1590 = vrot.lane.b32.xlu1 %v1589_v63, %s2689_s27 }
 0x57b   :  { %v1593_v23 = vpop.permute.xlu2 %1592 }
 0x593   :  { %v1591_v60 = vpop.permute.xlu1 %1590 }
 0x594   :  { %v1594_v22 = vadd.f32 %v1591_v60, %v1589_v63 }
 0x596   :  { %v1595_v24 = vadd.f32 %v1594_v22, %v1593_v23 }
 0x598   :  { %v3082_v10 = vadd.f32 %v2522_v61, %v1595_v24 }
 0x59a   :  { %v1601_v25 = vand.u32 2139095040, %v3082_v10  ;;  %v1598_v51 = vand.u32 2147483647, %v3082_v10  ;;  %vm1600_vm6 = vcmp.lt.s32.totalorder %v3082_v10, 0 }
 0x59c   :  { %v1602_v26 = vshrl.u32 %v1601_v25, 23  ;;  %v1605_v17 = vand.u32 8388607, %v1598_v51  ;;  %vm1599_vm7 = vcmp.le.f32.partialorder %v1598_v51, 0.7853982 }
 0x59e   :  { %v2418_v12 = vadd.s32 4294967169, %v1602_v26  ;;  %v1606_v32 = vor.u32 8388608, %v1605_v17 }
 0x5a0   :  { %v1608_v15 = vadd.s32 1, %v2418_v12  ;;  %v3100_v40 = vshll.u32 %v1606_v32, 8 }
 0x5a2   :  { %vm1609_vm10 = vcmp.gt.s32.totalorder %v1608_v15, 0  ;;  %v1647_v55 = vand.u32 65535, %v3100_v40  ;;  %v1648_v58 = vshrl.u32 %v3100_v40, 16 }
 0x5a3   :  { %v1610_v27 = vsel %vm1609_vm10, %v1608_v15, 0 }
 0x5a4   :  { %v1612_v28 = vand.u32 31, %v1610_v27  ;;  %v3088_v62 = vshrl.u32 %v1610_v27, 5 }
 0x5a6   :  { %v1613_v29 = vsub.s32 32, %v1612_v28  ;;  %v1624_v33 = vshll.u32 %v2694_v8, %v1612_v28  ;;  %v1627_v34 = vshll.u32 %v2695_v11, %v1612_v28  ;;  %v1615_v19 = vshll.u32 %v2691_v0, %v1612_v28 }
 0x5a7   :  { %v1618_v20 = vshll.u32 %v2692_v2, %v1612_v28  ;;  %v1621_v21 = vshll.u32 %v2693_v5, %v1612_v28  ;;  %vm1633_vm11 = vcmp.lt.s32.totalorder %v3088_v62, 4  ;;  %vm1630_vm12 = vcmp.lt.s32.totalorder %v3088_v62, 1 }
 0x5a8   :  { %v1625_v42 = vshrl.u32 %v2695_v11, %v1613_v29  ;;  %v1628_v52 = vshrl.u32 %v2696_v14, %v1613_v29  ;;  %v1616_v35 = vshrl.u32 %v2692_v2, %v1613_v29  ;;  %v1619_v36 = vshrl.u32 %v2693_v5, %v1613_v29 }
 0x5a9   :  { %v1622_v37 = vshrl.u32 %v2694_v8, %v1613_v29  ;;  %vm1632_vm13 = vcmp.lt.s32.totalorder %v3088_v62, 3  ;;  %vm1631_vm14 = vcmp.lt.s32.totalorder %v3088_v62, 2  ;;  %v1614_v15 = vshrl.u32 %v2691_v0, %v1613_v29 }
 0x5aa   :  { %v1626_v30 = vor.u32 %v1625_v42, %v1624_v33  ;;  %v1629_v38 = vor.u32 %v1628_v52, %v1627_v34  ;;  %v1617_v39 = vor.u32 %v1616_v35, %v1615_v19  ;;  %v1620_v41 = vor.u32 %v1619_v36, %v1618_v20 }
 0x5ab   :  { %v1623_v46 = vor.u32 %v1622_v37, %v1621_v21 }
 0x5ac   :  { %v1639_v49 = vsel %vm1633_vm11, %v1626_v30, 920167782  ;;  %v1643_v44 = vsel %vm1633_vm11, %v1629_v38, 1326507024  ;;  %v1638_v50 = vsel %vm1630_vm12, %v1617_v39, %v1620_v41  ;;  %v1634_v34 = vsel %vm1630_vm12, %v1614_v15, %v1617_v39 }
 0x5ad   :  { %v1640_v45 = vsel %vm1632_vm13, %v1623_v46, %v1639_v49  ;;  %v1642_v53 = vsel %vm1630_vm12, %v1620_v41, %v1623_v46  ;;  %v1644_v43 = vsel %vm1632_vm13, %v1626_v30, %v1643_v44  ;;  %v1635_v25 = vsel %vm1633_vm11, %v1623_v46, 2102212464 }
 0x5ae   :  { %v1641_v54 = vsel %vm1631_vm14, %v1638_v50, %v1640_v45  ;;  %v1645_v57 = vsel %vm1631_vm14, %v1642_v53, %v1644_v43  ;;  %v1636_v42 = vsel %vm1632_vm13, %v1620_v41, %v1635_v25  ;;  %vm1741_vm11 = vweird.f32 %v3082_v10 }
 0x5af   :  { %v1671_v59 = vand.u32 65535, %v1641_v54  ;;  %v1672_v1 = vshrl.u32 %v1641_v54, 16  ;;  %v1649_v3 = vand.u32 65535, %v1645_v57  ;;  %v1650_v13 = vshrl.u32 %v1645_v57, 16 }
 0x5b0   :  { %v1637_v21 = vsel %vm1631_vm14, %v1634_v34, %v1636_v42 }
 0x5b1   :  { %v1674_v16 = vmul.u32 %v1672_v1, %v1647_v55  ;;  %v1675_v31 = vmul.u32 %v1671_v59, %v1648_v58  ;;  %v1652_v56 = vmul.u32 %v1650_v13, %v1647_v55  ;;  %v1653_v4 = vmul.u32 %v1649_v3, %v1648_v58 }
 0x5b2   :  { %v1673_v47 = vmul.u32 %v1671_v59, %v1647_v55  ;;  %v1651_v7 = vmul.u32 %v1649_v3, %v1647_v55  ;;  %v1676_v18 = vmul.u32 %v1672_v1, %v1648_v58  ;;  %v1654_v63 = vmul.u32 %v1650_v13, %v1648_v58 }
 0x5b3   :  { %v1677_v6 = vshll.u32 %v1674_v16, 16  ;;  %v1655_v9 = vshll.u32 %v1652_v56, 16  ;;  %v1679_v60 = vshll.u32 %v1675_v31, 16  ;;  %v1657_v22 = vshll.u32 %v1653_v4, 16 }
 0x5b4   :  { %v1678_v32 = vshrl.u32 %v1674_v16, 16  ;;  %v1656_v52 = vshrl.u32 %v1652_v56, 16  ;;  %v1680_v35 = vshrl.u32 %v1675_v31, 16  ;;  %v1658_v36 = vshrl.u32 %v1653_v4, 16 }
 0x5b5   :  { %vm1681_vm15 = vc.u32 %v1673_v47, %v1677_v6  ;;  %v1683_v61 = vadd.s32 %v1677_v6, %v1673_v47  ;;  %vm1659_vm0 = vc.u32 %v1651_v7, %v1655_v9  ;;  %v1661_v23 = vadd.s32 %v1655_v9, %v1651_v7 }
 0x5b6   :  { %v1682_v24 = vsel %vm1681_vm15, 1, %v2697_v48  ;;  %v1660_v26 = vsel %vm1659_vm0, 1, %v2697_v48  ;;  %v1691_v49 = vmul.u32 %v3100_v40, %v1637_v21 }
 0x5b7   :  { %v1684_v12 = vadd.s32 %v1682_v24, %v1676_v18  ;;  %vm1685_vm1 = vc.u32 %v1683_v61, %v1679_v60  ;;  %v1662_v17 = vadd.s32 %v1660_v26, %v1654_v63  ;;  %vm1663_vm2 = vc.u32 %v1661_v23, %v1657_v22 }
 0x5b8   :  { %v1686_v27 = vsel %vm1685_vm1, 1, %v2697_v48  ;;  %v1664_v28 = vsel %vm1663_vm2, 1, %v2697_v48  ;;  %v1687_v38 = vadd.s32 %v1683_v61, %v1679_v60 }
 0x5b9   :  { %v1688_v33 = vadd.s32 %v1686_v27, %v1684_v12  ;;  %v1666_v19 = vadd.s32 %v1664_v28, %v1662_v17 }
 0x5bb   :  { %v1689_v20 = vadd.s32 %v1688_v33, %v1678_v32  ;;  %v1667_v29 = vadd.s32 %v1666_v19, %v1656_v52 }
 0x5bd   :  { %v1690_v37 = vadd.s32 %v1689_v20, %v1680_v35  ;;  %v1668_v30 = vadd.s32 %v1667_v29, %v1658_v36  ;;  %v2523_v20 = vld [vmem:[#allocation7 + $0x6] ss:$0 sm:$0xff] }
 0x5bf   :  { %v1694_v46 = vadd.s32 1, %v1690_v37  ;;  %vm1693_vm3 = vc.u32 %v1668_v30, %v1687_v38  ;;  %v1692_v58 = vadd.s32 %v1687_v38, %v1668_v30 }
 0x5c1   :  { %v1695_v39 = vsel %vm1693_vm3, %v1694_v46, %v1690_v37  ;;  %v2524_v46 = vld [vmem:[#allocation8 + $0x6] ss:$0 sm:$0xff] }
 0x5c2   :  { %v1696_v44 = vadd.s32 %v1695_v39, %v1691_v49 }
 0x5c4   :  { %v1697_v50 = vadd.s32 536870912, %v1696_v44 }
 0x5c6   :  { %v1698_v41 = vshrl.u32 %v1697_v50, 30 }
 0x5c8   :  { %v1699_v45 = vshll.u32 %v1698_v41, 30  ;;  %v1722_v18 = vsub.s32 4, %v1698_v41 }
 0x5ca   :  { %v1700_v53 = vsub.s32 %v1696_v44, %v1699_v45  ;;  %v1723_v23 = vsel %vm1600_vm6, %v1722_v18, %v1698_v41 }
 0x5cb   :  { %v1725_v26 = vsel %vm1599_vm7, 0, %v1723_v23 }
 0x5cc   :  { %vm1701_vm4 = vcmp.lt.s32.totalorder %v1700_v53, 0  ;;  %v1702_v54 = vsub.s32 0, %v1700_v53  ;;  %v1742_v28 = vadd.s32 3, %v1725_v26 }
 0x5ce   :  { %v1703_v43 = vsel %vm1701_vm4, %v1702_v54, %v1700_v53  ;;  %v1743_v42 = vand.u32 3, %v1742_v28 }
 0x5cf   :  { %v1704_v55 = vclz %v1703_v43 }
 0x5d0   :  { %vm1745_vm8 = vcmp.eq.s32.totalorder %v1743_v42, 0  ;;  %vm1748_vm9 = vcmp.eq.s32.totalorder %v1743_v42, 2  ;;  %vm1744_vm10 = vcmp.lt.s32.totalorder %v1743_v42, 2 }
 0x5d1   :  { %v2419_v57 = vadd.s32 4294967294, %v1704_v55 }
 0x5d3   :  { %vm2420_vm5 = vcmp.lt.s32.totalorder %v2419_v57, 0 }
 0x5d4   :  { %v1707_v62 = vsel %vm2420_vm5, 0, %v2419_v57 }
 0x5d5   :  { %v1708_v59 = vsub.s32 32, %v1707_v62  ;;  %v1712_v1 = vsub.s32 4294967266, %v1707_v62  ;;  %v1709_v3 = vshll.u32 %v1700_v53, %v1707_v62 }
 0x5d7   :  { %v1710_v13 = vshrl.u32 %v1692_v58, %v1708_v59  ;;  %v1713_v40 = vadd.s32 127, %v1712_v1 }
 0x5d9   :  { %v1711_v16 = vor.u32 %v1710_v13, %v1709_v3  ;;  %v1714_v31 = vshll.u32 %v1713_v40, 23 }
 0x5db   :  { %v1715_v56 = vor.u32 4788187, %v1714_v31  ;;  %v1718_v47 = vcvt.s32.f32 %v1711_v16 }
 0x5dd   :  { %v1716_v4 = vand.u32 2147483647, %v1715_v56 }
 0x5df   :  { %v1719_v6 = vmul.f32 %v1718_v47, %v1716_v4 }
 0x5e1   :  { %v1720_v7 = vxor.u32 2147483648, %v1719_v6 }
 0x5e3   :  { %v1721_v9 = vsel %vm1600_vm6, %v1720_v7, %v1719_v6 }
 0x5e4   :  { %v1724_v63 = vsel %vm1599_vm7, %v3082_v10, %v1721_v9 }
 0x5e5   :  { %v1726_v60 = vmul.f32 %v1724_v63, %v1724_v63 }
 0x5e7   :  { %v1727_v61 = vmul.f32 -0.001358992, %v1726_v60  ;;  %v1734_v22 = vmul.f32 -0.00019511016, %v1726_v60 }
 0x5e9   :  { %v1728_v24 = vadd.f32 0.041655596, %v1727_v61  ;;  %v1735_v25 = vadd.f32 0.008332121, %v1734_v22 }
 0x5eb   :  { %v1729_v12 = vmul.f32 %v1728_v24, %v1726_v60  ;;  %v1736_v15 = vmul.f32 %v1735_v25, %v1726_v60 }
 0x5ed   :  { %v1730_v17 = vadd.f32 -0.4999988, %v1729_v12  ;;  %v1737_v27 = vadd.f32 -0.16666654, %v1736_v15 }
 0x5ef   :  { %v1731_v32 = vmul.f32 %v1730_v17, %v1726_v60  ;;  %v1738_v33 = vmul.f32 %v1737_v27, %v1726_v60 }
 0x5f1   :  { %v1732_v34 = vadd.f32 1.0, %v1731_v32  ;;  %v1739_v51 = vadd.f32 1.0, %v1738_v33 }
 0x5f3   :  { %v1740_v52 = vmul.f32 %v1739_v51, %v1724_v63  ;;  %v1749_v19 = vxor.u32 2147483648, %v1732_v34 }
 0x5f5   :  { %v1746_v35 = vxor.u32 2147483648, %v1740_v52  ;;  %v1750_v29 = vsel %vm1748_vm9, %v1749_v19, %v1740_v52 }
 0x5f7   :  { %v1747_v36 = vsel %vm1745_vm8, %v1732_v34, %v1746_v35 }
 0x5f8   :  { %v1751_v21 = vsel %vm1744_vm10, %v1747_v36, %v1750_v29 }
 0x5f9   :  { %v1752_v37 = vsel %vm1741_vm11, nan, %v1751_v21 }
 0x5fa   :  { %v1756_v30 = vmul.f32 %v2523_v20, %v1752_v37 }
 0x5fc   :  { %1759 = vrot.lane.b32.xlu1 %v1756_v30, %s2690_s2  ;;  %1757 = vrot.lane.b32.xlu0 %v1756_v30, %s2689_s27 }
 0x66e   :  { %v1758_v38 = vpop.permute.xlu0 %1757  ;;  %v1760_v39 = vpop.permute.xlu1 %1759 }
 0x66f   :  { %v1761_v49 = vadd.f32 %v1758_v38, %v1756_v30 }
 0x671   :  { %v1762_v44 = vadd.f32 %v1761_v49, %v1760_v39 }
 0x673   :  { %v3145_v50 = vadd.f32 %v2524_v46, %v1762_v44 }
 0x675   :  { %v1768_v41 = vand.u32 2139095040, %v3145_v50  ;;  %v1765_v10 = vand.u32 2147483647, %v3145_v50  ;;  %vm1767_vm8 = vcmp.lt.s32.totalorder %v3145_v50, 0 }
 0x677   :  { %v1769_v45 = vshrl.u32 %v1768_v41, 23  ;;  %v1772_v43 = vand.u32 8388607, %v1765_v10  ;;  %vm1766_vm9 = vcmp.le.f32.partialorder %v1765_v10, 0.7853982 }
 0x679   :  { %v2421_v53 = vadd.s32 4294967169, %v1769_v45  ;;  %v1773_v58 = vor.u32 8388608, %v1772_v43 }
 0x67b   :  { %v1775_v54 = vadd.s32 1, %v2421_v53  ;;  %v3163_v63 = vshll.u32 %v1773_v58, 8 }
 0x67d   :  { %vm1776_vm12 = vcmp.gt.s32.totalorder %v1775_v54, 0  ;;  %v1814_v17 = vand.u32 65535, %v3163_v63  ;;  %v1815_v28 = vshrl.u32 %v3163_v63, 16 }
 0x67e   :  { %v1777_v55 = vsel %vm1776_vm12, %v1775_v54, 0 }
 0x67f   :  { %v1779_v57 = vand.u32 31, %v1777_v55  ;;  %v3151_v59 = vshrl.u32 %v1777_v55, 5 }
 0x681   :  { %v1780_v62 = vsub.s32 32, %v1779_v57  ;;  %v1791_v1 = vshll.u32 %v2694_v8, %v1779_v57  ;;  %v1794_v3 = vshll.u32 %v2695_v11, %v1779_v57  ;;  %v1782_v16 = vshll.u32 %v2691_v0, %v1779_v57 }
 0x682   :  { %v1785_v56 = vshll.u32 %v2692_v2, %v1779_v57  ;;  %v1788_v47 = vshll.u32 %v2693_v5, %v1779_v57  ;;  %vm1800_vm13 = vcmp.lt.s32.totalorder %v3151_v59, 4  ;;  %vm1797_vm14 = vcmp.lt.s32.totalorder %v3151_v59, 1 }
 0x683   :  { %v1792_v13 = vshrl.u32 %v2695_v11, %v1780_v62  ;;  %v1795_v40 = vshrl.u32 %v2696_v14, %v1780_v62  ;;  %v1783_v31 = vshrl.u32 %v2692_v2, %v1780_v62  ;;  %v1786_v4 = vshrl.u32 %v2693_v5, %v1780_v62 }
 0x684   :  { %v1789_v6 = vshrl.u32 %v2694_v8, %v1780_v62  ;;  %vm1799_vm15 = vcmp.lt.s32.totalorder %v3151_v59, 3  ;;  %vm1798_vm0 = vcmp.lt.s32.totalorder %v3151_v59, 2  ;;  %v1781_v54 = vshrl.u32 %v2691_v0, %v1780_v62 }
 0x685   :  { %v1793_v7 = vor.u32 %v1792_v13, %v1791_v1  ;;  %v1796_v9 = vor.u32 %v1795_v40, %v1794_v3  ;;  %v1784_v18 = vor.u32 %v1783_v31, %v1782_v16  ;;  %v1787_v60 = vor.u32 %v1786_v4, %v1785_v56 }
 0x686   :  { %v1790_v61 = vor.u32 %v1789_v6, %v1788_v47 }
 0x687   :  { %v1806_v22 = vsel %vm1800_vm13, %v1793_v7, 920167782  ;;  %v1810_v23 = vsel %vm1800_vm13, %v1796_v9, 1326507024  ;;  %v1805_v24 = vsel %vm1797_vm14, %v1784_v18, %v1787_v60  ;;  %v1801_v3 = vsel %vm1797_vm14, %v1781_v54, %v1784_v18 }
 0x688   :  { %v1807_v25 = vsel %vm1799_vm15, %v1790_v61, %v1806_v22  ;;  %v1809_v26 = vsel %vm1797_vm14, %v1787_v60, %v1790_v61  ;;  %v1811_v15 = vsel %vm1799_vm15, %v1793_v7, %v1810_v23  ;;  %v1802_v41 = vsel %vm1800_vm13, %v1790_v61, 2102212464 }
 0x689   :  { %v1808_v12 = vsel %vm1798_vm0, %v1805_v24, %v1807_v25  ;;  %v1812_v27 = vsel %vm1798_vm0, %v1809_v26, %v1811_v15  ;;  %v1803_v13 = vsel %vm1799_vm15, %v1787_v60, %v1802_v41  ;;  %vm1908_vm13 = vweird.f32 %v3145_v50 }
 0x68a   :  { %v1838_v32 = vand.u32 65535, %v1808_v12  ;;  %v1839_v33 = vshrl.u32 %v1808_v12, 16  ;;  %v1816_v34 = vand.u32 65535, %v1812_v27  ;;  %v1817_v51 = vshrl.u32 %v1812_v27, 16 }
 0x68b   :  { %v1804_v47 = vsel %vm1798_vm0, %v1801_v3, %v1803_v13 }
 0x68c   :  { %v1841_v42 = vmul.u32 %v1839_v33, %v1814_v17  ;;  %v1842_v52 = vmul.u32 %v1838_v32, %v1815_v28  ;;  %v1819_v19 = vmul.u32 %v1817_v51, %v1814_v17  ;;  %v1820_v35 = vmul.u32 %v1816_v34, %v1815_v28 }
 0x68d   :  { %v1840_v20 = vmul.u32 %v1838_v32, %v1814_v17  ;;  %v1818_v29 = vmul.u32 %v1816_v34, %v1814_v17  ;;  %v1843_v37 = vmul.u32 %v1839_v33, %v1815_v28  ;;  %v1821_v30 = vmul.u32 %v1817_v51, %v1815_v28 }
 0x68e   :  { %v1844_v36 = vshll.u32 %v1841_v42, 16  ;;  %v1822_v21 = vshll.u32 %v1819_v19, 16  ;;  %v1846_v38 = vshll.u32 %v1842_v52, 16  ;;  %v1824_v49 = vshll.u32 %v1820_v35, 16 }
 0x68f   :  { %v1845_v58 = vshrl.u32 %v1841_v42, 16  ;;  %v1823_v40 = vshrl.u32 %v1819_v19, 16  ;;  %v1847_v31 = vshrl.u32 %v1842_v52, 16  ;;  %v1825_v4 = vshrl.u32 %v1820_v35, 16 }
 0x690   :  { %vm1848_vm1 = vc.u32 %v1840_v20, %v1844_v36  ;;  %v1850_v46 = vadd.s32 %v1844_v36, %v1840_v20  ;;  %vm1826_vm2 = vc.u32 %v1818_v29, %v1822_v21  ;;  %v1828_v39 = vadd.s32 %v1822_v21, %v1818_v29 }
 0x691   :  { %v1849_v44 = vsel %vm1848_vm1, 1, %v2697_v48  ;;  %v1827_v45 = vsel %vm1826_vm2, 1, %v2697_v48  ;;  %v1858_v22 = vmul.u32 %v3163_v63, %v1804_v47 }
 0x692   :  { %v1851_v53 = vadd.s32 %v1849_v44, %v1843_v37  ;;  %vm1852_vm3 = vc.u32 %v1850_v46, %v1846_v38  ;;  %v1829_v43 = vadd.s32 %v1827_v45, %v1821_v30  ;;  %vm1830_vm4 = vc.u32 %v1828_v39, %v1824_v49 }
 0x693   :  { %v1853_v55 = vsel %vm1852_vm3, 1, %v2697_v48  ;;  %v1831_v57 = vsel %vm1830_vm4, 1, %v2697_v48  ;;  %v1854_v9 = vadd.s32 %v1850_v46, %v1846_v38 }
 0x694   :  { %v1855_v1 = vadd.s32 %v1853_v55, %v1851_v53  ;;  %v1833_v16 = vadd.s32 %v1831_v57, %v1829_v43 }
 0x696   :  { %v1856_v56 = vadd.s32 %v1855_v1, %v1845_v58  ;;  %v1834_v62 = vadd.s32 %v1833_v16, %v1823_v40 }
 0x698   :  { %v1857_v6 = vadd.s32 %v1856_v56, %v1847_v31  ;;  %v1835_v7 = vadd.s32 %v1834_v62, %v1825_v4  ;;  %v2525_v56 = vld [vmem:[#allocation7 + $0x7] ss:$0 sm:$0xff] }
 0x69a   :  { %v1861_v61 = vadd.s32 1, %v1857_v6  ;;  %vm1860_vm5 = vc.u32 %v1835_v7, %v1854_v9  ;;  %v1859_v28 = vadd.s32 %v1854_v9, %v1835_v7  ;;  %v2102_v9 = vld [vmem:[#allocation10 + $0x78] sm:$0xff] }
 0x69b   :  { %2107 = vmatpush.msra.mxu0 %v2102_v9 }
 0x69c   :  { %v1862_v18 = vsel %vm1860_vm5, %v1861_v61, %v1857_v6  ;;  %v2101_v61 = vld [vmem:[#allocation10 + $0x70] sm:$0xff] }
 0x69d   :  { %v1863_v23 = vadd.s32 %v1862_v18, %v1858_v22  ;;  %v2100_v22 = vld [vmem:[#allocation10 + $0x68] sm:$0xff]  ;;  %2108 = vmatpush.msra.mxu0 %v2101_v61  ;;  %v2099_v18 = vld [vmem:[#allocation10 + $0x60] sm:$0xff] }
 0x69f   :  { %v1864_v24 = vadd.s32 536870912, %v1863_v23  ;;  %2109 = vmatpush.msra.mxu0 %v2100_v22 }
 0x6a1   :  { %v1865_v60 = vshrl.u32 %v1864_v24, 30  ;;  %v2098_v24 = vld [vmem:[#allocation10 + $0x58] sm:$0xff]  ;;  %2110 = vmatpush.msra.mxu0 %v2099_v18 }
 0x6a3   :  { %v1866_v25 = vshll.u32 %v1865_v60, 30  ;;  %v1889_v37 = vsub.s32 4, %v1865_v60  ;;  %2111 = vmatpush.msra.mxu0 %v2098_v24 }
 0x6a5   :  { %v1867_v26 = vsub.s32 %v1863_v23, %v1866_v25  ;;  %v1890_v39 = vsel %vm1767_vm8, %v1889_v37, %v1865_v60  ;;  %v2526_v25 = vld [vmem:[#allocation8 + $0x7] ss:$0 sm:$0xff]  ;;  %v2088_v37 = vld [vmem:[#allocation10 + $0x8] sm:$0xff] }
 0x6a6   :  { %v1892_v45 = vsel %vm1766_vm9, 0, %v1890_v39 }
 0x6a7   :  { %vm1868_vm6 = vcmp.lt.s32.totalorder %v1867_v26, 0  ;;  %v1869_v12 = vsub.s32 0, %v1867_v26  ;;  %v1909_v57 = vadd.s32 3, %v1892_v45 }
 0x6a9   :  { %v1870_v15 = vsel %vm1868_vm6, %v1869_v12, %v1867_v26  ;;  %v1910_v13 = vand.u32 3, %v1909_v57 }
 0x6aa   :  { %v1871_v17 = vclz %v1870_v15  ;;  %v2096_v15 = vld [vmem:[#allocation10 + $0x48] sm:$0xff] }
 0x6ab   :  { %vm1912_vm10 = vcmp.eq.s32.totalorder %v1910_v13, 0  ;;  %vm1915_vm11 = vcmp.eq.s32.totalorder %v1910_v13, 2  ;;  %vm1911_vm12 = vcmp.lt.s32.totalorder %v1910_v13, 2 }
 0x6ac   :  { %v2422_v27 = vadd.s32 4294967294, %v1871_v17 }
 0x6ae   :  { %vm2423_vm7 = vcmp.lt.s32.totalorder %v2422_v27, 0 }
 0x6af   :  { %v1874_v59 = vsel %vm2423_vm7, 0, %v2422_v27  ;;  %v2095_v27 = vld [vmem:[#allocation10 + $0x40] sm:$0xff] }
 0x6b0   :  { %v1875_v32 = vsub.s32 32, %v1874_v59  ;;  %v1879_v33 = vsub.s32 4294967266, %v1874_v59  ;;  %v1876_v34 = vshll.u32 %v1867_v26, %v1874_v59 }
 0x6b2   :  { %v1877_v51 = vshrl.u32 %v1859_v28, %v1875_v32  ;;  %v1880_v63 = vadd.s32 127, %v1879_v33  ;;  %v2094_v28 = vld [vmem:[#allocation10 + $0x38] sm:$0xff]  ;;  %v2093_v33 = vld [vmem:[#allocation10 + $0x30] sm:$0xff] }
 0x6b4   :  { %v1878_v42 = vor.u32 %v1877_v51, %v1876_v34  ;;  %v1881_v52 = vshll.u32 %v1880_v63, 23  ;;  %v2092_v51 = vld [vmem:[#allocation10 + $0x28] sm:$0xff] }
 0x6b6   :  { %v1882_v19 = vor.u32 4788187, %v1881_v52  ;;  %v1885_v20 = vcvt.s32.f32 %v1878_v42  ;;  %v2091_v52 = vld [vmem:[#allocation10 + $0x20] sm:$0xff] }
 0x6b8   :  { %v1883_v35 = vand.u32 2147483647, %v1882_v19  ;;  %v2090_v19 = vld [vmem:[#allocation10 + $0x18] sm:$0xff] }
 0x6ba   :  { %v1886_v36 = vmul.f32 %v1885_v20, %v1883_v35 }
 0x6bc   :  { %v1887_v29 = vxor.u32 2147483648, %v1886_v36 }
 0x6be   :  { %v1888_v21 = vsel %vm1767_vm8, %v1887_v29, %v1886_v36  ;;  %v2089_v29 = vld [vmem:[#allocation10 + $0x10] sm:$0xff] }
 0x6bf   :  { %v1891_v30 = vsel %vm1766_vm9, %v3145_v50, %v1888_v21  ;;  %v2097_v50 = vld [vmem:[#allocation10 + $0x50] sm:$0xff] }
 0x6c0   :  { %v1893_v38 = vmul.f32 %v1891_v30, %v1891_v30  ;;  %2112 = vmatpush.msra.mxu0 %v2097_v50 }
 0x6c2   :  { %v1894_v46 = vmul.f32 -0.001358992, %v1893_v38  ;;  %v1901_v49 = vmul.f32 -0.00019511016, %v1893_v38  ;;  %2113 = vmatpush.msra.mxu0 %v2096_v15 }
 0x6c4   :  { %v1895_v44 = vadd.f32 0.041655596, %v1894_v46  ;;  %v1902_v41 = vadd.f32 0.008332121, %v1901_v49  ;;  %2114 = vmatpush.msra.mxu0 %v2095_v27 }
 0x6c6   :  { %v1896_v53 = vmul.f32 %v1895_v44, %v1893_v38  ;;  %v1903_v54 = vmul.f32 %v1902_v41, %v1893_v38  ;;  %2115 = vmatpush.msra.mxu0 %v2094_v28  ;;  %v2087_v41 = vld [vmem:[#allocation10] sm:$0xff] }
 0x6c8   :  { %v1897_v43 = vadd.f32 -0.4999988, %v1896_v53  ;;  %v1904_v55 = vadd.f32 -0.16666654, %v1903_v54  ;;  %2116 = vmatpush.msra.mxu0 %v2093_v33 }
 0x6ca   :  { %v1898_v58 = vmul.f32 %v1897_v43, %v1893_v38  ;;  %v1905_v1 = vmul.f32 %v1904_v55, %v1893_v38  ;;  %2117 = vmatpush.msra.mxu0 %v2092_v51 }
 0x6cc   :  { %v1899_v3 = vadd.f32 1.0, %v1898_v58  ;;  %v1906_v10 = vadd.f32 1.0, %v1905_v1  ;;  %2118 = vmatpush.msra.mxu0 %v2091_v52 }
 0x6ce   :  { %v1907_v40 = vmul.f32 %v1906_v10, %v1891_v30  ;;  %v1916_v16 = vxor.u32 2147483648, %v1899_v3  ;;  %2119 = vmatpush.msra.mxu0 %v2090_v19 }
 0x6d0   :  { %v1913_v31 = vxor.u32 2147483648, %v1907_v40  ;;  %v1917_v62 = vsel %vm1915_vm11, %v1916_v16, %v1907_v40  ;;  %2120 = vmatpush.msra.mxu0 %v2089_v29 }
 0x6d2   :  { %v1914_v4 = vsel %vm1912_vm10, %v1899_v3, %v1913_v31  ;;  %2121 = vmatpush.msra.mxu0 %v2088_v37 }
 0x6d3   :  { %v1918_v47 = vsel %vm1911_vm12, %v1914_v4, %v1917_v62 }
 0x6d4   :  { %v1919_v6 = vsel %vm1908_vm13, nan, %v1918_v47  ;;  %2122 = vmatpush.msra.mxu0 %v2087_v41 }
 0x6d5   :  { %v1923_v7 = vmul.f32 %v2525_v56, %v1919_v6 }
 0x6d7   :  { %1926 = vrot.lane.b32.xlu0 %v1923_v7, %s2690_s2  ;;  %1924 = vrot.lane.b32.xlu2 %v1923_v7, %s2689_s27 }
 0x731   :  { %v1925_v23 = vpop.permute.xlu2 %1924 }
 0x732   :  { %v1928_v60 = vadd.f32 %v1925_v23, %v1923_v7 }
 0x749   :  { %v1927_v26 = vpop.permute.xlu0 %1926 }
 0x74a   :  { %v1929_v12 = vadd.f32 %v1928_v60, %v1927_v26 }
 0x74c   :  { %v3208_v17 = vadd.f32 %v2526_v25, %v1929_v12 }
 0x74e   :  { %v1935_v59 = vand.u32 2139095040, %v3208_v17  ;;  %v1932_v63 = vand.u32 2147483647, %v3208_v17  ;;  %vm1934_vm10 = vcmp.lt.s32.totalorder %v3208_v17, 0 }
 0x750   :  { %v1936_v32 = vshrl.u32 %v1935_v59, 23  ;;  %v1939_v35 = vand.u32 8388607, %v1932_v63  ;;  %vm1933_vm11 = vcmp.le.f32.partialorder %v1932_v63, 0.7853982 }
 0x752   :  { %v2424_v34 = vadd.s32 4294967169, %v1936_v32  ;;  %v1940_v30 = vor.u32 8388608, %v1939_v35 }
 0x754   :  { %v1942_v42 = vadd.s32 1, %v2424_v34  ;;  %v3233_v1 = vshll.u32 %v1940_v30, 8 }
 0x756   :  { %vm1943_vm14 = vcmp.gt.s32.totalorder %v1942_v42, 0  ;;  %v1981_v56 = vand.u32 65535, %v3233_v1  ;;  %v1982_v62 = vshrl.u32 %v3233_v1, 16 }
 0x757   :  { %v1944_v20 = vsel %vm1943_vm14, %v1942_v42, 0 }
 0x758   :  { %v1946_v36 = vand.u32 31, %v1944_v20  ;;  %v3216_v38 = vshrl.u32 %v1944_v20, 5 }
 0x75a   :  { %v3214_v21 = vsub.s32 32, %v1946_v36  ;;  %v1958_v46 = vshll.u32 %v2694_v8, %v1946_v36  ;;  %v1961_v49 = vshll.u32 %v2695_v11, %v1946_v36  ;;  %v1949_v45 = vshll.u32 %v2691_v0, %v1946_v36 }
 0x75b   :  { %v1952_v54 = vshll.u32 %v2692_v2, %v1946_v36  ;;  %v1955_v55 = vshll.u32 %v2693_v5, %v1946_v36  ;;  %vm1967_vm15 = vcmp.lt.s32.totalorder %v3216_v38, 4  ;;  %vm1964_vm0 = vcmp.lt.s32.totalorder %v3216_v38, 1 }
 0x75c   :  { %v1959_v39 = vshrl.u32 %v2695_v11, %v3214_v21  ;;  %v1962_v44 = vshrl.u32 %v2696_v14, %v3214_v21  ;;  %v1950_v53 = vshrl.u32 %v2692_v2, %v3214_v21  ;;  %v1953_v43 = vshrl.u32 %v2693_v5, %v3214_v21 }
 0x75d   :  { %v1956_v11 = vshrl.u32 %v2694_v8, %v3214_v21  ;;  %vm1966_vm1 = vcmp.lt.s32.totalorder %v3216_v38, 3  ;;  %vm1965_vm2 = vcmp.lt.s32.totalorder %v3216_v38, 2  ;;  %v1948_v42 = vshrl.u32 %v2691_v0, %v3214_v21 }
 0x75e   :  { %v1960_v57 = vor.u32 %v1959_v39, %v1958_v46  ;;  %v1963_v58 = vor.u32 %v1962_v44, %v1961_v49  ;;  %v1951_v14 = vor.u32 %v1950_v53, %v1949_v45  ;;  %v1954_v3 = vor.u32 %v1953_v43, %v1952_v54 }
 0x75f   :  { %v1957_v10 = vor.u32 %v1956_v11, %v1955_v55 }
 0x760   :  { %v1973_v2 = vsel %vm1967_vm15, %v1960_v57, 920167782  ;;  %v1977_v13 = vsel %vm1967_vm15, %v1963_v58, 1326507024  ;;  %v1972_v5 = vsel %vm1964_vm0, %v1951_v14, %v1954_v3  ;;  %v1968_v29 = vsel %vm1964_vm0, %v1948_v42, %v1951_v14 }
 0x761   :  { %v1974_v8 = vsel %vm1966_vm1, %v1957_v10, %v1973_v2  ;;  %v1976_v40 = vsel %vm1964_vm0, %v1954_v3, %v1957_v10  ;;  %v1978_v31 = vsel %vm1966_vm1, %v1960_v57, %v1977_v13  ;;  %v1969_v33 = vsel %vm1967_vm15, %v1957_v10, 2102212464 }
 0x762   :  { %v1975_v16 = vsel %vm1965_vm2, %v1972_v5, %v1974_v8  ;;  %v1979_v4 = vsel %vm1965_vm2, %v1976_v40, %v1978_v31  ;;  %v1970_v37 = vsel %vm1966_vm1, %v1954_v3, %v1969_v33  ;;  %vm2075_vm15 = vweird.f32 %v3208_v17 }
 0x763   :  { %v2005_v47 = vand.u32 65535, %v1975_v16  ;;  %v2006_v6 = vshrl.u32 %v1975_v16, 16  ;;  %v1983_v7 = vand.u32 65535, %v1979_v4  ;;  %v1984_v9 = vshrl.u32 %v1979_v4, 16 }
 0x764   :  { %v1971_v21 = vsel %vm1965_vm2, %v1968_v29, %v1970_v37 }
 0x765   :  { %v2008_v61 = vmul.u32 %v2006_v6, %v1981_v56  ;;  %v2009_v22 = vmul.u32 %v2005_v47, %v1982_v62  ;;  %v1986_v18 = vmul.u32 %v1984_v9, %v1981_v56  ;;  %v1987_v23 = vmul.u32 %v1983_v7, %v1982_v62 }
 0x766   :  { %v2007_v24 = vmul.u32 %v2005_v47, %v1981_v56  ;;  %v1985_v25 = vmul.u32 %v1983_v7, %v1981_v56  ;;  %v2010_v26 = vmul.u32 %v2006_v6, %v1982_v62  ;;  %v1988_v12 = vmul.u32 %v1984_v9, %v1982_v62 }
 0x767   :  { %v2011_v60 = vshll.u32 %v2008_v61, 16  ;;  %v1989_v50 = vshll.u32 %v1986_v18, 16  ;;  %v2013_v15 = vshll.u32 %v2009_v22, 16  ;;  %v1991_v59 = vshll.u32 %v1987_v23, 16 }
 0x768   :  { %v2012_v20 = vshrl.u32 %v2008_v61, 16  ;;  %v1990_v30 = vshrl.u32 %v1986_v18, 16  ;;  %v2014_v49 = vshrl.u32 %v2009_v22, 16  ;;  %v1992_v44 = vshrl.u32 %v1987_v23, 16 }
 0x769   :  { %vm2015_vm3 = vc.u32 %v2007_v24, %v2011_v60  ;;  %v2017_v27 = vadd.s32 %v2011_v60, %v2007_v24  ;;  %vm1993_vm4 = vc.u32 %v1985_v25, %v1989_v50  ;;  %v1995_v28 = vadd.s32 %v1989_v50, %v1985_v25 }
 0x76a   :  { %v2016_v32 = vsel %vm2015_vm3, 1, %v2697_v48  ;;  %v1994_v34 = vsel %vm1993_vm4, 1, %v2697_v48  ;;  %v2025_v54 = vmul.u32 %v3233_v1, %v1971_v21 }
 0x76b   :  { %v2018_v51 = vadd.s32 %v2016_v32, %v2010_v26  ;;  %vm2019_vm5 = vc.u32 %v2017_v27, %v2013_v15  ;;  %v1996_v52 = vadd.s32 %v1994_v34, %v1988_v12  ;;  %vm1997_vm6 = vc.u32 %v1995_v28, %v1991_v59 }
 0x76c   :  { %v2020_v19 = vsel %vm2019_vm5, 1, %v2697_v48  ;;  %v1998_v35 = vsel %vm1997_vm6, 1, %v2697_v48  ;;  %v2021_v48 = vadd.s32 %v2017_v27, %v2013_v15 }
 0x76d   :  { %v2022_v36 = vadd.s32 %v2020_v19, %v2018_v51  ;;  %v2000_v46 = vadd.s32 %v1998_v35, %v1996_v52 }
 0x76f   :  { %v2023_v39 = vadd.s32 %v2022_v36, %v2012_v20  ;;  %v2001_v0 = vadd.s32 %v2000_v46, %v1990_v30  ;;  %v2527_v30 = vld [vmem:[%s3289_s6] ss:$0 sm:$0xff] }
 0x771   :  { %v2024_v41 = vadd.s32 %v2023_v39, %v2014_v49  ;;  %v2002_v45 = vadd.s32 %v2001_v0, %v1992_v44 }
 0x773   :  { %v2028_v53 = vadd.s32 1, %v2024_v41  ;;  %vm2027_vm7 = vc.u32 %v2002_v45, %v2021_v48  ;;  %v2026_v5 = vadd.s32 %v2021_v48, %v2002_v45 }
 0x775   :  { %v2029_v43 = vsel %vm2027_vm7, %v2028_v53, %v2024_v41 }
 0x776   :  { %v2030_v55 = vadd.s32 %v2029_v43, %v2025_v54 }
 0x778   :  { %v2031_v11 = vadd.s32 536870912, %v2030_v55 }
 0x77a   :  { %v2032_v57 = vshrl.u32 %v2031_v11, 30 }
 0x77c   :  { %v2033_v58 = vshll.u32 %v2032_v57, 30  ;;  %v2056_v22 = vsub.s32 4, %v2032_v57 }
 0x77e   :  { %v2034_v14 = vsub.s32 %v2030_v55, %v2033_v58  ;;  %v2057_v25 = vsel %vm1934_vm10, %v2056_v22, %v2032_v57 }
 0x77f   :  { %v2059_v12 = vsel %vm1933_vm11, 0, %v2057_v25 }
 0x780   :  { %vm2035_vm8 = vcmp.lt.s32.totalorder %v2034_v14, 0  ;;  %v2036_v3 = vsub.s32 0, %v2034_v14  ;;  %v2076_v32 = vadd.s32 3, %v2059_v12 }
 0x782   :  { %v2037_v10 = vsel %vm2035_vm8, %v2036_v3, %v2034_v14  ;;  %v2077_v42 = vand.u32 3, %v2076_v32 }
 0x783   :  { %v2038_v2 = vclz %v2037_v10 }
 0x784   :  { %vm2079_vm12 = vcmp.eq.s32.totalorder %v2077_v42, 0  ;;  %vm2082_vm13 = vcmp.eq.s32.totalorder %v2077_v42, 2  ;;  %vm2078_vm14 = vcmp.lt.s32.totalorder %v2077_v42, 2 }
 0x785   :  { %v2425_v13 = vadd.s32 4294967294, %v2038_v2 }
 0x787   :  { %vm2426_vm9 = vcmp.lt.s32.totalorder %v2425_v13, 0 }
 0x788   :  { %v2041_v38 = vsel %vm2426_vm9, 0, %v2425_v13 }
 0x789   :  { %v2042_v8 = vsub.s32 32, %v2041_v38  ;;  %v2046_v40 = vsub.s32 4294967266, %v2041_v38  ;;  %v2043_v16 = vshll.u32 %v2034_v14, %v2041_v38 }
 0x78b   :  { %v2044_v31 = vshrl.u32 %v2026_v5, %v2042_v8  ;;  %v2047_v1 = vadd.s32 127, %v2046_v40 }
 0x78d   :  { %v2045_v56 = vor.u32 %v2044_v31, %v2043_v16  ;;  %v2048_v4 = vshll.u32 %v2047_v1, 23 }
 0x78f   :  { %v2049_v62 = vor.u32 4788187, %v2048_v4  ;;  %v2052_v6 = vcvt.s32.f32 %v2045_v56 }
 0x791   :  { %v2050_v47 = vand.u32 2147483647, %v2049_v62 }
 0x793   :  { %v2053_v7 = vmul.f32 %v2052_v6, %v2050_v47 }
 0x795   :  { %v2054_v9 = vxor.u32 2147483648, %v2053_v7 }
 0x797   :  { %v2055_v61 = vsel %vm1934_vm10, %v2054_v9, %v2053_v7 }
 0x798   :  { %v2058_v18 = vsel %vm1933_vm11, %v3208_v17, %v2055_v61 }
 0x799   :  { %v2060_v23 = vmul.f32 %v2058_v18, %v2058_v18 }
 0x79b   :  { %v2061_v24 = vmul.f32 -0.001358992, %v2060_v23  ;;  %v2068_v60 = vmul.f32 -0.00019511016, %v2060_v23 }
 0x79d   :  { %v2062_v50 = vadd.f32 0.041655596, %v2061_v24  ;;  %v2069_v26 = vadd.f32 0.008332121, %v2068_v60 }
 0x79f   :  { %v2063_v15 = vmul.f32 %v2062_v50, %v2060_v23  ;;  %v2070_v27 = vmul.f32 %v2069_v26, %v2060_v23 }
 0x7a1   :  { %v2064_v59 = vadd.f32 -0.4999988, %v2063_v15  ;;  %v2071_v28 = vadd.f32 -0.16666654, %v2070_v27 }
 0x7a3   :  { %v2065_v33 = vmul.f32 %v2064_v59, %v2060_v23  ;;  %v2072_v34 = vmul.f32 %v2071_v28, %v2060_v23 }
 0x7a5   :  { %v2066_v51 = vadd.f32 1.0, %v2065_v33  ;;  %v2073_v63 = vadd.f32 1.0, %v2072_v34 }
 0x7a7   :  { %v2074_v52 = vmul.f32 %v2073_v63, %v2058_v18  ;;  %v2083_v19 = vxor.u32 2147483648, %v2066_v51 }
 0x7a9   :  { %v2080_v35 = vxor.u32 2147483648, %v2074_v52  ;;  %v2084_v36 = vsel %vm2082_vm13, %v2083_v19, %v2074_v52 }
 0x7ab   :  { %v2081_v20 = vsel %vm2079_vm12, %v2066_v51, %v2080_v35 }
 0x7ac   :  { %v2085_v29 = vsel %vm2078_vm14, %v2081_v20, %v2084_v36 }
 0x7ad   :  { %v2086_v37 = vsel %vm2075_vm15, nan, %v2085_v29 }
 0x7ae   :  { %2123 = vmatmul.f32.vlgmr.msra.gmra.mxu0 %v2086_v37 }
 0x82b   :  { %v2124_v46 = vpop.f32.mrf.mxu0 }
 0x82c   :  { %v2125_v49 = vadd.f32 %v2527_v30, %v2124_v46 }
 0x82e   :  { %2127 = vst [vmem:[#allocation11] sm:$0xff] %v2125_v49 }
 0x82f   :  { %2138 = dma.vmem_to_hbm [thread:$0]  %s2134_s8, 128, %s2136_s11, [#allocation4]  }
 0x830   :  { %2678 = dma.done.wait [#allocation4], 128  }
 0x831   :  { %2679 = vsyncadd [#allocation4], 4294967168 }
 0x832   :  { %2143 = vsyncpa [#allocation3], 1 }
 0x833   :  { %2144 = vsyncpa [#allocation6], 1 }
 0x834   :  { %2145 = vsyncpa [#allocation9], 1 }
 0x835   :  { %2146 = vsyncpa [#allocation4], 1 }

</bundles_post_ra>
